<compile_context>
chip_gen: v6e
topology: v6e:2x2x1
jax: 0.10.0
libtpu: 0.0.40
codegen_flags: <defaults>
</compile_context>

<pallas_src>
from functools import partial

import jax
import jax.numpy as jnp
from jax.experimental import pallas as pl
from jax.experimental.pallas import tpu as pltpu


# ----------------------------------------------------------------------------
# One-time parameter preparation (hoisted out of the hot path)
# ----------------------------------------------------------------------------
def _round_up(n, m=128):
    return ((n + m - 1) // m) * m


def conv2d_as_matrix(weight, in_shape):
    """Exact dense-matrix form of Conv2d(stride=1, padding='valid').

    weight: (Cout, Cin, KH, KW) in PyTorch layout.  in_shape: (Cin, H, W).
    Returns mat of shape (Cin*H*W, Cout*OH*OW) with NCHW-flatten ordering on
    both the input rows and the output columns.  Built by pure index
    scattering of the kernel taps (no arithmetic), so it is exact.
    """
    cout, cin, kh, kw = weight.shape
    cin2, h, w = in_shape
    assert cin == cin2, (weight.shape, in_shape)
    oh, ow = h - kh + 1, w - kw + 1

    co, ci, ki, kj, oy, ox = jnp.meshgrid(
        jnp.arange(cout), jnp.arange(cin), jnp.arange(kh), jnp.arange(kw),
        jnp.arange(oh), jnp.arange(ow), indexing="ij")
    rows = ci * (h * w) + (oy + ki) * w + (ox + kj)      # input  NCHW flat index
    cols = co * (oh * ow) + oy * ow + ox                 # output NCHW flat index
    vals = weight[co, ci, ki, kj].astype(jnp.float32)

    mat = jnp.zeros((cin * h * w, cout * oh * ow), jnp.float32)
    mat = mat.at[rows.ravel(), cols.ravel()].set(vals.ravel())
    return mat, (cout, oh, ow)


def prepare_params(conv_params, dense_params, in_shape):
    """One-time conversion of PyTorch-layout params into the kernel layout.

    Returns (conv_layers, dense_layers, out_dim) where each layer is a
    lane-padded (W, b) pair: W is (rows_pad, cols_pad) with cols_pad a
    multiple of 128 and rows_pad matching the previous layer's cols_pad
    (zero fill everywhere -> exact).  out_dim is the true final width.
    """
    shape = in_shape
    raw = []                                   # (W_true, b_true) in matmul layout
    for (w, b) in conv_params:
        mat, shape = conv2d_as_matrix(w, shape)
        cout, oh, ow = shape
        beff = jnp.repeat(b.astype(jnp.float32), oh * ow)
        raw.append((mat, beff))
    # After the last conv, activation columns are already in NCHW flatten
    # order (c, oh, ow), so nn.Flatten() is the identity and the first dense
    # weight needs no permutation.
    for (w, b) in dense_params:
        raw.append((w.T.astype(jnp.float32), b.astype(jnp.float32)))

    out_dim = int(raw[-1][0].shape[1])

    padded = []
    prev_pad = int(raw[0][0].shape[0])         # input flat dim (x is not padded)
    for (W, b) in raw:
        rows_true, cols_true = W.shape
        cols_pad = _round_up(cols_true)
        Wp = jnp.zeros((prev_pad, cols_pad), jnp.float32)
        Wp = Wp.at[:rows_true, :cols_true].set(W)
        bp = jnp.zeros((1, cols_pad), jnp.float32).at[0, :cols_true].set(b)
        padded.append((Wp, bp))
        prev_pad = cols_pad

    n_conv = len(conv_params)
    conv_layers = tuple(padded[:n_conv])
    dense_layers = tuple(padded[n_conv:])
    return conv_layers, dense_layers, out_dim


# ----------------------------------------------------------------------------
# Fused Pallas kernel: conv matmuls -> (flatten = identity) -> dense+ReLU stack
# ----------------------------------------------------------------------------
def _make_fused_kernel(n_conv, n_dense, out_dim):
    def kernel(*refs):
        x_ref, param_refs, o_ref = refs[0], refs[1:-1], refs[-1]
        h = x_ref[...]
        k = 0
        for _ in range(n_conv):              # Conv2d layers (no activation between)
            w_ref, b_ref = param_refs[k], param_refs[k + 1]
            k += 2
            h = jnp.dot(h, w_ref[...], preferred_element_type=jnp.float32) + b_ref[...]
        # nn.Flatten(): identity -- conv activations already live as (N, C*OH*OW).
        for _ in range(n_dense):             # Linear + ReLU layers
            w_ref, b_ref = param_refs[k], param_refs[k + 1]
            k += 2
            h = jnp.dot(h, w_ref[...], preferred_element_type=jnp.float32) + b_ref[...]
            h = jnp.maximum(h, 0.0)
        o_ref[...] = h[:, :out_dim].astype(o_ref.dtype)   # drop padded lanes
    return kernel


def _full_spec(arr):
    nd = arr.ndim
    return pl.BlockSpec(arr.shape, lambda i, _nd=nd: (0,) * _nd)


@partial(jax.jit, static_argnames=("out_dim",))
def encoder_forward(x, conv_layers, dense_layers, *, out_dim):
    """EncoderNN.forward: one reshape + ONE fused pallas_call."""
    n = x.shape[0]
    h0 = x.reshape(n, -1).astype(jnp.float32)          # NCHW flatten of the input
    layers = list(conv_layers) + list(dense_layers)
    args = [h0]
    for (w, b) in layers:
        args.append(w)
        args.append(b)
    kernel = _make_fused_kernel(len(conv_layers), len(dense_layers), out_dim)
    return pl.pallas_call(
        kernel,
        out_shape=jax.ShapeDtypeStruct((n, out_dim), jnp.float32),
        grid_spec=pl.GridSpec(
            grid=(1,),
            in_specs=[_full_spec(a) for a in args],
            out_specs=pl.BlockSpec((n, out_dim), lambda i: (0, 0)),
        ),
        compiler_params=pltpu.CompilerParams(
            dimension_semantics=("arbitrary",)),
    )(*args)


# ----------------------------------------------------------------------------
# Deterministic parameter construction (synthetic, matches module's shapes)
# ----------------------------------------------------------------------------
def make_params(key, channels, kernels, dense):
    conv_params = []
    for i in range(len(channels) - 1):
        key, k1, k2 = jax.random.split(key, 3)
        cin, cout = channels[i], channels[i + 1]
        kh, kw = kernels[i]
        fan_in = cin * kh * kw
        bound = 1.0 / jnp.sqrt(fan_in)
        w = jax.random.uniform(k1, (cout, cin, kh, kw), jnp.float32, -bound, bound)
        b = jax.random.uniform(k2, (cout,), jnp.float32, -bound, bound)
        conv_params.append((w, b))

    dense_params = []
    for i in range(len(dense) - 1):
        key, k1, k2 = jax.random.split(key, 3)
        fin, fout = dense[i], dense[i + 1]
        bound = 1.0 / jnp.sqrt(fin)
        w = jax.random.uniform(k1, (fout, fin), jnp.float32, -bound, bound)
        b = jax.random.uniform(k2, (fout,), jnp.float32, -bound, bound)
        dense_params.append((w, b))
    return conv_params, dense_params


# ----------------------------------------------------------------------------
# Pure-JAX reference (correctness check only)
# ----------------------------------------------------------------------------
def reference_forward(x, conv_params, dense_params):
    hp = jax.lax.Precision.HIGHEST
    for (w, b) in conv_params:
        x = jax.lax.conv_general_dilated(
            x, w, window_strides=(1, 1), padding="VALID",
            dimension_numbers=("NCHW", "OIHW", "NCHW"), precision=hp)
        x = x + b[None, :, None, None]
    x = x.reshape(x.shape[0], -1)
    for (w, b) in dense_params:
        x = jnp.maximum(jnp.dot(x, w.T, precision=hp) + b, 0.0)
    return x


if __name__ == "__main__":
    # Config consistent with EncoderNN(__init__):
    #   input_size=(1, 16, 16), batch_size=2, conv_levels=2, channels=4 -> [1,4,4],
    #   kernels=3 -> (3,3); conv output: 16 -> 14 -> 12 spatial, 4 channels.
    #   dense = [flattened_conv_out, 64, 32] (Linear + ReLU per layer).
    batch = 2
    H = W = 16
    channels = [1, 4, 4]                # channels.insert(0, 1) from __init__
    kernels = [(3, 3), (3, 3)]
    flat = 4 * 12 * 12
    dense = [flat, 64, 32]

    key = jax.random.PRNGKey(0)
    key, kx, kp = jax.random.split(key, 3)
    x = jax.random.normal(kx, (batch, channels[0], H, W), jnp.float32)
    conv_params, dense_params = make_params(kp, channels, kernels, dense)

    # One-time prep (hoisted out of the hot path): conv -> Toeplitz matrices,
    # dense weight transposes, bias reshapes, lane-padding to multiples of 128.
    conv_layers, dense_layers, out_dim = prepare_params(
        conv_params, dense_params, (channels[0], H, W))
    (conv_layers, dense_layers) = jax.block_until_ready((conv_layers, dense_layers))

    out = jax.block_until_ready(
        encoder_forward(x, conv_layers, dense_layers, out_dim=out_dim))

    ref = reference_forward(x, conv_params, dense_params)
    assert out.shape == (batch, dense[-1]), out.shape
    max_err = float(jnp.max(jnp.abs(out - ref)))
    assert jnp.allclose(out, ref, atol=1e-3, rtol=1e-3), max_err

    print("KERNEL_OK")
</pallas_src>

<mosaic_0001>
module attributes {stable_mosaic.version = 11 : i64} {
  func.func @kernel(%arg0: i32, %arg1: memref<2x256xf32, #tpu.memory_space<vmem>>, %arg2: memref<256x896xf32, #tpu.memory_space<vmem>>, %arg3: memref<1x896xf32, #tpu.memory_space<vmem>>, %arg4: memref<896x640xf32, #tpu.memory_space<vmem>>, %arg5: memref<1x640xf32, #tpu.memory_space<vmem>>, %arg6: memref<640x128xf32, #tpu.memory_space<vmem>>, %arg7: memref<1x128xf32, #tpu.memory_space<vmem>>, %arg8: memref<128x128xf32, #tpu.memory_space<vmem>>, %arg9: memref<1x128xf32, #tpu.memory_space<vmem>>, %arg10: memref<2x32xf32, #tpu.memory_space<vmem>>) attributes {dimension_semantics = [#tpu.dimension_semantics<arbitrary>], iteration_bounds = array<i64: 1>, scalar_prefetch = 0 : i64, scratch_operands = 0 : i64, tpu.core_type = #tpu.core_type<tc>, window_params = [{pipeline_mode = #tpu.pipeline_mode<synchronous>, transform_indices = @transform_0, window_bounds = array<i64: 2, 256>}, {pipeline_mode = #tpu.pipeline_mode<synchronous>, transform_indices = @transform_1, window_bounds = array<i64: 256, 896>}, {pipeline_mode = #tpu.pipeline_mode<synchronous>, transform_indices = @transform_2, window_bounds = array<i64: 1, 896>}, {pipeline_mode = #tpu.pipeline_mode<synchronous>, transform_indices = @transform_3, window_bounds = array<i64: 896, 640>}, {pipeline_mode = #tpu.pipeline_mode<synchronous>, transform_indices = @transform_4, window_bounds = array<i64: 1, 640>}, {pipeline_mode = #tpu.pipeline_mode<synchronous>, transform_indices = @transform_5, window_bounds = array<i64: 640, 128>}, {pipeline_mode = #tpu.pipeline_mode<synchronous>, transform_indices = @transform_6, window_bounds = array<i64: 1, 128>}, {pipeline_mode = #tpu.pipeline_mode<synchronous>, transform_indices = @transform_7, window_bounds = array<i64: 128, 128>}, {pipeline_mode = #tpu.pipeline_mode<synchronous>, transform_indices = @transform_8, window_bounds = array<i64: 1, 128>}, {pipeline_mode = #tpu.pipeline_mode<synchronous>, transform_indices = @transform_9, window_bounds = array<i64: 2, 32>}]} {
    %c0 = arith.constant 0 : index
    %c0_0 = arith.constant 0 : index
    %0 = vector.load %arg1[%c0, %c0_0] : memref<2x256xf32, #tpu.memory_space<vmem>>, vector<2x256xf32>
    %c0_1 = arith.constant 0 : index
    %c0_2 = arith.constant 0 : index
    %1 = vector.load %arg2[%c0_1, %c0_2] : memref<256x896xf32, #tpu.memory_space<vmem>>, vector<256x896xf32>
    %cst = arith.constant dense<0.000000e+00> : vector<2x896xf32>
    %2 = tpu.matmul %0, %1, %cst {dimension_numbers = #tpu.dot_dimension_numbers<[1], [0], [0], [1], [0, 0, 1, 1], [], []>} : vector<2x256xf32>, vector<256x896xf32>, vector<2x896xf32> -> vector<2x896xf32>
    %c0_3 = arith.constant 0 : index
    %c0_4 = arith.constant 0 : index
    %3 = vector.load %arg3[%c0_3, %c0_4] : memref<1x896xf32, #tpu.memory_space<vmem>>, vector<1x896xf32>
    %4 = vector.broadcast %3 : vector<1x896xf32> to vector<2x896xf32>
    %5 = arith.addf %2, %4 : vector<2x896xf32>
    %c0_5 = arith.constant 0 : index
    %c0_6 = arith.constant 0 : index
    %6 = vector.load %arg4[%c0_5, %c0_6] : memref<896x640xf32, #tpu.memory_space<vmem>>, vector<896x640xf32>
    %cst_7 = arith.constant dense<0.000000e+00> : vector<2x640xf32>
    %7 = tpu.matmul %5, %6, %cst_7 {dimension_numbers = #tpu.dot_dimension_numbers<[1], [0], [0], [1], [0, 0, 1, 1], [], []>} : vector<2x896xf32>, vector<896x640xf32>, vector<2x640xf32> -> vector<2x640xf32>
    %c0_8 = arith.constant 0 : index
    %c0_9 = arith.constant 0 : index
    %8 = vector.load %arg5[%c0_8, %c0_9] : memref<1x640xf32, #tpu.memory_space<vmem>>, vector<1x640xf32>
    %9 = vector.broadcast %8 : vector<1x640xf32> to vector<2x640xf32>
    %10 = arith.addf %7, %9 : vector<2x640xf32>
    %c0_10 = arith.constant 0 : index
    %c0_11 = arith.constant 0 : index
    %11 = vector.load %arg6[%c0_10, %c0_11] : memref<640x128xf32, #tpu.memory_space<vmem>>, vector<640x128xf32>
    %cst_12 = arith.constant dense<0.000000e+00> : vector<2x128xf32>
    %12 = tpu.matmul %10, %11, %cst_12 {dimension_numbers = #tpu.dot_dimension_numbers<[1], [0], [0], [1], [0, 0, 1, 1], [], []>} : vector<2x640xf32>, vector<640x128xf32>, vector<2x128xf32> -> vector<2x128xf32>
    %c0_13 = arith.constant 0 : index
    %c0_14 = arith.constant 0 : index
    %13 = vector.load %arg7[%c0_13, %c0_14] : memref<1x128xf32, #tpu.memory_space<vmem>>, vector<1x128xf32>
    %14 = vector.broadcast %13 : vector<1x128xf32> to vector<2x128xf32>
    %15 = arith.addf %12, %14 : vector<2x128xf32>
    %cst_15 = arith.constant 0.000000e+00 : f32
    %16 = vector.broadcast %cst_15 : f32 to vector<2x128xf32>
    %17 = arith.maximumf %15, %16 : vector<2x128xf32>
    %c0_16 = arith.constant 0 : index
    %c0_17 = arith.constant 0 : index
    %18 = vector.load %arg8[%c0_16, %c0_17] : memref<128x128xf32, #tpu.memory_space<vmem>>, vector<128x128xf32>
    %cst_18 = arith.constant dense<0.000000e+00> : vector<2x128xf32>
    %19 = tpu.matmul %17, %18, %cst_18 {dimension_numbers = #tpu.dot_dimension_numbers<[1], [0], [0], [1], [0, 0, 1, 1], [], []>} : vector<2x128xf32>, vector<128x128xf32>, vector<2x128xf32> -> vector<2x128xf32>
    %c0_19 = arith.constant 0 : index
    %c0_20 = arith.constant 0 : index
    %20 = vector.load %arg9[%c0_19, %c0_20] : memref<1x128xf32, #tpu.memory_space<vmem>>, vector<1x128xf32>
    %21 = vector.broadcast %20 : vector<1x128xf32> to vector<2x128xf32>
    %22 = arith.addf %19, %21 : vector<2x128xf32>
    %cst_21 = arith.constant 0.000000e+00 : f32
    %23 = vector.broadcast %cst_21 : f32 to vector<2x128xf32>
    %24 = arith.maximumf %22, %23 : vector<2x128xf32>
    %25 = vector.extract_strided_slice %24 {offsets = [0, 0], sizes = [2, 32], strides = [1, 1]} : vector<2x128xf32> to vector<2x32xf32>
    %c0_22 = arith.constant 0 : index
    %c0_23 = arith.constant 0 : index
    %26 = vector.load %arg10[%c0_22, %c0_23] : memref<2x32xf32, #tpu.memory_space<vmem>>, vector<2x32xf32>
    tpu.vector_store %arg10[%c0_22, %c0_23], %25 {strides = array<i32>} : memref<2x32xf32, #tpu.memory_space<vmem>>, vector<2x32xf32>,
    return
  }
  func.func @transform_0(%arg0: i32) -> (i32, i32) {
    %c0_i32 = arith.constant 0 : i32
    %c0_i32_0 = arith.constant 0 : i32
    %c0_i32_1 = arith.constant 0 : i32
    return %c0_i32, %c0_i32_0 : i32, i32
  }
  func.func @transform_1(%arg0: i32) -> (i32, i32) {
    %c0_i32 = arith.constant 0 : i32
    %c0_i32_0 = arith.constant 0 : i32
    %c0_i32_1 = arith.constant 0 : i32
    return %c0_i32, %c0_i32_0 : i32, i32
  }
  func.func @transform_2(%arg0: i32) -> (i32, i32) {
    %c0_i32 = arith.constant 0 : i32
    %c0_i32_0 = arith.constant 0 : i32
    %c0_i32_1 = arith.constant 0 : i32
    return %c0_i32, %c0_i32_0 : i32, i32
  }
  func.func @transform_3(%arg0: i32) -> (i32, i32) {
    %c0_i32 = arith.constant 0 : i32
    %c0_i32_0 = arith.constant 0 : i32
    %c0_i32_1 = arith.constant 0 : i32
    return %c0_i32, %c0_i32_0 : i32, i32
  }
  func.func @transform_4(%arg0: i32) -> (i32, i32) {
    %c0_i32 = arith.constant 0 : i32
    %c0_i32_0 = arith.constant 0 : i32
    %c0_i32_1 = arith.constant 0 : i32
    return %c0_i32, %c0_i32_0 : i32, i32
  }
  func.func @transform_5(%arg0: i32) -> (i32, i32) {
    %c0_i32 = arith.constant 0 : i32
    %c0_i32_0 = arith.constant 0 : i32
    %c0_i32_1 = arith.constant 0 : i32
    return %c0_i32, %c0_i32_0 : i32, i32
  }
  func.func @transform_6(%arg0: i32) -> (i32, i32) {
    %c0_i32 = arith.constant 0 : i32
    %c0_i32_0 = arith.constant 0 : i32
    %c0_i32_1 = arith.constant 0 : i32
    return %c0_i32, %c0_i32_0 : i32, i32
  }
  func.func @transform_7(%arg0: i32) -> (i32, i32) {
    %c0_i32 = arith.constant 0 : i32
    %c0_i32_0 = arith.constant 0 : i32
    %c0_i32_1 = arith.constant 0 : i32
    return %c0_i32, %c0_i32_0 : i32, i32
  }
  func.func @transform_8(%arg0: i32) -> (i32, i32) {
    %c0_i32 = arith.constant 0 : i32
    %c0_i32_0 = arith.constant 0 : i32
    %c0_i32_1 = arith.constant 0 : i32
    return %c0_i32, %c0_i32_0 : i32, i32
  }
  func.func @transform_9(%arg0: i32) -> (i32, i32) {
    %c0_i32 = arith.constant 0 : i32
    %c0_i32_0 = arith.constant 0 : i32
    %c0_i32_1 = arith.constant 0 : i32
    return %c0_i32, %c0_i32_0 : i32, i32
  }
}

</mosaic_0001>

<bundles_post_ra>
// kernel: encoder_forward.1
= control target key start
LH: loop header
LB: loop body
LE: loop exit
PB: predicated region body
PF: predicated region fallthrough
CT: control target
= control target key end

     0   :  { %14 = vsyncpa [#allocation3], 0  ;;  %s3363_s0 = inlined_call_operand.vmem [shape: f32[2,256], index: 0, kind: input, shape index: {}]   ;;  %s3364_s1 = inlined_call_operand.hbm [shape: f32[256,896], index: 1, kind: input, shape index: {}]   ;;  %s3365_s2 = inlined_call_operand.hbm [shape: f32[1,896], index: 2, kind: input, shape index: {}]   ;;  %s3366_s3 = inlined_call_operand.hbm [shape: f32[896,640], index: 3, kind: input, shape index: {}]   ;;  %s3367_s4 = inlined_call_operand.hbm [shape: f32[1,640], index: 4, kind: input, shape index: {}]   ;;  %s3368_s5 = inlined_call_operand.hbm [shape: f32[640,128], index: 5, kind: input, shape index: {}]   ;;  %s3369_s6 = inlined_call_operand.hbm [shape: f32[1,128], index: 6, kind: input, shape index: {}]   ;;  %s3370_s7 = inlined_call_operand.hbm [shape: f32[128,128], index: 7, kind: input, shape index: {}]   ;;  %s3371_s8 = inlined_call_operand.hbm [shape: f32[1,128], index: 8, kind: input, shape index: {}]   ;;  %s3372_s9 = inlined_call_operand.hbm [shape: f32[2,32], index: 9, kind: output, shape index: {}]  }
   0x1   :  { %15 = vsyncpa [#allocation6], 0 }
   0x2   :  { %16 = vsyncpa [#allocation9], 0 }
   0x3   :  { %17 = vsyncpa [#allocation12], 0 }
   0x4   :  { %18 = vsyncpa [#allocation15], 0 }
   0x5   :  { %19 = vsyncpa [#allocation4], 0  ;;  %s3116_s30 = smov [#allocation5]   ;;  %s3117_s11 = smov [#allocation8]  }
   0x6   :  { %s40_s10 = sshll.u32 %s3116_s30, 4  ;;  %s62_s12 = sshll.u32 %s3117_s11, 4  ;;  %s41_s10 = int_to_ptr.vmem [resolvable:$true] %s40_s10  ;;  %s63_s12 = int_to_ptr.vmem [resolvable:$true] %s62_s12 }
   0x7   :  { %s2932_s13 = scalar_lea.vmem %s41_s10, 112  ;;  %s2936_s14 = scalar_lea.vmem %s41_s10, 128 }
   0x8   :  { %p2933_p0 = scmp.ne.s32.totalorder %s41_s10, %s2932_s13  ;;  %p2937_p1 = scmp.lt.s32.totalorder %s41_s10, %s41_s10 }
   0x9   :  { %p2938_p2 = scmp.lt.s32.totalorder %s2936_s14, %s2932_s13 }
   0xb   :  { %p2939_p3 = por %p2938_p2, %p2937_p1 }
   0xd   :  { %p2940_p4 = pnand %p2939_p3, %p2933_p0 }
   0xf   :  { %2943 = shalt.err (!%p2940_p4)
}
  0x10   :  { %43 = dma.hbm_to_vmem [thread:$0]  %s3365_s2, 112, %s41_s10, [#allocation6]  }
  0x11   :  { %s2952_s17 = scalar_lea.vmem %s63_s12, 80  ;;  %s2956_s18 = scalar_lea.vmem %s63_s12, 96 }
  0x12   :  { %p2953_p5 = scmp.ne.s32.totalorder %s63_s12, %s2952_s17  ;;  %p2957_p6 = scmp.lt.s32.totalorder %s63_s12, %s63_s12 }
  0x13   :  { %p2958_p7 = scmp.lt.s32.totalorder %s2956_s18, %s2952_s17 }
  0x15   :  { %p2959_p8 = por %p2958_p7, %p2957_p6 }
  0x17   :  { %p2960_p9 = pnand %p2959_p8, %p2953_p5 }
  0x19   :  { %2963 = shalt.err (!%p2960_p9)
}
  0x1a   :  { %65 = dma.hbm_to_vmem [thread:$0]  %s3367_s4, 80, %s63_s12, [#allocation9]  }
  0x1b   :  { %s3118_s21 = smov [#allocation11]   ;;  %s3119_s23 = smov [#allocation2]  }
  0x1c   :  { %s84_s22 = sshll.u32 %s3118_s21, 4  ;;  %s27_s24 = sshll.u32 %s3119_s23, 4  ;;  %s85_s22 = int_to_ptr.vmem [resolvable:$true] %s84_s22  ;;  %s28_s24 = int_to_ptr.vmem [resolvable:$true] %s27_s24 }
  0x1d   :  { %s2972_s25 = scalar_lea.vmem %s85_s22, 16  ;;  %s2976_s2 = scalar_lea.vmem %s85_s22, 32 }
  0x1e   :  { %p2973_p10 = scmp.ne.s32.totalorder %s85_s22, %s2972_s25  ;;  %p2977_p11 = scmp.lt.s32.totalorder %s85_s22, %s85_s22 }
  0x1f   :  { %p2978_p12 = scmp.lt.s32.totalorder %s2976_s2, %s2972_s25 }
  0x21   :  { %p2979_p13 = por %p2978_p12, %p2977_p11 }
  0x23   :  { %p2980_p0 = pnand %p2979_p13, %p2973_p10 }
  0x25   :  { %2983 = shalt.err (!%p2980_p0)
}
  0x26   :  { %87 = dma.hbm_to_vmem [thread:$0]  %s3369_s6, 16, %s85_s22, [#allocation12]  }
  0x27   :  { %s2992_s28 = scalar_lea.vmem %s28_s24, 28672  ;;  %p2997_p2 = scmp.lt.s32.totalorder %s28_s24, %s28_s24 }
  0x28   :  { %p2993_p1 = scmp.ne.s32.totalorder %s28_s24, %s2992_s28  ;;  %p2998_p3 = scmp.lt.s32.totalorder %s2992_s28, %s2992_s28 }
  0x2a   :  { %p2999_p4 = por %p2998_p3, %p2997_p2 }
  0x2c   :  { %p3000_p5 = pnand %p2999_p4, %p2993_p1 }
  0x2e   :  { %3003 = shalt.err (!%p3000_p5)
}
  0x2f   :  { %s3120_s4 = smov 896   ;;  %s3121_s29 = smov 56  }
  0x30   :  { %33 = dma.hbm_to_vmem [thread:$0]  %s3364_s1, 28672, %s28_s24, [#allocation3], %s3120_s4, %s3120_s4, %s3121_s29  }
  0x31   :  { %s3122_s11 = smov [#allocation7]  }
  0x32   :  { %s49_s12 = sshll.u32 %s3122_s11, 4  ;;  %s50_s12 = int_to_ptr.vmem [resolvable:$true] %s49_s12 }
  0x33   :  { %s3012_s13 = scalar_lea.vmem %s50_s12, 71680  ;;  %p3017_p7 = scmp.lt.s32.totalorder %s50_s12, %s50_s12 }
  0x34   :  { %p3013_p6 = scmp.ne.s32.totalorder %s50_s12, %s3012_s13  ;;  %p3018_p8 = scmp.lt.s32.totalorder %s3012_s13, %s3012_s13 }
  0x36   :  { %p3019_p9 = por %p3018_p8, %p3017_p7 }
  0x38   :  { %p3020_p10 = pnand %p3019_p9, %p3013_p6 }
  0x3a   :  { %3023 = shalt.err (!%p3020_p10)
}
  0x3b   :  { %s3123_s6 = smov 640   ;;  %s3124_s14 = smov 40  }
  0x3c   :  { %55 = dma.hbm_to_vmem [thread:$0]  %s3366_s3, 71680, %s50_s12, [#allocation6], %s3123_s6, %s3123_s6, %s3124_s14  }
  0x3d   :  { %s3125_s17 = smov [#allocation10]  }
  0x3e   :  { %s71_s18 = sshll.u32 %s3125_s17, 4  ;;  %s72_s18 = int_to_ptr.vmem [resolvable:$true] %s71_s18 }
  0x3f   :  { %s3032_s1 = scalar_lea.vmem %s72_s18, 10240  ;;  %p3037_p12 = scmp.lt.s32.totalorder %s72_s18, %s72_s18 }
  0x40   :  { %p3033_p11 = scmp.ne.s32.totalorder %s72_s18, %s3032_s1  ;;  %p3038_p13 = scmp.lt.s32.totalorder %s3032_s1, %s3032_s1 }
  0x42   :  { %p3039_p0 = por %p3038_p13, %p3037_p12 }
  0x44   :  { %p3040_p1 = pnand %p3039_p0, %p3033_p11 }
  0x46   :  { %3043 = shalt.err (!%p3040_p1)
}
  0x47   :  { %s3126_s19 = smov 128   ;;  %s3127_s20 = smov 8  }
  0x48   :  { %77 = dma.hbm_to_vmem [thread:$0]  %s3368_s5, 10240, %s72_s18, [#allocation9], %s3126_s19, %s3126_s19, %s3127_s20  }
  0x49   :  { %s3128_s23 = smov [#allocation13]   ;;  %s3129_s25 = smov [#allocation14]  }
  0x4a   :  { %s93_s24 = sshll.u32 %s3128_s23, 4  ;;  %s106_s3 = sshll.u32 %s3129_s25, 4  ;;  %s94_s24 = int_to_ptr.vmem [resolvable:$true] %s93_s24  ;;  %s107_s3 = int_to_ptr.vmem [resolvable:$true] %s106_s3 }
  0x4b   :  { %s3052_s2 = scalar_lea.vmem %s94_s24, 2048  ;;  %p3057_p3 = scmp.lt.s32.totalorder %s94_s24, %s94_s24 }
  0x4c   :  { %p3053_p2 = scmp.ne.s32.totalorder %s94_s24, %s3052_s2  ;;  %p3058_p4 = scmp.lt.s32.totalorder %s3052_s2, %s3052_s2 }
  0x4e   :  { %p3059_p5 = por %p3058_p4, %p3057_p3 }
  0x50   :  { %p3060_p6 = pnand %p3059_p5, %p3053_p2 }
  0x52   :  { %3063 = shalt.err (!%p3060_p6)
}
  0x53   :  { %99 = dma.hbm_to_vmem [thread:$0]  %s3370_s7, 2048, %s94_s24, [#allocation12], %s3126_s19, %s3126_s19, %s3127_s20  }
  0x54   :  { %s3072_s28 = scalar_lea.vmem %s107_s3, 16  ;;  %s3076_s5 = scalar_lea.vmem %s107_s3, 32 }
  0x55   :  { %p3073_p7 = scmp.ne.s32.totalorder %s107_s3, %s3072_s28  ;;  %p3077_p8 = scmp.lt.s32.totalorder %s107_s3, %s107_s3 }
  0x56   :  { %p3078_p9 = scmp.lt.s32.totalorder %s3076_s5, %s3072_s28 }
  0x58   :  { %p3079_p10 = por %p3078_p9, %p3077_p8 }
  0x5a   :  { %p3080_p11 = pnand %p3079_p10, %p3073_p7 }
  0x5c   :  { %3083 = shalt.err (!%p3080_p11)
}
  0x5d   :  { %109 = dma.hbm_to_vmem [thread:$0]  %s3371_s8, 16, %s107_s3, [#allocation15]  }
  0x5e   :  { %3104 = dma.done.wait [#allocation3], 28672  }
  0x5f   :  { %3105 = vsyncadd [#allocation3], 4294938624 }
  0x60   :  { %3106 = dma.done.wait [#allocation6], 71792  }
  0x61   :  { %3107 = vsyncadd [#allocation6], 4294895504 }
  0x62   :  { %3108 = dma.done.wait [#allocation9], 10320  }
  0x63   :  { %3109 = vsyncadd [#allocation9], 4294956976 }
  0x64   :  { %3110 = dma.done.wait [#allocation12], 2064  }
  0x65   :  { %3111 = vsyncadd [#allocation12], 4294965232 }
  0x66   :  { %3112 = dma.done.wait [#allocation15], 16  }
  0x67   :  { %3113 = vsyncadd [#allocation15], 4294967280  ;;  %v241_v0 = vld [vmem:[#allocation2 + $0x350] sm:$0xff]  ;;  %v243_v1 = vld [vmem:[#allocation2 + $0x360] sm:$0xff]  ;;  %vm3131_vm0 = vmmov 0   ;;  %vm2517_vm1 = vcmask 254976  }
  0x68   :  { %v240_v2 = vld [vmem:[#allocation2 + $0x348] sm:$0xff]  ;;  %407 = vmatprep.subr.mxu0 %v241_v0  ;;  %478 = vmatprep.subr.mxu1 %v243_v1  ;;  %v242_v3 = vld [vmem:[#allocation2 + $0x358] sm:$0xff]  ;;  %v233_v6 = vld [vmem:[#allocation2 + $0x310] sm:$0xff] }
  0x69   :  { %v234_v4 = vld [vmem:[#allocation2 + $0x318] sm:$0xff]  ;;  %v236_v5 = vld [vmem:[#allocation2 + $0x328] sm:$0xff]  ;;  %408 = vmatpush1.msra.mxu0 %v240_v2  ;;  %479 = vmatpush1.msra.mxu1 %v242_v3  ;;  %v235_v7 = vld [vmem:[#allocation2 + $0x320] sm:$0xff] }
  0x6a   :  { %v227_v8 = vld [vmem:[#allocation2 + $0x2e0] sm:$0xff]  ;;  %409 = vmatprep.subr.mxu0 %v234_v4  ;;  %480 = vmatprep.subr.mxu1 %v236_v5  ;;  %v229_v9 = vld [vmem:[#allocation2 + $0x2f0] sm:$0xff]  ;;  %v226_v10 = vld [vmem:[#allocation2 + $0x2d8] sm:$0xff] }
  0x6b   :  { %v228_v11 = vld [vmem:[#allocation2 + $0x2e8] sm:$0xff]  ;;  %410 = vmatpush1.msra.mxu0 %v233_v6  ;;  %481 = vmatpush1.msra.mxu1 %v235_v7  ;;  %v222_v13 = vld [vmem:[#allocation2 + $0x2b8] sm:$0xff]  ;;  %v219_v14 = vld [vmem:[#allocation2 + $0x2a0] sm:$0xff] }
  0x6c   :  { %v220_v12 = vld [vmem:[#allocation2 + $0x2a8] sm:$0xff]  ;;  %411 = vmatprep.subr.mxu0 %v227_v8  ;;  %482 = vmatprep.subr.mxu1 %v229_v9  ;;  %v221_v15 = vld [vmem:[#allocation2 + $0x2b0] sm:$0xff]  ;;  %v215_v17 = vld [vmem:[#allocation2 + $0x280] sm:$0xff] }
  0x6d   :  { %412 = vmatpush1.msra.mxu0 %v226_v10  ;;  %483 = vmatpush1.msra.mxu1 %v228_v11  ;;  %v213_v16 = vld [vmem:[#allocation2 + $0x270] sm:$0xff]  ;;  %v212_v18 = vld [vmem:[#allocation2 + $0x268] sm:$0xff]  ;;  %v214_v19 = vld [vmem:[#allocation2 + $0x278] sm:$0xff] }
  0x6e   :  { %413 = vmatprep.subr.mxu0 %v220_v12  ;;  %484 = vmatprep.subr.mxu1 %v222_v13  ;;  %v206_v20 = vld [vmem:[#allocation2 + $0x238] sm:$0xff]  ;;  %v208_v21 = vld [vmem:[#allocation2 + $0x248] sm:$0xff]  ;;  %v205_v22 = vld [vmem:[#allocation2 + $0x230] sm:$0xff] }
  0x6f   :  { %414 = vmatpush1.msra.mxu0 %v219_v14  ;;  %485 = vmatpush1.msra.mxu1 %v221_v15  ;;  %v207_v23 = vld [vmem:[#allocation2 + $0x240] sm:$0xff]  ;;  %v201_v25 = vld [vmem:[#allocation2 + $0x210] sm:$0xff]  ;;  %v198_v26 = vld [vmem:[#allocation2 + $0x1f8] sm:$0xff] }
  0x70   :  { %415 = vmatprep.subr.mxu0 %v213_v16  ;;  %486 = vmatprep.subr.mxu1 %v215_v17  ;;  %v199_v24 = vld [vmem:[#allocation2 + $0x200] sm:$0xff]  ;;  %v200_v27 = vld [vmem:[#allocation2 + $0x208] sm:$0xff]  ;;  %v194_v29 = vld [vmem:[#allocation2 + $0x1d8] sm:$0xff] }
  0x71   :  { %416 = vmatpush1.msra.mxu0 %v212_v18  ;;  %487 = vmatpush1.msra.mxu1 %v214_v19  ;;  %v192_v28 = vld [vmem:[#allocation2 + $0x1c8] sm:$0xff]  ;;  %v191_v30 = vld [vmem:[#allocation2 + $0x1c0] sm:$0xff]  ;;  %v193_v31 = vld [vmem:[#allocation2 + $0x1d0] sm:$0xff] }
  0x72   :  { %417 = vmatprep.subr.mxu0 %v206_v20  ;;  %488 = vmatprep.subr.mxu1 %v208_v21  ;;  %v185_v32 = vld [vmem:[#allocation2 + $0x190] sm:$0xff]  ;;  %v187_v33 = vld [vmem:[#allocation2 + $0x1a0] sm:$0xff]  ;;  %v184_v34 = vld [vmem:[#allocation2 + $0x188] sm:$0xff] }
  0x73   :  { %418 = vmatpush1.msra.mxu0 %v205_v22  ;;  %489 = vmatpush1.msra.mxu1 %v207_v23  ;;  %v186_v35 = vld [vmem:[#allocation2 + $0x198] sm:$0xff]  ;;  %v180_v37 = vld [vmem:[#allocation2 + $0x168] sm:$0xff]  ;;  %v177_v38 = vld [vmem:[#allocation2 + $0x150] sm:$0xff] }
  0x74   :  { %419 = vmatprep.subr.mxu0 %v199_v24  ;;  %490 = vmatprep.subr.mxu1 %v201_v25  ;;  %v178_v36 = vld [vmem:[#allocation2 + $0x158] sm:$0xff]  ;;  %v179_v39 = vld [vmem:[#allocation2 + $0x160] sm:$0xff]  ;;  %v173_v41 = vld [vmem:[#allocation2 + $0x130] sm:$0xff] }
  0x75   :  { %420 = vmatpush1.msra.mxu0 %v198_v26  ;;  %491 = vmatpush1.msra.mxu1 %v200_v27  ;;  %v171_v40 = vld [vmem:[#allocation2 + $0x120] sm:$0xff]  ;;  %v170_v42 = vld [vmem:[#allocation2 + $0x118] sm:$0xff]  ;;  %v172_v43 = vld [vmem:[#allocation2 + $0x128] sm:$0xff] }
  0x76   :  { %421 = vmatprep.subr.mxu0 %v192_v28  ;;  %492 = vmatprep.subr.mxu1 %v194_v29  ;;  %v164_v44 = vld [vmem:[#allocation2 + $0xe8] sm:$0xff]  ;;  %v166_v45 = vld [vmem:[#allocation2 + $0xf8] sm:$0xff]  ;;  %v163_v46 = vld [vmem:[#allocation2 + $0xe0] sm:$0xff] }
  0x77   :  { %422 = vmatpush1.msra.mxu0 %v191_v30  ;;  %493 = vmatpush1.msra.mxu1 %v193_v31  ;;  %v165_v47 = vld [vmem:[#allocation2 + $0xf0] sm:$0xff]  ;;  %v159_v49 = vld [vmem:[#allocation2 + $0xc0] sm:$0xff]  ;;  %v156_v50 = vld [vmem:[#allocation2 + $0xa8] sm:$0xff] }
  0x78   :  { %423 = vmatprep.subr.mxu0 %v185_v32  ;;  %494 = vmatprep.subr.mxu1 %v187_v33  ;;  %v157_v48 = vld [vmem:[#allocation2 + $0xb0] sm:$0xff]  ;;  %v158_v51 = vld [vmem:[#allocation2 + $0xb8] sm:$0xff]  ;;  %v152_v53 = vld [vmem:[#allocation2 + $0x88] sm:$0xff] }
  0x79   :  { %424 = vmatpush1.msra.mxu0 %v184_v34  ;;  %495 = vmatpush1.msra.mxu1 %v186_v35  ;;  %v150_v52 = vld [vmem:[#allocation2 + $0x78] sm:$0xff]  ;;  %v149_v54 = vld [vmem:[#allocation2 + $0x70] sm:$0xff]  ;;  %v151_v55 = vld [vmem:[#allocation2 + $0x80] sm:$0xff] }
  0x7a   :  { %425 = vmatprep.subr.mxu0 %v178_v36  ;;  %496 = vmatprep.subr.mxu1 %v180_v37  ;;  %v143_v56 = vld [vmem:[#allocation2 + $0x40] sm:$0xff]  ;;  %v145_v57 = vld [vmem:[#allocation2 + $0x50] sm:$0xff]  ;;  %v142_v58 = vld [vmem:[#allocation2 + $0x38] sm:$0xff] }
  0x7b   :  { %426 = vmatpush1.msra.mxu0 %v177_v38  ;;  %497 = vmatpush1.msra.mxu1 %v179_v39  ;;  %v144_v59 = vld [vmem:[#allocation2 + $0x48] sm:$0xff]  ;;  %v138_v61 = vld [vmem:[#allocation2 + $0x18] sm:$0xff]  ;;  %v135_v62 = vld [vmem:[#allocation2] sm:$0xff] }
  0x7c   :  { %427 = vmatprep.subr.mxu0 %v171_v40  ;;  %498 = vmatprep.subr.mxu1 %v173_v41  ;;  %v136_v60 = vld [vmem:[#allocation2 + $0x8] sm:$0xff]  ;;  %v137_v63 = vld [vmem:[#allocation2 + $0x10] sm:$0xff]  ;;  %v355_v1 = vld [vmem:[#allocation2 + $0x6e0] sm:$0xff] }
  0x7d   :  { %428 = vmatpush1.msra.mxu0 %v170_v42  ;;  %499 = vmatpush1.msra.mxu1 %v172_v43  ;;  %v353_v0 = vld [vmem:[#allocation2 + $0x6d0] sm:$0xff]  ;;  %v352_v2 = vld [vmem:[#allocation2 + $0x6c8] sm:$0xff]  ;;  %v354_v3 = vld [vmem:[#allocation2 + $0x6d8] sm:$0xff] }
  0x7e   :  { %429 = vmatprep.subr.mxu0 %v164_v44  ;;  %500 = vmatprep.subr.mxu1 %v166_v45  ;;  %v346_v4 = vld [vmem:[#allocation2 + $0x698] sm:$0xff]  ;;  %v348_v5 = vld [vmem:[#allocation2 + $0x6a8] sm:$0xff]  ;;  %v345_v6 = vld [vmem:[#allocation2 + $0x690] sm:$0xff] }
  0x7f   :  { %430 = vmatpush1.msra.mxu0 %v163_v46  ;;  %501 = vmatpush1.msra.mxu1 %v165_v47  ;;  %v347_v7 = vld [vmem:[#allocation2 + $0x6a0] sm:$0xff]  ;;  %v341_v9 = vld [vmem:[#allocation2 + $0x670] sm:$0xff]  ;;  %v338_v10 = vld [vmem:[#allocation2 + $0x658] sm:$0xff] }
  0x80   :  { %431 = vmatprep.subr.mxu0 %v157_v48  ;;  %502 = vmatprep.subr.mxu1 %v159_v49  ;;  %v339_v8 = vld [vmem:[#allocation2 + $0x660] sm:$0xff]  ;;  %v340_v11 = vld [vmem:[#allocation2 + $0x668] sm:$0xff]  ;;  %v334_v13 = vld [vmem:[#allocation2 + $0x638] sm:$0xff] }
  0x81   :  { %432 = vmatpush1.msra.mxu0 %v156_v50  ;;  %503 = vmatpush1.msra.mxu1 %v158_v51  ;;  %v332_v12 = vld [vmem:[#allocation2 + $0x628] sm:$0xff]  ;;  %v331_v14 = vld [vmem:[#allocation2 + $0x620] sm:$0xff]  ;;  %v333_v15 = vld [vmem:[#allocation2 + $0x630] sm:$0xff] }
  0x82   :  { %433 = vmatprep.subr.mxu0 %v150_v52  ;;  %504 = vmatprep.subr.mxu1 %v152_v53  ;;  %v325_v16 = vld [vmem:[#allocation2 + $0x5f0] sm:$0xff]  ;;  %v327_v17 = vld [vmem:[#allocation2 + $0x600] sm:$0xff]  ;;  %v324_v18 = vld [vmem:[#allocation2 + $0x5e8] sm:$0xff] }
  0x83   :  { %434 = vmatpush1.msra.mxu0 %v149_v54  ;;  %505 = vmatpush1.msra.mxu1 %v151_v55  ;;  %v326_v19 = vld [vmem:[#allocation2 + $0x5f8] sm:$0xff]  ;;  %v320_v21 = vld [vmem:[#allocation2 + $0x5c8] sm:$0xff]  ;;  %v317_v22 = vld [vmem:[#allocation2 + $0x5b0] sm:$0xff] }
  0x84   :  { %435 = vmatprep.subr.mxu0 %v143_v56  ;;  %506 = vmatprep.subr.mxu1 %v145_v57  ;;  %v318_v20 = vld [vmem:[#allocation2 + $0x5b8] sm:$0xff]  ;;  %v319_v23 = vld [vmem:[#allocation2 + $0x5c0] sm:$0xff]  ;;  %v313_v25 = vld [vmem:[#allocation2 + $0x590] sm:$0xff] }
  0x85   :  { %436 = vmatpush1.msra.mxu0 %v142_v58  ;;  %507 = vmatpush1.msra.mxu1 %v144_v59  ;;  %v311_v24 = vld [vmem:[#allocation2 + $0x580] sm:$0xff]  ;;  %v310_v26 = vld [vmem:[#allocation2 + $0x578] sm:$0xff]  ;;  %v312_v27 = vld [vmem:[#allocation2 + $0x588] sm:$0xff] }
  0x86   :  { %437 = vmatprep.subr.mxu0 %v136_v60  ;;  %508 = vmatprep.subr.mxu1 %v138_v61  ;;  %v304_v28 = vld [vmem:[#allocation2 + $0x548] sm:$0xff]  ;;  %v306_v29 = vld [vmem:[#allocation2 + $0x558] sm:$0xff]  ;;  %v303_v30 = vld [vmem:[#allocation2 + $0x540] sm:$0xff] }
  0x87   :  { %438 = vmatpush1.msra.mxu0 %v135_v62  ;;  %509 = vmatpush1.msra.mxu1 %v137_v63  ;;  %v305_v31 = vld [vmem:[#allocation2 + $0x550] sm:$0xff]  ;;  %v299_v33 = vld [vmem:[#allocation2 + $0x520] sm:$0xff]  ;;  %v296_v34 = vld [vmem:[#allocation2 + $0x508] sm:$0xff] }
  0x88   :  { %439 = vmatprep.subr.mxu0 %v353_v0  ;;  %510 = vmatprep.subr.mxu1 %v355_v1  ;;  %v297_v32 = vld [vmem:[#allocation2 + $0x510] sm:$0xff]  ;;  %v298_v35 = vld [vmem:[#allocation2 + $0x518] sm:$0xff]  ;;  %v292_v37 = vld [vmem:[#allocation2 + $0x4e8] sm:$0xff] }
  0x89   :  { %440 = vmatpush2.msra.mxu0 %v352_v2  ;;  %511 = vmatpush2.msra.mxu1 %v354_v3  ;;  %v290_v36 = vld [vmem:[#allocation2 + $0x4d8] sm:$0xff]  ;;  %v289_v38 = vld [vmem:[#allocation2 + $0x4d0] sm:$0xff]  ;;  %v291_v39 = vld [vmem:[#allocation2 + $0x4e0] sm:$0xff] }
  0x8a   :  { %441 = vmatprep.subr.mxu0 %v346_v4  ;;  %512 = vmatprep.subr.mxu1 %v348_v5  ;;  %v283_v40 = vld [vmem:[#allocation2 + $0x4a0] sm:$0xff]  ;;  %v285_v41 = vld [vmem:[#allocation2 + $0x4b0] sm:$0xff]  ;;  %v282_v42 = vld [vmem:[#allocation2 + $0x498] sm:$0xff] }
  0x8b   :  { %442 = vmatpush2.msra.mxu0 %v345_v6  ;;  %513 = vmatpush2.msra.mxu1 %v347_v7  ;;  %v284_v43 = vld [vmem:[#allocation2 + $0x4a8] sm:$0xff]  ;;  %v278_v45 = vld [vmem:[#allocation2 + $0x478] sm:$0xff]  ;;  %v275_v46 = vld [vmem:[#allocation2 + $0x460] sm:$0xff] }
  0x8c   :  { %443 = vmatprep.subr.mxu0 %v339_v8  ;;  %514 = vmatprep.subr.mxu1 %v341_v9  ;;  %v276_v44 = vld [vmem:[#allocation2 + $0x468] sm:$0xff]  ;;  %v277_v47 = vld [vmem:[#allocation2 + $0x470] sm:$0xff]  ;;  %v271_v49 = vld [vmem:[#allocation2 + $0x440] sm:$0xff] }
  0x8d   :  { %444 = vmatpush2.msra.mxu0 %v338_v10  ;;  %515 = vmatpush2.msra.mxu1 %v340_v11  ;;  %v269_v48 = vld [vmem:[#allocation2 + $0x430] sm:$0xff]  ;;  %v268_v50 = vld [vmem:[#allocation2 + $0x428] sm:$0xff]  ;;  %v270_v51 = vld [vmem:[#allocation2 + $0x438] sm:$0xff] }
  0x8e   :  { %445 = vmatprep.subr.mxu0 %v332_v12  ;;  %516 = vmatprep.subr.mxu1 %v334_v13  ;;  %v262_v52 = vld [vmem:[#allocation2 + $0x3f8] sm:$0xff]  ;;  %v264_v53 = vld [vmem:[#allocation2 + $0x408] sm:$0xff]  ;;  %v261_v54 = vld [vmem:[#allocation2 + $0x3f0] sm:$0xff] }
  0x8f   :  { %446 = vmatpush2.msra.mxu0 %v331_v14  ;;  %517 = vmatpush2.msra.mxu1 %v333_v15  ;;  %v263_v55 = vld [vmem:[#allocation2 + $0x400] sm:$0xff]  ;;  %v257_v58 = vld [vmem:[#allocation2 + $0x3d0] sm:$0xff]  ;;  %v254_v59 = vld [vmem:[#allocation2 + $0x3b8] sm:$0xff] }
  0x90   :  { %447 = vmatprep.subr.mxu0 %v325_v16  ;;  %518 = vmatprep.subr.mxu1 %v327_v17  ;;  %v3210_v56 = vld.sshfl [vmem:[%s3363_s0] sm:$0x33 pattern:$0x76325410]  ;;  %v256_v60 = vld [vmem:[#allocation2 + $0x3c8] sm:$0xff]  ;;  %v250_v62 = vld [vmem:[#allocation2 + $0x398] sm:$0xff] }
  0x91   :  { %448 = vmatpush2.msra.mxu0 %v324_v18  ;;  %519 = vmatpush2.msra.mxu1 %v326_v19  ;;  %v255_v57 = vld [vmem:[#allocation2 + $0x3c0] sm:$0xff]  ;;  %v248_v61 = vld [vmem:[#allocation2 + $0x388] sm:$0xff]  ;;  %v3214_v63 = vcombine.high %v3210_v56, %v3210_v56  ;;  %v249_v1 = vld [vmem:[#allocation2 + $0x390] sm:$0xff]  ;;  %s3132_s0 = smov [#allocation16]  }
  0x92   :  { %449 = vmatprep.subr.mxu0 %v318_v20  ;;  %520 = vmatprep.subr.mxu1 %v320_v21  ;;  %v247_v0 = vld [vmem:[#allocation2 + $0x380] sm:$0xff]  ;;  %v245_v2 = vld [vmem:[#allocation2 + $0x370] sm:$0xff]  ;;  %v358_v3 = vld [vmem:[#allocation2 + $0x6f8] sm:$0xff]  ;;  %s2525_s30 = sshll.u32 %s3132_s0, 4  ;;  %s2526_s30 = int_to_ptr.vmem [resolvable:$true] %s2525_s30 }
  0x93   :  { %450 = vmatpush2.msra.mxu0 %v317_v22  ;;  %521 = vmatpush2.msra.mxu1 %v319_v23  ;;  %v244_v4 = vld [vmem:[#allocation2 + $0x368] sm:$0xff]  ;;  %v246_v5 = vld [vmem:[#allocation2 + $0x378] sm:$0xff]  ;;  %v351_v7 = vld [vmem:[#allocation2 + $0x6c0] sm:$0xff]  ;;  %s3084_s10 = scalar_lea.vmem %s2526_s30, 32  ;;  %p3089_p13 = scmp.lt.s32.totalorder %s2526_s30, %s2526_s30 }
  0x94   :  { %451 = vmatprep.subr.mxu0 %v311_v24  ;;  %522 = vmatprep.subr.mxu1 %v313_v25  ;;  %v238_v6 = vld [vmem:[#allocation2 + $0x338] sm:$0xff]  ;;  %v237_v8 = vld [vmem:[#allocation2 + $0x330] sm:$0xff]  ;;  %v239_v9 = vld [vmem:[#allocation2 + $0x340] sm:$0xff]  ;;  %p3085_p12 = scmp.ne.s32.totalorder %s2526_s30, %s3084_s10  ;;  %p3090_p0 = scmp.lt.s32.totalorder %s3084_s10, %s3084_s10 }
  0x95   :  { %452 = vmatpush2.msra.mxu0 %v310_v26  ;;  %523 = vmatpush2.msra.mxu1 %v312_v27  ;;  %v231_v10 = vld [vmem:[#allocation2 + $0x300] sm:$0xff]  ;;  %v344_v11 = vld [vmem:[#allocation2 + $0x688] sm:$0xff]  ;;  %v230_v12 = vld [vmem:[#allocation2 + $0x2f8] sm:$0xff] }
  0x96   :  { %453 = vmatprep.subr.mxu0 %v304_v28  ;;  %524 = vmatprep.subr.mxu1 %v306_v29  ;;  %v232_v13 = vld [vmem:[#allocation2 + $0x308] sm:$0xff]  ;;  %v337_v15 = vld [vmem:[#allocation2 + $0x650] sm:$0xff]  ;;  %v223_v16 = vld [vmem:[#allocation2 + $0x2c0] sm:$0xff]  ;;  %p3091_p1 = por %p3090_p0, %p3089_p13 }
  0x97   :  { %454 = vmatpush2.msra.mxu0 %v303_v30  ;;  %525 = vmatpush2.msra.mxu1 %v305_v31  ;;  %v224_v14 = vld [vmem:[#allocation2 + $0x2c8] sm:$0xff]  ;;  %v225_v17 = vld [vmem:[#allocation2 + $0x2d0] sm:$0xff]  ;;  %v330_v19 = vld [vmem:[#allocation2 + $0x618] sm:$0xff] }
  0x98   :  { %455 = vmatprep.subr.mxu0 %v297_v32  ;;  %526 = vmatprep.subr.mxu1 %v299_v33  ;;  %v217_v18 = vld [vmem:[#allocation2 + $0x290] sm:$0xff]  ;;  %v216_v20 = vld [vmem:[#allocation2 + $0x288] sm:$0xff]  ;;  %v218_v21 = vld [vmem:[#allocation2 + $0x298] sm:$0xff]  ;;  %p3092_p2 = pnand %p3091_p1, %p3085_p12 }
  0x99   :  { %456 = vmatpush2.msra.mxu0 %v296_v34  ;;  %527 = vmatpush2.msra.mxu1 %v298_v35  ;;  %v210_v22 = vld [vmem:[#allocation2 + $0x258] sm:$0xff]  ;;  %v323_v23 = vld [vmem:[#allocation2 + $0x5e0] sm:$0xff]  ;;  %v209_v24 = vld [vmem:[#allocation2 + $0x250] sm:$0xff] }
  0x9a   :  { %457 = vmatprep.subr.mxu0 %v290_v36  ;;  %528 = vmatprep.subr.mxu1 %v292_v37  ;;  %v211_v25 = vld [vmem:[#allocation2 + $0x260] sm:$0xff]  ;;  %v316_v27 = vld [vmem:[#allocation2 + $0x5a8] sm:$0xff]  ;;  %v202_v28 = vld [vmem:[#allocation2 + $0x218] sm:$0xff] }
  0x9b   :  { %458 = vmatpush2.msra.mxu0 %v289_v38  ;;  %529 = vmatpush2.msra.mxu1 %v291_v39  ;;  %v203_v26 = vld [vmem:[#allocation2 + $0x220] sm:$0xff]  ;;  %v204_v29 = vld [vmem:[#allocation2 + $0x228] sm:$0xff]  ;;  %v309_v31 = vld [vmem:[#allocation2 + $0x570] sm:$0xff] }
  0x9c   :  { %459 = vmatprep.subr.mxu0 %v283_v40  ;;  %530 = vmatprep.subr.mxu1 %v285_v41  ;;  %v196_v30 = vld [vmem:[#allocation2 + $0x1e8] sm:$0xff]  ;;  %v195_v32 = vld [vmem:[#allocation2 + $0x1e0] sm:$0xff]  ;;  %v197_v33 = vld [vmem:[#allocation2 + $0x1f0] sm:$0xff] }
  0x9d   :  { %460 = vmatpush2.msra.mxu0 %v282_v42  ;;  %531 = vmatpush2.msra.mxu1 %v284_v43  ;;  %v189_v34 = vld [vmem:[#allocation2 + $0x1b0] sm:$0xff]  ;;  %v302_v35 = vld [vmem:[#allocation2 + $0x538] sm:$0xff]  ;;  %v188_v36 = vld [vmem:[#allocation2 + $0x1a8] sm:$0xff] }
  0x9e   :  { %461 = vmatprep.subr.mxu0 %v276_v44  ;;  %532 = vmatprep.subr.mxu1 %v278_v45  ;;  %v190_v37 = vld [vmem:[#allocation2 + $0x1b8] sm:$0xff]  ;;  %v295_v39 = vld [vmem:[#allocation2 + $0x500] sm:$0xff]  ;;  %v181_v40 = vld [vmem:[#allocation2 + $0x170] sm:$0xff] }
  0x9f   :  { %462 = vmatpush2.msra.mxu0 %v275_v46  ;;  %533 = vmatpush2.msra.mxu1 %v277_v47  ;;  %v182_v38 = vld [vmem:[#allocation2 + $0x178] sm:$0xff]  ;;  %v183_v41 = vld [vmem:[#allocation2 + $0x180] sm:$0xff]  ;;  %v288_v43 = vld [vmem:[#allocation2 + $0x4c8] sm:$0xff] }
  0xa0   :  { %463 = vmatprep.subr.mxu0 %v269_v48  ;;  %534 = vmatprep.subr.mxu1 %v271_v49  ;;  %v175_v42 = vld [vmem:[#allocation2 + $0x140] sm:$0xff]  ;;  %v174_v44 = vld [vmem:[#allocation2 + $0x138] sm:$0xff]  ;;  %v176_v45 = vld [vmem:[#allocation2 + $0x148] sm:$0xff] }
  0xa1   :  { %464 = vmatpush2.msra.mxu0 %v268_v50  ;;  %535 = vmatpush2.msra.mxu1 %v270_v51  ;;  %v168_v46 = vld [vmem:[#allocation2 + $0x108] sm:$0xff]  ;;  %v281_v47 = vld [vmem:[#allocation2 + $0x490] sm:$0xff]  ;;  %v167_v48 = vld [vmem:[#allocation2 + $0x100] sm:$0xff] }
  0xa2   :  { %465 = vmatprep.subr.mxu0 %v262_v52  ;;  %536 = vmatprep.subr.mxu1 %v264_v53  ;;  %v169_v49 = vld [vmem:[#allocation2 + $0x110] sm:$0xff]  ;;  %v274_v51 = vld [vmem:[#allocation2 + $0x458] sm:$0xff]  ;;  %v160_v52 = vld [vmem:[#allocation2 + $0xc8] sm:$0xff] }
  0xa3   :  { %466 = vmatpush2.msra.mxu0 %v261_v54  ;;  %537 = vmatpush2.msra.mxu1 %v263_v55  ;;  %v161_v50 = vld [vmem:[#allocation2 + $0xd0] sm:$0xff]  ;;  %v162_v53 = vld [vmem:[#allocation2 + $0xd8] sm:$0xff]  ;;  %v267_v55 = vld [vmem:[#allocation2 + $0x420] sm:$0xff] }
  0xa4   :  { %467 = vmatprep.subr.mxu0 %v255_v57  ;;  %538 = vmatprep.subr.mxu1 %v257_v58  ;;  %v154_v54 = vld [vmem:[#allocation2 + $0x98] sm:$0xff]  ;;  %v153_v57 = vld [vmem:[#allocation2 + $0x90] sm:$0xff]  ;;  %v155_v58 = vld [vmem:[#allocation2 + $0xa0] sm:$0xff] }
  0xa5   :  { %468 = vmatpush2.msra.mxu0 %v254_v59  ;;  %539 = vmatpush2.msra.mxu1 %v256_v60  ;;  %v147_v59 = vld [vmem:[#allocation2 + $0x60] sm:$0xff]  ;;  %v260_v60 = vld [vmem:[#allocation2 + $0x3e8] sm:$0xff] }
  0xa6   :  { %469 = vmatprep.subr.mxu0 %v248_v61  ;;  %540 = vmatprep.subr.mxu1 %v250_v62  ;;  %v146_v61 = vld [vmem:[#allocation2 + $0x58] sm:$0xff]  ;;  %v148_v62 = vld [vmem:[#allocation2 + $0x68] sm:$0xff] }
  0xa7   :  { %470 = vmatpush2.msra.mxu0 %v247_v0  ;;  %471 = vmatprep.mubr.f32.mxu0 %v3214_v63  ;;  %v140_v0 = vld [vmem:[#allocation2 + $0x28] sm:$0xff] }
  0xa8   :  { %541 = vmatpush2.msra.mxu1 %v249_v1  ;;  %472 = vmatmul.mubr.f32.vlgmr.msra.gmra.mxu0 %v3210_v56  ;;  %v253_v1 = vld [vmem:[#allocation2 + $0x3b0] sm:$0xff] }
  0xa9   :  { %542 = vmatprep.mubr.f32.mxu1 %v3214_v63  ;;  %549 = vmatprep.subr.mxu0 %v245_v2  ;;  %v139_v2 = vld [vmem:[#allocation2 + $0x20] sm:$0xff] }
  0xaa   :  { %2541 = vmatprep.subr.mxu1 %v358_v3  ;;  %543 = vmatmul.mubr.f32.vlgmr.msra.gmra.mxu1 %v3210_v56  ;;  %v141_v3 = vld [vmem:[#allocation2 + $0x30] sm:$0xff] }
  0xab   :  { %550 = vmatpush1.msra.mxu0 %v244_v4  ;;  %2542 = vmatpush3.msra.mxu1 %v246_v5  ;;  %v357_v4 = vld [vmem:[#allocation2 + $0x6f0] sm:$0xff]  ;;  %v356_v5 = vld [vmem:[#allocation2 + $0x6e8] sm:$0xff] }
  0xac   :  { %551 = vmatprep.subr.mxu0 %v238_v6  ;;  %2543 = vmatprep.subr.mxu1 %v351_v7  ;;  %v350_v6 = vld [vmem:[#allocation2 + $0x6b8] sm:$0xff]  ;;  %v349_v7 = vld [vmem:[#allocation2 + $0x6b0] sm:$0xff] }
  0xad   :  { %552 = vmatpush1.msra.mxu0 %v237_v8  ;;  %2544 = vmatpush3.msra.mxu1 %v239_v9  ;;  %v766_v8 = vld [vmem:[#allocation7 + $0x260] sm:$0xff]  ;;  %v343_v9 = vld [vmem:[#allocation2 + $0x680] sm:$0xff] }
  0xae   :  { %553 = vmatprep.subr.mxu0 %v231_v10  ;;  %2545 = vmatprep.subr.mxu1 %v344_v11  ;;  %v765_v10 = vld [vmem:[#allocation7 + $0x258] sm:$0xff]  ;;  %v342_v11 = vld [vmem:[#allocation2 + $0x678] sm:$0xff] }
  0xaf   :  { %554 = vmatpush1.msra.mxu0 %v230_v12  ;;  %2546 = vmatpush3.msra.mxu1 %v232_v13  ;;  %v761_v12 = vld [vmem:[#allocation7 + $0x238] sm:$0xff]  ;;  %v336_v13 = vld [vmem:[#allocation2 + $0x648] sm:$0xff] }
  0xb0   :  { %555 = vmatprep.subr.mxu0 %v224_v14  ;;  %2547 = vmatprep.subr.mxu1 %v337_v15  ;;  %v760_v14 = vld [vmem:[#allocation7 + $0x230] sm:$0xff]  ;;  %v335_v15 = vld [vmem:[#allocation2 + $0x640] sm:$0xff] }
  0xb1   :  { %556 = vmatpush1.msra.mxu0 %v223_v16  ;;  %2548 = vmatpush3.msra.mxu1 %v225_v17  ;;  %v756_v16 = vld [vmem:[#allocation7 + $0x210] sm:$0xff]  ;;  %v329_v17 = vld [vmem:[#allocation2 + $0x610] sm:$0xff] }
  0xb2   :  { %557 = vmatprep.subr.mxu0 %v217_v18  ;;  %2549 = vmatprep.subr.mxu1 %v330_v19  ;;  %v755_v18 = vld [vmem:[#allocation7 + $0x208] sm:$0xff]  ;;  %v328_v19 = vld [vmem:[#allocation2 + $0x608] sm:$0xff] }
  0xb3   :  { %558 = vmatpush1.msra.mxu0 %v216_v20  ;;  %2550 = vmatpush3.msra.mxu1 %v218_v21  ;;  %v751_v20 = vld [vmem:[#allocation7 + $0x1e8] sm:$0xff]  ;;  %v322_v21 = vld [vmem:[#allocation2 + $0x5d8] sm:$0xff] }
  0xb4   :  { %559 = vmatprep.subr.mxu0 %v210_v22  ;;  %2551 = vmatprep.subr.mxu1 %v323_v23  ;;  %v321_v22 = vld [vmem:[#allocation2 + $0x5d0] sm:$0xff]  ;;  %v746_v23 = vld [vmem:[#allocation7 + $0x1c0] sm:$0xff] }
  0xb5   :  { %560 = vmatpush1.msra.mxu0 %v209_v24  ;;  %2552 = vmatpush3.msra.mxu1 %v211_v25  ;;  %v315_v24 = vld [vmem:[#allocation2 + $0x5a0] sm:$0xff] }
  0xb6   :  { %561 = vmatprep.subr.mxu0 %v203_v26  ;;  %2553 = vmatprep.subr.mxu1 %v316_v27  ;;  %v745_v25 = vld [vmem:[#allocation7 + $0x1b8] sm:$0xff]  ;;  %v314_v26 = vld [vmem:[#allocation2 + $0x598] sm:$0xff] }
  0xb7   :  { %562 = vmatpush1.msra.mxu0 %v202_v28  ;;  %2554 = vmatpush3.msra.mxu1 %v204_v29  ;;  %v741_v27 = vld [vmem:[#allocation7 + $0x198] sm:$0xff]  ;;  %v308_v28 = vld [vmem:[#allocation2 + $0x568] sm:$0xff]  ;;  %v740_v29 = vld [vmem:[#allocation7 + $0x190] sm:$0xff] }
  0xb8   :  { %563 = vmatprep.subr.mxu0 %v196_v30  ;;  %2555 = vmatprep.subr.mxu1 %v309_v31  ;;  %v307_v30 = vld [vmem:[#allocation2 + $0x560] sm:$0xff]  ;;  %v736_v31 = vld [vmem:[#allocation7 + $0x170] sm:$0xff] }
  0xb9   :  { %564 = vmatpush1.msra.mxu0 %v195_v32  ;;  %2556 = vmatpush3.msra.mxu1 %v197_v33  ;;  %v301_v32 = vld [vmem:[#allocation2 + $0x530] sm:$0xff] }
  0xba   :  { %565 = vmatprep.subr.mxu0 %v189_v34  ;;  %2557 = vmatprep.subr.mxu1 %v302_v35  ;;  %v735_v33 = vld [vmem:[#allocation7 + $0x168] sm:$0xff]  ;;  %v300_v34 = vld [vmem:[#allocation2 + $0x528] sm:$0xff] }
  0xbb   :  { %566 = vmatpush1.msra.mxu0 %v188_v36  ;;  %2558 = vmatpush3.msra.mxu1 %v190_v37  ;;  %v731_v35 = vld [vmem:[#allocation7 + $0x148] sm:$0xff]  ;;  %v294_v36 = vld [vmem:[#allocation2 + $0x4f8] sm:$0xff]  ;;  %v730_v37 = vld [vmem:[#allocation7 + $0x140] sm:$0xff] }
  0xbc   :  { %567 = vmatprep.subr.mxu0 %v182_v38  ;;  %2559 = vmatprep.subr.mxu1 %v295_v39  ;;  %v293_v38 = vld [vmem:[#allocation2 + $0x4f0] sm:$0xff]  ;;  %v726_v39 = vld [vmem:[#allocation7 + $0x120] sm:$0xff] }
  0xbd   :  { %568 = vmatpush1.msra.mxu0 %v181_v40  ;;  %2560 = vmatpush3.msra.mxu1 %v183_v41  ;;  %v287_v40 = vld [vmem:[#allocation2 + $0x4c0] sm:$0xff] }
  0xbe   :  { %569 = vmatprep.subr.mxu0 %v175_v42  ;;  %2561 = vmatprep.subr.mxu1 %v288_v43  ;;  %v725_v41 = vld [vmem:[#allocation7 + $0x118] sm:$0xff]  ;;  %v286_v42 = vld [vmem:[#allocation2 + $0x4b8] sm:$0xff] }
  0xbf   :  { %570 = vmatpush1.msra.mxu0 %v174_v44  ;;  %2562 = vmatpush3.msra.mxu1 %v176_v45  ;;  %v721_v43 = vld [vmem:[#allocation7 + $0xf8] sm:$0xff]  ;;  %v280_v44 = vld [vmem:[#allocation2 + $0x488] sm:$0xff]  ;;  %v720_v45 = vld [vmem:[#allocation7 + $0xf0] sm:$0xff] }
  0xc0   :  { %571 = vmatprep.subr.mxu0 %v168_v46  ;;  %2563 = vmatprep.subr.mxu1 %v281_v47  ;;  %v279_v46 = vld [vmem:[#allocation2 + $0x480] sm:$0xff]  ;;  %v716_v47 = vld [vmem:[#allocation7 + $0xd0] sm:$0xff] }
  0xc1   :  { %572 = vmatpush1.msra.mxu0 %v167_v48  ;;  %2564 = vmatpush3.msra.mxu1 %v169_v49  ;;  %v273_v48 = vld [vmem:[#allocation2 + $0x450] sm:$0xff] }
  0xc2   :  { %573 = vmatprep.subr.mxu0 %v161_v50  ;;  %2565 = vmatprep.subr.mxu1 %v274_v51  ;;  %v715_v49 = vld [vmem:[#allocation7 + $0xc8] sm:$0xff]  ;;  %v272_v50 = vld [vmem:[#allocation2 + $0x448] sm:$0xff] }
  0xc3   :  { %574 = vmatpush1.msra.mxu0 %v160_v52  ;;  %2566 = vmatpush3.msra.mxu1 %v162_v53  ;;  %v711_v51 = vld [vmem:[#allocation7 + $0xa8] sm:$0xff]  ;;  %v266_v52 = vld [vmem:[#allocation2 + $0x418] sm:$0xff]  ;;  %v710_v53 = vld [vmem:[#allocation7 + $0xa0] sm:$0xff] }
  0xc4   :  { %575 = vmatprep.subr.mxu0 %v154_v54  ;;  %2567 = vmatprep.subr.mxu1 %v267_v55  ;;  %v265_v54 = vld [vmem:[#allocation2 + $0x410] sm:$0xff]  ;;  %v706_v55 = vld [vmem:[#allocation7 + $0x80] sm:$0xff] }
  0xc5   :  { %576 = vmatpush1.msra.mxu0 %v153_v57  ;;  %2568 = vmatpush3.msra.mxu1 %v155_v58  ;;  %v259_v57 = vld [vmem:[#allocation2 + $0x3e0] sm:$0xff] }
  0xc6   :  { %577 = vmatprep.subr.mxu0 %v147_v59  ;;  %2569 = vmatprep.subr.mxu1 %v260_v60  ;;  %v705_v58 = vld [vmem:[#allocation7 + $0x78] sm:$0xff]  ;;  %v258_v59 = vld [vmem:[#allocation2 + $0x3d8] sm:$0xff] }
  0xc7   :  { %578 = vmatpush1.msra.mxu0 %v146_v61  ;;  %2570 = vmatpush3.msra.mxu1 %v148_v62  ;;  %v701_v60 = vld [vmem:[#allocation7 + $0x58] sm:$0xff]  ;;  %v252_v61 = vld [vmem:[#allocation2 + $0x3a8] sm:$0xff]  ;;  %v700_v62 = vld [vmem:[#allocation7 + $0x50] sm:$0xff] }
  0xc8   :  { %579 = vmatprep.subr.mxu0 %v140_v0  ;;  %2571 = vmatprep.subr.mxu1 %v253_v1  ;;  %v251_v0 = vld [vmem:[#allocation2 + $0x3a0] sm:$0xff]  ;;  %v696_v1 = vld [vmem:[#allocation7 + $0x30] sm:$0xff] }
  0xc9   :  { %580 = vmatpush1.msra.mxu0 %v139_v2  ;;  %2572 = vmatpush3.msra.mxu1 %v141_v3  ;;  %v926_v2 = vld [vmem:[#allocation7 + $0x760] sm:$0xff]  ;;  %v925_v3 = vld [vmem:[#allocation7 + $0x758] sm:$0xff] }
  0xca   :  { %684 = vmatprep.mubr.f32.mxu1 %v3214_v63  ;;  %581 = vmatprep.subr.mxu0 %v357_v4  ;;  %v695_v4 = vld [vmem:[#allocation7 + $0x28] sm:$0xff] }
  0xcb   :  { %685 = vmatmul.mubr.f32.vlgmr.msra.gmra.mxu1 %v3210_v56  ;;  %582 = vmatpush2.msra.mxu0 %v356_v5  ;;  %v921_v5 = vld [vmem:[#allocation7 + $0x738] sm:$0xff] }
  0xcc   :  { %583 = vmatprep.subr.mxu0 %v350_v6  ;;  %613 = vmatprep.mubr.f32.mxu0 %v3214_v63  ;;  %v750_v63 = vld [vmem:[#allocation7 + $0x1e0] sm:$0xff]  ;;  %v691_v6 = vld [vmem:[#allocation7 + $0x8] sm:$0xff] }
  0xcd   :  { %584 = vmatpush2.msra.mxu0 %v349_v7  ;;  %1277 = vmatprep.subr.mxu1 %v766_v8  ;;  %v920_v7 = vld [vmem:[#allocation7 + $0x730] sm:$0xff]  ;;  %v690_v8 = vld [vmem:[#allocation7] sm:$0xff] }
  0xce   :  { %585 = vmatprep.subr.mxu0 %v343_v9  ;;  %1278 = vmatpush1.msra.mxu1 %v765_v10  ;;  %v916_v9 = vld [vmem:[#allocation7 + $0x710] sm:$0xff]  ;;  %v846_v10 = vld [vmem:[#allocation7 + $0x4e0] sm:$0xff] }
  0xcf   :  { %586 = vmatpush2.msra.mxu0 %v342_v11  ;;  %1279 = vmatprep.subr.mxu1 %v761_v12  ;;  %v915_v11 = vld [vmem:[#allocation7 + $0x708] sm:$0xff]  ;;  %v845_v12 = vld [vmem:[#allocation7 + $0x4d8] sm:$0xff] }
  0xd0   :  { %587 = vmatprep.subr.mxu0 %v336_v13  ;;  %1280 = vmatpush1.msra.mxu1 %v760_v14  ;;  %v911_v13 = vld [vmem:[#allocation7 + $0x6e8] sm:$0xff]  ;;  %v841_v14 = vld [vmem:[#allocation7 + $0x4b8] sm:$0xff] }
  0xd1   :  { %588 = vmatpush2.msra.mxu0 %v335_v15  ;;  %1281 = vmatprep.subr.mxu1 %v756_v16  ;;  %v910_v15 = vld [vmem:[#allocation7 + $0x6e0] sm:$0xff]  ;;  %v840_v16 = vld [vmem:[#allocation7 + $0x4b0] sm:$0xff] }
  0xd2   :  { %589 = vmatprep.subr.mxu0 %v329_v17  ;;  %1282 = vmatpush1.msra.mxu1 %v755_v18  ;;  %v836_v17 = vld [vmem:[#allocation7 + $0x490] sm:$0xff]  ;;  %v905_v18 = vld [vmem:[#allocation7 + $0x6b8] sm:$0xff] }
  0xd3   :  { %590 = vmatpush2.msra.mxu0 %v328_v19  ;;  %1283 = vmatprep.subr.mxu1 %v751_v20  ;;  %v835_v19 = vld [vmem:[#allocation7 + $0x488] sm:$0xff]  ;;  %v901_v20 = vld [vmem:[#allocation7 + $0x698] sm:$0xff] }
  0xd4   :  { %591 = vmatprep.subr.mxu0 %v322_v21  ;;  %1284 = vmatpush1.msra.mxu1 %v750_v63  ;;  %v831_v21 = vld [vmem:[#allocation7 + $0x468] sm:$0xff]  ;;  %v900_v63 = vld [vmem:[#allocation7 + $0x690] sm:$0xff] }
  0xd5   :  { %592 = vmatpush2.msra.mxu0 %v321_v22  ;;  %1285 = vmatprep.subr.mxu1 %v746_v23  ;;  %v830_v22 = vld [vmem:[#allocation7 + $0x460] sm:$0xff]  ;;  %v896_v23 = vld [vmem:[#allocation7 + $0x670] sm:$0xff] }
  0xd6   :  { %593 = vmatprep.subr.mxu0 %v315_v24  ;;  %1286 = vmatpush1.msra.mxu1 %v745_v25  ;;  %v826_v24 = vld [vmem:[#allocation7 + $0x440] sm:$0xff]  ;;  %v895_v25 = vld [vmem:[#allocation7 + $0x668] sm:$0xff] }
  0xd7   :  { %594 = vmatpush2.msra.mxu0 %v314_v26  ;;  %1287 = vmatprep.subr.mxu1 %v741_v27  ;;  %v825_v26 = vld [vmem:[#allocation7 + $0x438] sm:$0xff]  ;;  %v891_v27 = vld [vmem:[#allocation7 + $0x648] sm:$0xff] }
  0xd8   :  { %595 = vmatprep.subr.mxu0 %v308_v28  ;;  %1288 = vmatpush1.msra.mxu1 %v740_v29  ;;  %v821_v28 = vld [vmem:[#allocation7 + $0x418] sm:$0xff]  ;;  %v890_v29 = vld [vmem:[#allocation7 + $0x640] sm:$0xff] }
  0xd9   :  { %596 = vmatpush2.msra.mxu0 %v307_v30  ;;  %1289 = vmatprep.subr.mxu1 %v736_v31  ;;  %v820_v30 = vld [vmem:[#allocation7 + $0x410] sm:$0xff]  ;;  %v886_v31 = vld [vmem:[#allocation7 + $0x620] sm:$0xff] }
  0xda   :  { %597 = vmatprep.subr.mxu0 %v301_v32  ;;  %1290 = vmatpush1.msra.mxu1 %v735_v33  ;;  %v816_v32 = vld [vmem:[#allocation7 + $0x3f0] sm:$0xff]  ;;  %v885_v33 = vld [vmem:[#allocation7 + $0x618] sm:$0xff] }
  0xdb   :  { %598 = vmatpush2.msra.mxu0 %v300_v34  ;;  %1291 = vmatprep.subr.mxu1 %v731_v35  ;;  %v815_v34 = vld [vmem:[#allocation7 + $0x3e8] sm:$0xff]  ;;  %v881_v35 = vld [vmem:[#allocation7 + $0x5f8] sm:$0xff] }
  0xdc   :  { %599 = vmatprep.subr.mxu0 %v294_v36  ;;  %1292 = vmatpush1.msra.mxu1 %v730_v37  ;;  %v811_v36 = vld [vmem:[#allocation7 + $0x3c8] sm:$0xff]  ;;  %v880_v37 = vld [vmem:[#allocation7 + $0x5f0] sm:$0xff] }
  0xdd   :  { %600 = vmatpush2.msra.mxu0 %v293_v38  ;;  %1293 = vmatprep.subr.mxu1 %v726_v39  ;;  %v810_v38 = vld [vmem:[#allocation7 + $0x3c0] sm:$0xff]  ;;  %v876_v39 = vld [vmem:[#allocation7 + $0x5d0] sm:$0xff] }
  0xde   :  { %601 = vmatprep.subr.mxu0 %v287_v40  ;;  %1294 = vmatpush1.msra.mxu1 %v725_v41  ;;  %v806_v40 = vld [vmem:[#allocation7 + $0x3a0] sm:$0xff]  ;;  %v875_v41 = vld [vmem:[#allocation7 + $0x5c8] sm:$0xff] }
  0xdf   :  { %602 = vmatpush2.msra.mxu0 %v286_v42  ;;  %1295 = vmatprep.subr.mxu1 %v721_v43  ;;  %v805_v42 = vld [vmem:[#allocation7 + $0x398] sm:$0xff]  ;;  %v871_v43 = vld [vmem:[#allocation7 + $0x5a8] sm:$0xff] }
  0xe0   :  { %603 = vmatprep.subr.mxu0 %v280_v44  ;;  %1296 = vmatpush1.msra.mxu1 %v720_v45  ;;  %v801_v44 = vld [vmem:[#allocation7 + $0x378] sm:$0xff]  ;;  %v870_v45 = vld [vmem:[#allocation7 + $0x5a0] sm:$0xff] }
  0xe1   :  { %604 = vmatpush2.msra.mxu0 %v279_v46  ;;  %1297 = vmatprep.subr.mxu1 %v716_v47  ;;  %v800_v46 = vld [vmem:[#allocation7 + $0x370] sm:$0xff]  ;;  %v866_v47 = vld [vmem:[#allocation7 + $0x580] sm:$0xff] }
  0xe2   :  { %605 = vmatprep.subr.mxu0 %v273_v48  ;;  %1298 = vmatpush1.msra.mxu1 %v715_v49  ;;  %v796_v48 = vld [vmem:[#allocation7 + $0x350] sm:$0xff]  ;;  %v865_v49 = vld [vmem:[#allocation7 + $0x578] sm:$0xff] }
  0xe3   :  { %606 = vmatpush2.msra.mxu0 %v272_v50  ;;  %1299 = vmatprep.subr.mxu1 %v711_v51  ;;  %v795_v50 = vld [vmem:[#allocation7 + $0x348] sm:$0xff]  ;;  %v861_v51 = vld [vmem:[#allocation7 + $0x558] sm:$0xff] }
  0xe4   :  { %607 = vmatprep.subr.mxu0 %v266_v52  ;;  %1300 = vmatpush1.msra.mxu1 %v710_v53  ;;  %v791_v52 = vld [vmem:[#allocation7 + $0x328] sm:$0xff]  ;;  %v860_v53 = vld [vmem:[#allocation7 + $0x550] sm:$0xff] }
  0xe5   :  { %608 = vmatpush2.msra.mxu0 %v265_v54  ;;  %1301 = vmatprep.subr.mxu1 %v706_v55  ;;  %v790_v54 = vld [vmem:[#allocation7 + $0x320] sm:$0xff]  ;;  %v856_v55 = vld [vmem:[#allocation7 + $0x530] sm:$0xff] }
  0xe6   :  { %609 = vmatprep.subr.mxu0 %v259_v57  ;;  %1302 = vmatpush1.msra.mxu1 %v705_v58  ;;  %v786_v57 = vld [vmem:[#allocation7 + $0x300] sm:$0xff]  ;;  %v855_v58 = vld [vmem:[#allocation7 + $0x528] sm:$0xff] }
  0xe7   :  { %610 = vmatpush2.msra.mxu0 %v258_v59  ;;  %1303 = vmatprep.subr.mxu1 %v701_v60  ;;  %v785_v59 = vld [vmem:[#allocation7 + $0x2f8] sm:$0xff]  ;;  %v851_v60 = vld [vmem:[#allocation7 + $0x508] sm:$0xff] }
  0xe8   :  { %611 = vmatprep.subr.mxu0 %v252_v61  ;;  %1304 = vmatpush1.msra.mxu1 %v700_v62  ;;  %v781_v61 = vld [vmem:[#allocation7 + $0x2d8] sm:$0xff]  ;;  %v850_v62 = vld [vmem:[#allocation7 + $0x500] sm:$0xff] }
  0xe9   :  { %612 = vmatpush2.msra.mxu0 %v251_v0  ;;  %1305 = vmatprep.subr.mxu1 %v696_v1  ;;  %v780_v0 = vld [vmem:[#allocation7 + $0x2d0] sm:$0xff]  ;;  %v1006_v1 = vld [vmem:[#allocation7 + $0x9e0] sm:$0xff] }
  0xea   :  { %614 = vmatmul.mubr.f32.vlgmr.msra.gmra.mxu0 %v3210_v56  ;;  %1348 = vmatprep.subr.mxu0 %v926_v2  ;;  %v906_v56 = vld [vmem:[#allocation7 + $0x6c0] sm:$0xff]  ;;  %v776_v2 = vld [vmem:[#allocation7 + $0x2b0] sm:$0xff] }
  0xeb   :  { %1349 = vmatpush1.msra.mxu0 %v925_v3  ;;  %1306 = vmatpush1.msra.mxu1 %v695_v4  ;;  %v1005_v3 = vld [vmem:[#allocation7 + $0x9d8] sm:$0xff]  ;;  %v775_v4 = vld [vmem:[#allocation7 + $0x2a8] sm:$0xff] }
  0xec   :  { %1350 = vmatprep.subr.mxu0 %v921_v5  ;;  %1307 = vmatprep.subr.mxu1 %v691_v6  ;;  %v1001_v5 = vld [vmem:[#allocation7 + $0x9b8] sm:$0xff]  ;;  %v771_v6 = vld [vmem:[#allocation7 + $0x288] sm:$0xff] }
  0xed   :  { %1351 = vmatpush1.msra.mxu0 %v920_v7  ;;  %1308 = vmatpush1.msra.mxu1 %v690_v8  ;;  %v1000_v7 = vld [vmem:[#allocation7 + $0x9b0] sm:$0xff]  ;;  %v770_v8 = vld [vmem:[#allocation7 + $0x280] sm:$0xff] }
  0xee   :  { %1352 = vmatprep.subr.mxu0 %v916_v9  ;;  %1309 = vmatprep.subr.mxu1 %v846_v10  ;;  %v996_v9 = vld [vmem:[#allocation7 + $0x990] sm:$0xff]  ;;  %v1086_v10 = vld [vmem:[#allocation7 + $0xc60] sm:$0xff] }
  0xef   :  { %1353 = vmatpush1.msra.mxu0 %v915_v11  ;;  %1310 = vmatpush2.msra.mxu1 %v845_v12  ;;  %v995_v11 = vld [vmem:[#allocation7 + $0x988] sm:$0xff] }
  0xf0   :  { %1354 = vmatprep.subr.mxu0 %v911_v13  ;;  %1311 = vmatprep.subr.mxu1 %v841_v14  ;;  %v991_v12 = vld [vmem:[#allocation7 + $0x968] sm:$0xff]  ;;  %v990_v13 = vld [vmem:[#allocation7 + $0x960] sm:$0xff] }
  0xf1   :  { %1355 = vmatpush1.msra.mxu0 %v910_v15  ;;  %1312 = vmatpush2.msra.mxu1 %v840_v16  ;;  %v986_v14 = vld [vmem:[#allocation7 + $0x940] sm:$0xff]  ;;  %v985_v15 = vld [vmem:[#allocation7 + $0x938] sm:$0xff] }
  0xf2   :  { %1356 = vmatprep.subr.mxu0 %v906_v56  ;;  %1313 = vmatprep.subr.mxu1 %v836_v17  ;;  %v981_v16 = vld [vmem:[#allocation7 + $0x918] sm:$0xff]  ;;  %v980_v56 = vld [vmem:[#allocation7 + $0x910] sm:$0xff] }
  0xf3   :  { %1357 = vmatpush1.msra.mxu0 %v905_v18  ;;  %1314 = vmatpush2.msra.mxu1 %v835_v19  ;;  %v976_v17 = vld [vmem:[#allocation7 + $0x8f0] sm:$0xff]  ;;  %v975_v18 = vld [vmem:[#allocation7 + $0x8e8] sm:$0xff] }
  0xf4   :  { %1358 = vmatprep.subr.mxu0 %v901_v20  ;;  %1315 = vmatprep.subr.mxu1 %v831_v21  ;;  %v971_v19 = vld [vmem:[#allocation7 + $0x8c8] sm:$0xff]  ;;  %v970_v20 = vld [vmem:[#allocation7 + $0x8c0] sm:$0xff] }
  0xf5   :  { %1359 = vmatpush1.msra.mxu0 %v900_v63  ;;  %1316 = vmatpush2.msra.mxu1 %v830_v22  ;;  %v966_v21 = vld [vmem:[#allocation7 + $0x8a0] sm:$0xff]  ;;  %v965_v63 = vld [vmem:[#allocation7 + $0x898] sm:$0xff] }
  0xf6   :  { %1360 = vmatprep.subr.mxu0 %v896_v23  ;;  %1317 = vmatprep.subr.mxu1 %v826_v24  ;;  %v961_v22 = vld [vmem:[#allocation7 + $0x878] sm:$0xff]  ;;  %v960_v23 = vld [vmem:[#allocation7 + $0x870] sm:$0xff] }
  0xf7   :  { %1361 = vmatpush1.msra.mxu0 %v895_v25  ;;  %1318 = vmatpush2.msra.mxu1 %v825_v26  ;;  %v956_v24 = vld [vmem:[#allocation7 + $0x850] sm:$0xff]  ;;  %v955_v25 = vld [vmem:[#allocation7 + $0x848] sm:$0xff] }
  0xf8   :  { %1362 = vmatprep.subr.mxu0 %v891_v27  ;;  %1319 = vmatprep.subr.mxu1 %v821_v28  ;;  %v951_v26 = vld [vmem:[#allocation7 + $0x828] sm:$0xff]  ;;  %v950_v27 = vld [vmem:[#allocation7 + $0x820] sm:$0xff] }
  0xf9   :  { %1363 = vmatpush1.msra.mxu0 %v890_v29  ;;  %1320 = vmatpush2.msra.mxu1 %v820_v30  ;;  %v946_v28 = vld [vmem:[#allocation7 + $0x800] sm:$0xff]  ;;  %v945_v29 = vld [vmem:[#allocation7 + $0x7f8] sm:$0xff] }
  0xfa   :  { %1364 = vmatprep.subr.mxu0 %v886_v31  ;;  %1321 = vmatprep.subr.mxu1 %v816_v32  ;;  %v941_v30 = vld [vmem:[#allocation7 + $0x7d8] sm:$0xff]  ;;  %v940_v31 = vld [vmem:[#allocation7 + $0x7d0] sm:$0xff] }
  0xfb   :  { %1365 = vmatpush1.msra.mxu0 %v885_v33  ;;  %1322 = vmatpush2.msra.mxu1 %v815_v34  ;;  %v936_v32 = vld [vmem:[#allocation7 + $0x7b0] sm:$0xff]  ;;  %v935_v33 = vld [vmem:[#allocation7 + $0x7a8] sm:$0xff] }
  0xfc   :  { %1366 = vmatprep.subr.mxu0 %v881_v35  ;;  %1323 = vmatprep.subr.mxu1 %v811_v36  ;;  %v931_v34 = vld [vmem:[#allocation7 + $0x788] sm:$0xff]  ;;  %v930_v35 = vld [vmem:[#allocation7 + $0x780] sm:$0xff] }
  0xfd   :  { %1367 = vmatpush1.msra.mxu0 %v880_v37  ;;  %1324 = vmatpush2.msra.mxu1 %v810_v38  ;;  %v1246_v36 = vld [vmem:[#allocation7 + $0x1160] sm:$0xff]  ;;  %v361_v37 = vlaneseq }
  0xfe   :  { %1368 = vmatprep.subr.mxu0 %v876_v39  ;;  %1325 = vmatprep.subr.mxu1 %v806_v40 }
  0xff   :  { %1369 = vmatpush1.msra.mxu0 %v875_v41  ;;  %1326 = vmatpush2.msra.mxu1 %v805_v42  ;;  %v3224_v38 = vshrl.u32 %v361_v37, 7  ;;  %v3229_v42 = vld [vmem:[#allocation5] sm:$0xff]  ;;  %v1026_v37 = vld [vmem:[#allocation7 + $0xa80] sm:$0xff] }
 0x100   :  { %1370 = vmatprep.subr.mxu0 %v871_v43  ;;  %1327 = vmatprep.subr.mxu1 %v801_v44 }
 0x101   :  { %1371 = vmatpush1.msra.mxu0 %v870_v45  ;;  %1328 = vmatpush2.msra.mxu1 %v800_v46  ;;  %v367_v39 = vsub.s32 1, %v3224_v38  ;;  %v363_v40 = vsub.s32 0, %v3224_v38  ;;  %v371_v41 = vsub.s32 2, %v3224_v38  ;;  %v375_v43 = vsub.s32 3, %v3224_v38 }
 0x102   :  { %1372 = vmatprep.subr.mxu0 %v866_v47  ;;  %1329 = vmatprep.subr.mxu1 %v796_v48 }
 0x103   :  { %1373 = vmatpush1.msra.mxu0 %v865_v49  ;;  %1330 = vmatpush2.msra.mxu1 %v795_v50  ;;  %v368_v44 = vrot.slane %v3229_v42, %v367_v39  ;;  %v364_v45 = vrot.slane %v3229_v42, %v363_v40  ;;  %v372_v47 = vrot.slane %v3229_v42, %v371_v41 }
 0x104   :  { %1374 = vmatprep.subr.mxu0 %v861_v51  ;;  %1331 = vmatprep.subr.mxu1 %v791_v52  ;;  %v376_v48 = vrot.slane %v3229_v42, %v375_v43 }
 0x105   :  { %1375 = vmatpush1.msra.mxu0 %v860_v53  ;;  %1332 = vmatpush2.msra.mxu1 %v790_v54 }
 0x106   :  { %1376 = vmatprep.subr.mxu0 %v856_v55  ;;  %1333 = vmatprep.subr.mxu1 %v786_v57  ;;  %v1085_v55 = vld [vmem:[#allocation7 + $0xc58] sm:$0xff] }
 0x107   :  { %1377 = vmatpush1.msra.mxu0 %v855_v58  ;;  %1334 = vmatpush2.msra.mxu1 %v785_v59  ;;  %v1081_v58 = vld [vmem:[#allocation7 + $0xc38] sm:$0xff] }
 0x108   :  { %1378 = vmatprep.subr.mxu0 %v851_v60  ;;  %1335 = vmatprep.subr.mxu1 %v781_v61  ;;  %v1245_v59 = vld [vmem:[#allocation7 + $0x1158] sm:$0xff]  ;;  %v1080_v60 = vld [vmem:[#allocation7 + $0xc30] sm:$0xff] }
 0x109   :  { %1379 = vmatpush1.msra.mxu0 %v850_v62  ;;  %1336 = vmatpush2.msra.mxu1 %v780_v0  ;;  %v1241_v61 = vld [vmem:[#allocation7 + $0x1138] sm:$0xff]  ;;  %v1076_v62 = vld [vmem:[#allocation7 + $0xc10] sm:$0xff] }
 0x10a   :  { %1380 = vmatprep.subr.mxu0 %v1006_v1  ;;  %1337 = vmatprep.subr.mxu1 %v776_v2  ;;  %v1240_v0 = vld [vmem:[#allocation7 + $0x1130] sm:$0xff]  ;;  %v1075_v1 = vld [vmem:[#allocation7 + $0xc08] sm:$0xff] }
 0x10b   :  { %1381 = vmatpush2.msra.mxu0 %v1005_v3  ;;  %1338 = vmatpush2.msra.mxu1 %v775_v4  ;;  %v1236_v2 = vld [vmem:[#allocation7 + $0x1110] sm:$0xff]  ;;  %v1071_v3 = vld [vmem:[#allocation7 + $0xbe8] sm:$0xff] }
 0x10c   :  { %1382 = vmatprep.subr.mxu0 %v1001_v5  ;;  %1339 = vmatprep.subr.mxu1 %v771_v6  ;;  %v1235_v4 = vld [vmem:[#allocation7 + $0x1108] sm:$0xff]  ;;  %v1070_v5 = vld [vmem:[#allocation7 + $0xbe0] sm:$0xff] }
 0x10d   :  { %1383 = vmatpush2.msra.mxu0 %v1000_v7  ;;  %1340 = vmatpush2.msra.mxu1 %v770_v8  ;;  %v1231_v6 = vld [vmem:[#allocation7 + $0x10e8] sm:$0xff]  ;;  %v1066_v7 = vld [vmem:[#allocation7 + $0xbc0] sm:$0xff] }
 0x10e   :  { %1384 = vmatprep.subr.mxu0 %v996_v9  ;;  %1419 = vmatprep.subr.mxu1 %v1086_v10  ;;  %v1230_v8 = vld [vmem:[#allocation7 + $0x10e0] sm:$0xff]  ;;  %v1065_v9 = vld [vmem:[#allocation7 + $0xbb8] sm:$0xff] }
 0x10f   :  { %1385 = vmatpush2.msra.mxu0 %v995_v11  ;;  %v1226_v10 = vld [vmem:[#allocation7 + $0x10c0] sm:$0xff]  ;;  %v1061_v11 = vld [vmem:[#allocation7 + $0xb98] sm:$0xff] }
 0x110   :  { %1386 = vmatprep.subr.mxu0 %v991_v12  ;;  %v1225_v12 = vld [vmem:[#allocation7 + $0x10b8] sm:$0xff] }
 0x111   :  { %1387 = vmatpush2.msra.mxu0 %v990_v13  ;;  %v1060_v13 = vld [vmem:[#allocation7 + $0xb90] sm:$0xff] }
 0x112   :  { %1388 = vmatprep.subr.mxu0 %v986_v14  ;;  %v1221_v14 = vld [vmem:[#allocation7 + $0x1098] sm:$0xff] }
 0x113   :  { %1389 = vmatpush2.msra.mxu0 %v985_v15  ;;  %v1056_v15 = vld [vmem:[#allocation7 + $0xb70] sm:$0xff] }
 0x114   :  { %1390 = vmatprep.subr.mxu0 %v981_v16  ;;  %v1220_v16 = vld [vmem:[#allocation7 + $0x1090] sm:$0xff] }
 0x115   :  { %1391 = vmatpush2.msra.mxu0 %v980_v56  ;;  %v1055_v56 = vld [vmem:[#allocation7 + $0xb68] sm:$0xff] }
 0x116   :  { %1392 = vmatprep.subr.mxu0 %v976_v17  ;;  %v1216_v17 = vld [vmem:[#allocation7 + $0x1070] sm:$0xff] }
 0x117   :  { %1393 = vmatpush2.msra.mxu0 %v975_v18  ;;  %v1051_v18 = vld [vmem:[#allocation7 + $0xb48] sm:$0xff] }
 0x118   :  { %1394 = vmatprep.subr.mxu0 %v971_v19  ;;  %v1215_v19 = vld [vmem:[#allocation7 + $0x1068] sm:$0xff] }
 0x119   :  { %1395 = vmatpush2.msra.mxu0 %v970_v20  ;;  %v1050_v20 = vld [vmem:[#allocation7 + $0xb40] sm:$0xff] }
 0x11a   :  { %1396 = vmatprep.subr.mxu0 %v966_v21  ;;  %v1211_v21 = vld [vmem:[#allocation7 + $0x1048] sm:$0xff] }
 0x11b   :  { %1397 = vmatpush2.msra.mxu0 %v965_v63  ;;  %v1046_v63 = vld [vmem:[#allocation7 + $0xb20] sm:$0xff] }
 0x11c   :  { %1398 = vmatprep.subr.mxu0 %v961_v22  ;;  %v1210_v22 = vld [vmem:[#allocation7 + $0x1040] sm:$0xff] }
 0x11d   :  { %1399 = vmatpush2.msra.mxu0 %v960_v23  ;;  %v1045_v23 = vld [vmem:[#allocation7 + $0xb18] sm:$0xff] }
 0x11e   :  { %1400 = vmatprep.subr.mxu0 %v956_v24  ;;  %v1206_v24 = vld [vmem:[#allocation7 + $0x1020] sm:$0xff] }
 0x11f   :  { %1401 = vmatpush2.msra.mxu0 %v955_v25  ;;  %v1041_v25 = vld [vmem:[#allocation7 + $0xaf8] sm:$0xff] }
 0x120   :  { %1402 = vmatprep.subr.mxu0 %v951_v26  ;;  %v1205_v26 = vld [vmem:[#allocation7 + $0x1018] sm:$0xff] }
 0x121   :  { %1403 = vmatpush2.msra.mxu0 %v950_v27  ;;  %v1040_v27 = vld [vmem:[#allocation7 + $0xaf0] sm:$0xff] }
 0x122   :  { %1404 = vmatprep.subr.mxu0 %v946_v28  ;;  %v1201_v28 = vld [vmem:[#allocation7 + $0xff8] sm:$0xff] }
 0x123   :  { %1405 = vmatpush2.msra.mxu0 %v945_v29  ;;  %v1036_v29 = vld [vmem:[#allocation7 + $0xad0] sm:$0xff] }
 0x124   :  { %1406 = vmatprep.subr.mxu0 %v941_v30  ;;  %v1200_v30 = vld [vmem:[#allocation7 + $0xff0] sm:$0xff] }
 0x125   :  { %1407 = vmatpush2.msra.mxu0 %v940_v31  ;;  %v1035_v31 = vld [vmem:[#allocation7 + $0xac8] sm:$0xff] }
 0x126   :  { %1408 = vmatprep.subr.mxu0 %v936_v32  ;;  %v1196_v32 = vld [vmem:[#allocation7 + $0xfd0] sm:$0xff] }
 0x127   :  { %1409 = vmatpush2.msra.mxu0 %v935_v33  ;;  %v1031_v33 = vld [vmem:[#allocation7 + $0xaa8] sm:$0xff] }
 0x128   :  { %1410 = vmatprep.subr.mxu0 %v931_v34  ;;  %v1195_v34 = vld [vmem:[#allocation7 + $0xfc8] sm:$0xff] }
 0x129   :  { %1411 = vmatpush2.msra.mxu0 %v930_v35  ;;  %v1030_v35 = vld [vmem:[#allocation7 + $0xaa0] sm:$0xff] }
 0x12a   :  { %1490 = vmatprep.subr.mxu0 %v1246_v36  ;;  %v1191_v36 = vld [vmem:[#allocation7 + $0xfa8] sm:$0xff] }
 0x168   :  { %v473_v46 = vpop.f32.mrf.mxu0 }
 0x169   :  { %v3246_v52 = vadd.f32 %v473_v46, %v364_v45  ;;  %v1025_v45 = vld [vmem:[#allocation7 + $0xa78] sm:$0xff]  ;;  %v1186_v46 = vld [vmem:[#allocation7 + $0xf80] sm:$0xff] }
 0x16a   :  { %v544_v49 = vpop.f32.mrf.mxu1  ;;  %v475_v50 = vpop.f32.mrf.mxu0 }
 0x16b   :  { %v3244_v51 = vadd.f32 %v475_v50, %v368_v44  ;;  %v3248_v53 = vadd.f32 %v544_v49, %v372_v47  ;;  %v1190_v44 = vld [vmem:[#allocation7 + $0xfa0] sm:$0xff]  ;;  %v1021_v47 = vld [vmem:[#allocation7 + $0xa58] sm:$0xff]  ;;  %v1020_v49 = vld [vmem:[#allocation7 + $0xa50] sm:$0xff] }
 0x16c   :  { %v546_v54 = vpop.f32.mrf.mxu1  ;;  %v1181_v50 = vld [vmem:[#allocation7 + $0xf58] sm:$0xff] }
 0x16d   :  { %v3250_v57 = vadd.f32 %v546_v54, %v376_v48  ;;  %1341 = vmatprep.mubr.f32.mxu1 %v3244_v51  ;;  %v1185_v48 = vld [vmem:[#allocation7 + $0xf78] sm:$0xff]  ;;  %v1016_v54 = vld [vmem:[#allocation7 + $0xa30] sm:$0xff] }
 0x16e   :  { %1342 = vmatmul.mubr.f32.vlgmr.msra.gmra.mxu1 %v3246_v52 }
 0x16f   :  { %1412 = vmatprep.mubr.f32.mxu0 %v3250_v57  ;;  %1420 = vmatpush1.msra.mxu1 %v1085_v55  ;;  %v1180_v55 = vld [vmem:[#allocation7 + $0xf50] sm:$0xff] }
 0x170   :  { %1413 = vmatmul.mubr.f32.vlgmr.msra.gmra.mxu0 %v3248_v53  ;;  %1421 = vmatprep.subr.mxu1 %v1081_v58  ;;  %v387_v58 = vsub.s32 6, %v3224_v38 }
 0x171   :  { %1491 = vmatpush1.msra.mxu0 %v1245_v59  ;;  %1422 = vmatpush1.msra.mxu1 %v1080_v60  ;;  %v1015_v59 = vld [vmem:[#allocation7 + $0xa28] sm:$0xff]  ;;  %v1176_v60 = vld [vmem:[#allocation7 + $0xf30] sm:$0xff] }
 0x172   :  { %1492 = vmatprep.subr.mxu0 %v1241_v61  ;;  %1423 = vmatprep.subr.mxu1 %v1076_v62  ;;  %v1011_v61 = vld [vmem:[#allocation7 + $0xa08] sm:$0xff] }
 0x173   :  { %1493 = vmatpush1.msra.mxu0 %v1240_v0  ;;  %1424 = vmatpush1.msra.mxu1 %v1075_v1  ;;  %v1175_v62 = vld [vmem:[#allocation7 + $0xf28] sm:$0xff]  ;;  %v1010_v0 = vld [vmem:[#allocation7 + $0xa00] sm:$0xff] }
 0x174   :  { %1494 = vmatprep.subr.mxu0 %v1236_v2  ;;  %1425 = vmatprep.subr.mxu1 %v1071_v3  ;;  %v1171_v2 = vld [vmem:[#allocation7 + $0xf08] sm:$0xff]  ;;  %v1166_v3 = vld [vmem:[#allocation7 + $0xee0] sm:$0xff] }
 0x175   :  { %1495 = vmatpush1.msra.mxu0 %v1235_v4  ;;  %1426 = vmatpush1.msra.mxu1 %v1070_v5  ;;  %v388_v4 = vrot.slane %v3229_v42, %v387_v58  ;;  %v1170_v5 = vld [vmem:[#allocation7 + $0xf00] sm:$0xff] }
 0x176   :  { %1496 = vmatprep.subr.mxu0 %v1231_v6  ;;  %1427 = vmatprep.subr.mxu1 %v1066_v7  ;;  %v1165_v6 = vld [vmem:[#allocation7 + $0xed8] sm:$0xff]  ;;  %v722_v58 = vld [vmem:[#allocation7 + $0x100] sm:$0xff] }
 0x177   :  { %1497 = vmatpush1.msra.mxu0 %v1230_v8  ;;  %1428 = vmatpush1.msra.mxu1 %v1065_v9  ;;  %v768_v8 = vld [vmem:[#allocation7 + $0x270] sm:$0xff] }
 0x178   :  { %1498 = vmatprep.subr.mxu0 %v1226_v10  ;;  %1429 = vmatprep.subr.mxu1 %v1061_v11  ;;  %v1161_v10 = vld [vmem:[#allocation7 + $0xeb8] sm:$0xff]  ;;  %v1160_v11 = vld [vmem:[#allocation7 + $0xeb0] sm:$0xff] }
 0x179   :  { %1499 = vmatpush1.msra.mxu0 %v1225_v12  ;;  %1430 = vmatpush1.msra.mxu1 %v1060_v13  ;;  %v3130_v13 = vmov 0.0  }
 0x17a   :  { %1500 = vmatprep.subr.mxu0 %v1221_v14  ;;  %1431 = vmatprep.subr.mxu1 %v1056_v15  ;;  %v767_v14 = vld [vmem:[#allocation7 + $0x268] sm:$0xff] }
 0x17b   :  { %1501 = vmatpush1.msra.mxu0 %v1220_v16  ;;  %1432 = vmatpush1.msra.mxu1 %v1055_v56  ;;  %v763_v15 = vld [vmem:[#allocation7 + $0x248] sm:$0xff]  ;;  %v1156_v16 = vld [vmem:[#allocation7 + $0xe90] sm:$0xff]  ;;  %v762_v56 = vld [vmem:[#allocation7 + $0x240] sm:$0xff] }
 0x17c   :  { %1502 = vmatprep.subr.mxu0 %v1216_v17  ;;  %1433 = vmatprep.subr.mxu1 %v1051_v18  ;;  %v1155_v17 = vld [vmem:[#allocation7 + $0xe88] sm:$0xff]  ;;  %v758_v18 = vld [vmem:[#allocation7 + $0x220] sm:$0xff] }
 0x17d   :  { %1503 = vmatpush1.msra.mxu0 %v1215_v19  ;;  %1434 = vmatpush1.msra.mxu1 %v1050_v20  ;;  %v1151_v19 = vld [vmem:[#allocation7 + $0xe68] sm:$0xff]  ;;  %v757_v20 = vld [vmem:[#allocation7 + $0x218] sm:$0xff] }
 0x17e   :  { %1504 = vmatprep.subr.mxu0 %v1211_v21  ;;  %1435 = vmatprep.subr.mxu1 %v1046_v63  ;;  %v1150_v21 = vld [vmem:[#allocation7 + $0xe60] sm:$0xff]  ;;  %v753_v63 = vld [vmem:[#allocation7 + $0x1f8] sm:$0xff] }
 0x17f   :  { %1505 = vmatpush1.msra.mxu0 %v1210_v22  ;;  %1436 = vmatpush1.msra.mxu1 %v1045_v23  ;;  %v1146_v22 = vld [vmem:[#allocation7 + $0xe40] sm:$0xff]  ;;  %v752_v23 = vld [vmem:[#allocation7 + $0x1f0] sm:$0xff] }
 0x180   :  { %1506 = vmatprep.subr.mxu0 %v1206_v24  ;;  %1437 = vmatprep.subr.mxu1 %v1041_v25  ;;  %v1145_v24 = vld [vmem:[#allocation7 + $0xe38] sm:$0xff]  ;;  %v748_v25 = vld [vmem:[#allocation7 + $0x1d0] sm:$0xff] }
 0x181   :  { %1507 = vmatpush1.msra.mxu0 %v1205_v26  ;;  %1438 = vmatpush1.msra.mxu1 %v1040_v27  ;;  %v1141_v26 = vld [vmem:[#allocation7 + $0xe18] sm:$0xff]  ;;  %v747_v27 = vld [vmem:[#allocation7 + $0x1c8] sm:$0xff] }
 0x182   :  { %1508 = vmatprep.subr.mxu0 %v1201_v28  ;;  %1439 = vmatprep.subr.mxu1 %v1036_v29  ;;  %v1140_v28 = vld [vmem:[#allocation7 + $0xe10] sm:$0xff]  ;;  %v743_v29 = vld [vmem:[#allocation7 + $0x1a8] sm:$0xff] }
 0x183   :  { %1509 = vmatpush1.msra.mxu0 %v1200_v30  ;;  %1440 = vmatpush1.msra.mxu1 %v1035_v31  ;;  %v1136_v30 = vld [vmem:[#allocation7 + $0xdf0] sm:$0xff]  ;;  %v742_v31 = vld [vmem:[#allocation7 + $0x1a0] sm:$0xff] }
 0x184   :  { %1510 = vmatprep.subr.mxu0 %v1196_v32  ;;  %1441 = vmatprep.subr.mxu1 %v1031_v33  ;;  %v1135_v32 = vld [vmem:[#allocation7 + $0xde8] sm:$0xff]  ;;  %v738_v33 = vld [vmem:[#allocation7 + $0x180] sm:$0xff] }
 0x185   :  { %1511 = vmatpush1.msra.mxu0 %v1195_v34  ;;  %1442 = vmatpush1.msra.mxu1 %v1030_v35  ;;  %v1131_v34 = vld [vmem:[#allocation7 + $0xdc8] sm:$0xff]  ;;  %v737_v35 = vld [vmem:[#allocation7 + $0x178] sm:$0xff] }
 0x186   :  { %1512 = vmatprep.subr.mxu0 %v1191_v36  ;;  %1443 = vmatprep.subr.mxu1 %v1026_v37  ;;  %v1130_v36 = vld [vmem:[#allocation7 + $0xdc0] sm:$0xff]  ;;  %v733_v37 = vld [vmem:[#allocation7 + $0x158] sm:$0xff] }
 0x187   :  { %1513 = vmatpush1.msra.mxu0 %v1190_v44  ;;  %1444 = vmatpush1.msra.mxu1 %v1025_v45  ;;  %v1126_v44 = vld [vmem:[#allocation7 + $0xda0] sm:$0xff]  ;;  %v732_v45 = vld [vmem:[#allocation7 + $0x150] sm:$0xff] }
 0x188   :  { %1514 = vmatprep.subr.mxu0 %v1186_v46  ;;  %1445 = vmatprep.subr.mxu1 %v1021_v47  ;;  %v1125_v46 = vld [vmem:[#allocation7 + $0xd98] sm:$0xff]  ;;  %v728_v47 = vld [vmem:[#allocation7 + $0x130] sm:$0xff] }
 0x189   :  { %1515 = vmatpush1.msra.mxu0 %v1185_v48  ;;  %1446 = vmatpush1.msra.mxu1 %v1020_v49  ;;  %v1121_v48 = vld [vmem:[#allocation7 + $0xd78] sm:$0xff]  ;;  %v727_v49 = vld [vmem:[#allocation7 + $0x128] sm:$0xff] }
 0x18a   :  { %1516 = vmatprep.subr.mxu0 %v1181_v50  ;;  %1447 = vmatprep.subr.mxu1 %v1016_v54  ;;  %v1120_v50 = vld [vmem:[#allocation7 + $0xd70] sm:$0xff]  ;;  %v723_v54 = vld [vmem:[#allocation7 + $0x108] sm:$0xff] }
 0x18b   :  { %v2573_v1 = vpop.f32.mrf.mxu1  ;;  %1517 = vmatpush1.msra.mxu0 %v1180_v55  ;;  %1448 = vmatpush1.msra.mxu1 %v1015_v59  ;;  %v1116_v55 = vld [vmem:[#allocation7 + $0xd50] sm:$0xff]  ;;  %v1115_v59 = vld [vmem:[#allocation7 + $0xd48] sm:$0xff] }
 0x18c   :  { %1518 = vmatprep.subr.mxu0 %v1176_v60  ;;  %1449 = vmatprep.subr.mxu1 %v1011_v61  ;;  %v718_v60 = vld [vmem:[#allocation7 + $0xe0] sm:$0xff]  ;;  %v1111_v61 = vld [vmem:[#allocation7 + $0xd28] sm:$0xff] }
 0x18d   :  { %v2574_v7 = vpop.f32.mrf.mxu1  ;;  %1519 = vmatpush1.msra.mxu0 %v1175_v62  ;;  %1450 = vmatpush1.msra.mxu1 %v1010_v0  ;;  %v717_v62 = vld [vmem:[#allocation7 + $0xd8] sm:$0xff]  ;;  %v1110_v0 = vld [vmem:[#allocation7 + $0xd20] sm:$0xff] }
 0x18e   :  { %v2575_v9 = vadd.f32 %v2574_v7, %v2573_v1  ;;  %1520 = vmatprep.subr.mxu0 %v1171_v2  ;;  %1451 = vmatprep.subr.mxu1 %v1166_v3  ;;  %v713_v1 = vld [vmem:[#allocation7 + $0xb8] sm:$0xff]  ;;  %v1106_v2 = vld [vmem:[#allocation7 + $0xd00] sm:$0xff]  ;;  %v383_v3 = vsub.s32 5, %v3224_v38 }
 0x18f   :  { %1521 = vmatpush1.msra.mxu0 %v1170_v5  ;;  %1452 = vmatpush2.msra.mxu1 %v1165_v6  ;;  %v1105_v5 = vld [vmem:[#allocation7 + $0xcf8] sm:$0xff]  ;;  %v708_v6 = vld [vmem:[#allocation7 + $0x90] sm:$0xff] }
 0x190   :  { %v3258_v12 = vadd.f32 %v2575_v9, %v388_v4  ;;  %1554 = vmatprep.mubr.f32.mxu0 %v3130_v13  ;;  %1561 = vmatprep.subr.mxu0 %v768_v8  ;;  %v712_v4 = vld [vmem:[#allocation7 + $0xb0] sm:$0xff]  ;;  %v1101_v7 = vld [vmem:[#allocation7 + $0xcd8] sm:$0xff]  ;;  %v707_v8 = vld [vmem:[#allocation7 + $0x88] sm:$0xff]  ;;  %v379_v9 = vsub.s32 4, %v3224_v38 }
 0x191   :  { %1453 = vmatprep.subr.mxu1 %v1161_v10  ;;  %v1100_v10 = vld [vmem:[#allocation7 + $0xcd0] sm:$0xff] }
 0x192   :  { %1555 = vmatmul.mubr.f32.vlgmr.msra.gmra.mxu0 %v3258_v12  ;;  %1454 = vmatpush2.msra.mxu1 %v1160_v11  ;;  %v703_v11 = vld [vmem:[#allocation7 + $0x68] sm:$0xff]  ;;  %v2436_v38 = vld [vmem:[#allocation13 + $0x68] sm:$0xff] }
 0x193   :  { %1562 = vmatpush1.msra.mxu0 %v767_v14  ;;  %1625 = vmatprep.mubr.f32.mxu0 %v3244_v51  ;;  %v1096_v14 = vld [vmem:[#allocation7 + $0xcb0] sm:$0xff] }
 0x194   :  { %1563 = vmatprep.subr.mxu0 %v763_v15  ;;  %1455 = vmatprep.subr.mxu1 %v1156_v16  ;;  %v384_v15 = vrot.slane %v3229_v42, %v383_v3  ;;  %v813_v3 = vld [vmem:[#allocation7 + $0x3d8] sm:$0xff] }
 0x195   :  { %1564 = vmatpush1.msra.mxu0 %v762_v56  ;;  %1456 = vmatpush2.msra.mxu1 %v1155_v17  ;;  %v702_v56 = vld [vmem:[#allocation7 + $0x60] sm:$0xff]  ;;  %v1095_v17 = vld [vmem:[#allocation7 + $0xca8] sm:$0xff] }
 0x196   :  { %1565 = vmatprep.subr.mxu0 %v758_v18  ;;  %1457 = vmatprep.subr.mxu1 %v1151_v19  ;;  %v698_v18 = vld [vmem:[#allocation7 + $0x40] sm:$0xff]  ;;  %v1091_v19 = vld [vmem:[#allocation7 + $0xc88] sm:$0xff] }
 0x197   :  { %1566 = vmatpush1.msra.mxu0 %v757_v20  ;;  %1458 = vmatpush2.msra.mxu1 %v1150_v21  ;;  %v380_v20 = vrot.slane %v3229_v42, %v379_v9  ;;  %v927_v42 = vld [vmem:[#allocation7 + $0x768] sm:$0xff] }
 0x198   :  { %1567 = vmatprep.subr.mxu0 %v753_v63  ;;  %1459 = vmatprep.subr.mxu1 %v1146_v22  ;;  %v697_v63 = vld [vmem:[#allocation7 + $0x38] sm:$0xff]  ;;  %v1090_v22 = vld [vmem:[#allocation7 + $0xc80] sm:$0xff] }
 0x199   :  { %1568 = vmatpush1.msra.mxu0 %v752_v23  ;;  %1460 = vmatpush2.msra.mxu1 %v1145_v24  ;;  %v693_v24 = vld [vmem:[#allocation7 + $0x18] sm:$0xff] }
 0x19a   :  { %1569 = vmatprep.subr.mxu0 %v748_v25  ;;  %1461 = vmatprep.subr.mxu1 %v1141_v26  ;;  %v692_v25 = vld [vmem:[#allocation7 + $0x10] sm:$0xff] }
 0x19b   :  { %1570 = vmatpush1.msra.mxu0 %v747_v27  ;;  %1462 = vmatpush2.msra.mxu1 %v1140_v28  ;;  %v928_v26 = vld [vmem:[#allocation7 + $0x770] sm:$0xff] }
 0x19c   :  { %1571 = vmatprep.subr.mxu0 %v743_v29  ;;  %1463 = vmatprep.subr.mxu1 %v1136_v30  ;;  %v848_v27 = vld [vmem:[#allocation7 + $0x4f0] sm:$0xff]  ;;  %v847_v29 = vld [vmem:[#allocation7 + $0x4e8] sm:$0xff] }
 0x19d   :  { %1572 = vmatpush1.msra.mxu0 %v742_v31  ;;  %1464 = vmatpush2.msra.mxu1 %v1135_v32  ;;  %v923_v30 = vld [vmem:[#allocation7 + $0x748] sm:$0xff]  ;;  %v922_v32 = vld [vmem:[#allocation7 + $0x740] sm:$0xff] }
 0x19e   :  { %1573 = vmatprep.subr.mxu0 %v738_v33  ;;  %1465 = vmatprep.subr.mxu1 %v1131_v34  ;;  %v843_v31 = vld [vmem:[#allocation7 + $0x4c8] sm:$0xff]  ;;  %v842_v33 = vld [vmem:[#allocation7 + $0x4c0] sm:$0xff] }
 0x19f   :  { %1574 = vmatpush1.msra.mxu0 %v737_v35  ;;  %1466 = vmatpush2.msra.mxu1 %v1130_v36  ;;  %v918_v34 = vld [vmem:[#allocation7 + $0x720] sm:$0xff]  ;;  %v917_v36 = vld [vmem:[#allocation7 + $0x718] sm:$0xff] }
 0x1a0   :  { %1575 = vmatprep.subr.mxu0 %v733_v37  ;;  %1467 = vmatprep.subr.mxu1 %v1126_v44  ;;  %v838_v35 = vld [vmem:[#allocation7 + $0x4a0] sm:$0xff]  ;;  %v837_v37 = vld [vmem:[#allocation7 + $0x498] sm:$0xff] }
 0x1a1   :  { %1576 = vmatpush1.msra.mxu0 %v732_v45  ;;  %1468 = vmatpush2.msra.mxu1 %v1125_v46  ;;  %v913_v44 = vld [vmem:[#allocation7 + $0x6f8] sm:$0xff]  ;;  %v912_v46 = vld [vmem:[#allocation7 + $0x6f0] sm:$0xff] }
 0x1a2   :  { %1577 = vmatprep.subr.mxu0 %v728_v47  ;;  %1469 = vmatprep.subr.mxu1 %v1121_v48  ;;  %v833_v45 = vld [vmem:[#allocation7 + $0x478] sm:$0xff]  ;;  %v832_v47 = vld [vmem:[#allocation7 + $0x470] sm:$0xff] }
 0x1a3   :  { %1578 = vmatpush1.msra.mxu0 %v727_v49  ;;  %1470 = vmatpush2.msra.mxu1 %v1120_v50  ;;  %v908_v48 = vld [vmem:[#allocation7 + $0x6d0] sm:$0xff]  ;;  %v907_v50 = vld [vmem:[#allocation7 + $0x6c8] sm:$0xff] }
 0x1a4   :  { %1579 = vmatprep.subr.mxu0 %v723_v54  ;;  %1471 = vmatprep.subr.mxu1 %v1116_v55  ;;  %v828_v49 = vld [vmem:[#allocation7 + $0x450] sm:$0xff]  ;;  %v827_v54 = vld [vmem:[#allocation7 + $0x448] sm:$0xff] }
 0x1a5   :  { %1580 = vmatpush1.msra.mxu0 %v722_v58  ;;  %1472 = vmatpush2.msra.mxu1 %v1115_v59  ;;  %v903_v55 = vld [vmem:[#allocation7 + $0x6a8] sm:$0xff]  ;;  %v902_v59 = vld [vmem:[#allocation7 + $0x6a0] sm:$0xff] }
 0x1a6   :  { %1581 = vmatprep.subr.mxu0 %v718_v60  ;;  %1473 = vmatprep.subr.mxu1 %v1111_v61  ;;  %v823_v58 = vld [vmem:[#allocation7 + $0x428] sm:$0xff]  ;;  %v822_v60 = vld [vmem:[#allocation7 + $0x420] sm:$0xff] }
 0x1a7   :  { %1582 = vmatpush1.msra.mxu0 %v717_v62  ;;  %1474 = vmatpush2.msra.mxu1 %v1110_v0  ;;  %v898_v61 = vld [vmem:[#allocation7 + $0x680] sm:$0xff]  ;;  %v897_v0 = vld [vmem:[#allocation7 + $0x678] sm:$0xff] }
 0x1a8   :  { %1583 = vmatprep.subr.mxu0 %v713_v1  ;;  %1475 = vmatprep.subr.mxu1 %v1106_v2  ;;  %v818_v62 = vld [vmem:[#allocation7 + $0x400] sm:$0xff]  ;;  %v817_v1 = vld [vmem:[#allocation7 + $0x3f8] sm:$0xff] }
 0x1a9   :  { %1584 = vmatpush1.msra.mxu0 %v712_v4  ;;  %1476 = vmatpush2.msra.mxu1 %v1105_v5  ;;  %v893_v2 = vld [vmem:[#allocation7 + $0x658] sm:$0xff]  ;;  %v892_v4 = vld [vmem:[#allocation7 + $0x650] sm:$0xff] }
 0x1aa   :  { %1585 = vmatprep.subr.mxu0 %v708_v6  ;;  %1477 = vmatprep.subr.mxu1 %v1101_v7  ;;  %v615_v16 = vpop.f32.mrf.mxu0  ;;  %v812_v5 = vld [vmem:[#allocation7 + $0x3d0] sm:$0xff] }
 0x1ab   :  { %1586 = vmatpush1.msra.mxu0 %v707_v8  ;;  %1478 = vmatpush2.msra.mxu1 %v1100_v10  ;;  %v3271_v28 = vadd.f32 %v615_v16, %v380_v20  ;;  %v888_v6 = vld [vmem:[#allocation7 + $0x630] sm:$0xff]  ;;  %v887_v8 = vld [vmem:[#allocation7 + $0x628] sm:$0xff]  ;;  %v802_v16 = vld [vmem:[#allocation7 + $0x380] sm:$0xff] }
 0x1ac   :  { %1587 = vmatprep.subr.mxu0 %v703_v11  ;;  %1479 = vmatprep.subr.mxu1 %v1096_v14  ;;  %v617_v21 = vpop.f32.mrf.mxu0  ;;  %v808_v7 = vld [vmem:[#allocation7 + $0x3b0] sm:$0xff]  ;;  %v807_v10 = vld [vmem:[#allocation7 + $0x3a8] sm:$0xff]  ;;  %v873_v20 = vld [vmem:[#allocation7 + $0x5b8] sm:$0xff] }
 0x1ad   :  { %1588 = vmatpush1.msra.mxu0 %v702_v56  ;;  %v3269_v23 = vadd.f32 %v617_v21, %v384_v15  ;;  %1480 = vmatpush2.msra.mxu1 %v1095_v17  ;;  %v883_v11 = vld [vmem:[#allocation7 + $0x608] sm:$0xff]  ;;  %v882_v15 = vld [vmem:[#allocation7 + $0x600] sm:$0xff]  ;;  %v793_v21 = vld [vmem:[#allocation7 + $0x338] sm:$0xff] }
 0x1ae   :  { %1589 = vmatprep.subr.mxu0 %v698_v18  ;;  %1481 = vmatprep.subr.mxu1 %v1091_v19  ;;  %v803_v14 = vld [vmem:[#allocation7 + $0x388] sm:$0xff]  ;;  %v878_v56 = vld [vmem:[#allocation7 + $0x5e0] sm:$0xff]  ;;  %v877_v18 = vld [vmem:[#allocation7 + $0x5d8] sm:$0xff] }
 0x1af   :  { %1590 = vmatpush1.msra.mxu0 %v697_v63  ;;  %1482 = vmatpush2.msra.mxu1 %v1090_v22  ;;  %v798_v17 = vld [vmem:[#allocation7 + $0x360] sm:$0xff]  ;;  %v797_v19 = vld [vmem:[#allocation7 + $0x358] sm:$0xff]  ;;  %v872_v63 = vld [vmem:[#allocation7 + $0x5b0] sm:$0xff] }
 0x1b0   :  { %1591 = vmatprep.subr.mxu0 %v693_v24  ;;  %1483 = vmatprep.mubr.f32.mxu1 %v3269_v23  ;;  %v792_v22 = vld [vmem:[#allocation7 + $0x330] sm:$0xff] }
 0x1b1   :  { %1592 = vmatpush1.msra.mxu0 %v692_v25  ;;  %1632 = vmatprep.subr.mxu1 %v928_v26  ;;  %v868_v24 = vld [vmem:[#allocation7 + $0x590] sm:$0xff]  ;;  %v867_v26 = vld [vmem:[#allocation7 + $0x588] sm:$0xff] }
 0x1b2   :  { %1484 = vmatmul.mubr.f32.vlgmr.msra.gmra.mxu1 %v3271_v28  ;;  %1593 = vmatprep.subr.mxu0 %v848_v27  ;;  %v788_v25 = vld [vmem:[#allocation7 + $0x310] sm:$0xff]  ;;  %v787_v27 = vld [vmem:[#allocation7 + $0x308] sm:$0xff] }
 0x1b3   :  { %1633 = vmatpush1.msra.mxu1 %v927_v42  ;;  %1594 = vmatpush2.msra.mxu0 %v847_v29  ;;  %v863_v42 = vld [vmem:[#allocation7 + $0x568] sm:$0xff] }
 0x1b4   :  { %1634 = vmatprep.subr.mxu1 %v923_v30  ;;  %1696 = vmatprep.mubr.f32.mxu1 %v3250_v57  ;;  %v783_v29 = vld [vmem:[#allocation7 + $0x2e8] sm:$0xff]  ;;  %v862_v30 = vld [vmem:[#allocation7 + $0x560] sm:$0xff] }
 0x1b5   :  { %1595 = vmatprep.subr.mxu0 %v843_v31  ;;  %1635 = vmatpush1.msra.mxu1 %v922_v32  ;;  %v782_v31 = vld [vmem:[#allocation7 + $0x2e0] sm:$0xff] }
 0x1b6   :  { %1596 = vmatpush2.msra.mxu0 %v842_v33  ;;  %1636 = vmatprep.subr.mxu1 %v918_v34  ;;  %v858_v32 = vld [vmem:[#allocation7 + $0x540] sm:$0xff]  ;;  %v857_v34 = vld [vmem:[#allocation7 + $0x538] sm:$0xff] }
 0x1b7   :  { %1597 = vmatprep.subr.mxu0 %v838_v35  ;;  %1637 = vmatpush1.msra.mxu1 %v917_v36  ;;  %v778_v33 = vld [vmem:[#allocation7 + $0x2c0] sm:$0xff]  ;;  %v777_v35 = vld [vmem:[#allocation7 + $0x2b8] sm:$0xff] }
 0x1b8   :  { %1598 = vmatpush2.msra.mxu0 %v837_v37  ;;  %1638 = vmatprep.subr.mxu1 %v913_v44  ;;  %v853_v36 = vld [vmem:[#allocation7 + $0x518] sm:$0xff]  ;;  %v852_v44 = vld [vmem:[#allocation7 + $0x510] sm:$0xff] }
 0x1b9   :  { %1599 = vmatprep.subr.mxu0 %v833_v45  ;;  %1639 = vmatpush1.msra.mxu1 %v912_v46  ;;  %v773_v37 = vld [vmem:[#allocation7 + $0x298] sm:$0xff]  ;;  %v772_v45 = vld [vmem:[#allocation7 + $0x290] sm:$0xff] }
 0x1ba   :  { %1600 = vmatpush2.msra.mxu0 %v832_v47  ;;  %1640 = vmatprep.subr.mxu1 %v908_v48  ;;  %v1008_v46 = vld [vmem:[#allocation7 + $0x9f0] sm:$0xff]  ;;  %v1007_v47 = vld [vmem:[#allocation7 + $0x9e8] sm:$0xff] }
 0x1bb   :  { %1601 = vmatprep.subr.mxu0 %v828_v49  ;;  %1641 = vmatpush1.msra.mxu1 %v907_v50  ;;  %v1088_v48 = vld [vmem:[#allocation7 + $0xc70] sm:$0xff]  ;;  %v1003_v49 = vld [vmem:[#allocation7 + $0x9c8] sm:$0xff] }
 0x1bc   :  { %1602 = vmatpush2.msra.mxu0 %v827_v54  ;;  %1642 = vmatprep.subr.mxu1 %v903_v55  ;;  %v1087_v50 = vld [vmem:[#allocation7 + $0xc68] sm:$0xff]  ;;  %v1002_v54 = vld [vmem:[#allocation7 + $0x9c0] sm:$0xff] }
 0x1bd   :  { %1603 = vmatprep.subr.mxu0 %v823_v58  ;;  %1643 = vmatpush1.msra.mxu1 %v902_v59  ;;  %v1083_v55 = vld [vmem:[#allocation7 + $0xc48] sm:$0xff]  ;;  %v998_v58 = vld [vmem:[#allocation7 + $0x9a0] sm:$0xff] }
 0x1be   :  { %1604 = vmatpush2.msra.mxu0 %v822_v60  ;;  %1644 = vmatprep.subr.mxu1 %v898_v61  ;;  %v1082_v59 = vld [vmem:[#allocation7 + $0xc40] sm:$0xff]  ;;  %v997_v60 = vld [vmem:[#allocation7 + $0x998] sm:$0xff] }
 0x1bf   :  { %1605 = vmatprep.subr.mxu0 %v818_v62  ;;  %1645 = vmatpush1.msra.mxu1 %v897_v0  ;;  %v1078_v61 = vld [vmem:[#allocation7 + $0xc20] sm:$0xff]  ;;  %v993_v62 = vld [vmem:[#allocation7 + $0x978] sm:$0xff] }
 0x1c0   :  { %1606 = vmatpush2.msra.mxu0 %v817_v1  ;;  %1646 = vmatprep.subr.mxu1 %v893_v2  ;;  %v1077_v0 = vld [vmem:[#allocation7 + $0xc18] sm:$0xff]  ;;  %v992_v1 = vld [vmem:[#allocation7 + $0x970] sm:$0xff] }
 0x1c1   :  { %1607 = vmatprep.subr.mxu0 %v813_v3  ;;  %1647 = vmatpush1.msra.mxu1 %v892_v4  ;;  %v1073_v2 = vld [vmem:[#allocation7 + $0xbf8] sm:$0xff]  ;;  %v988_v3 = vld [vmem:[#allocation7 + $0x950] sm:$0xff] }
 0x1c2   :  { %1608 = vmatpush2.msra.mxu0 %v812_v5  ;;  %1648 = vmatprep.subr.mxu1 %v888_v6  ;;  %v1072_v4 = vld [vmem:[#allocation7 + $0xbf0] sm:$0xff]  ;;  %v987_v5 = vld [vmem:[#allocation7 + $0x948] sm:$0xff] }
 0x1c3   :  { %1609 = vmatprep.subr.mxu0 %v808_v7  ;;  %1649 = vmatpush1.msra.mxu1 %v887_v8  ;;  %v1068_v6 = vld [vmem:[#allocation7 + $0xbd0] sm:$0xff]  ;;  %v983_v7 = vld [vmem:[#allocation7 + $0x928] sm:$0xff] }
 0x1c4   :  { %1610 = vmatpush2.msra.mxu0 %v807_v10  ;;  %1650 = vmatprep.subr.mxu1 %v883_v11  ;;  %v1067_v8 = vld [vmem:[#allocation7 + $0xbc8] sm:$0xff]  ;;  %v982_v10 = vld [vmem:[#allocation7 + $0x920] sm:$0xff] }
 0x1c5   :  { %1611 = vmatprep.subr.mxu0 %v803_v14  ;;  %1651 = vmatpush1.msra.mxu1 %v882_v15  ;;  %v1063_v11 = vld [vmem:[#allocation7 + $0xba8] sm:$0xff]  ;;  %v978_v14 = vld [vmem:[#allocation7 + $0x900] sm:$0xff] }
 0x1c6   :  { %1612 = vmatpush2.msra.mxu0 %v802_v16  ;;  %1652 = vmatprep.subr.mxu1 %v878_v56  ;;  %v1062_v15 = vld [vmem:[#allocation7 + $0xba0] sm:$0xff]  ;;  %v977_v16 = vld [vmem:[#allocation7 + $0x8f8] sm:$0xff] }
 0x1c7   :  { %1613 = vmatprep.subr.mxu0 %v798_v17  ;;  %1653 = vmatpush1.msra.mxu1 %v877_v18  ;;  %v1058_v56 = vld [vmem:[#allocation7 + $0xb80] sm:$0xff]  ;;  %v973_v17 = vld [vmem:[#allocation7 + $0x8d8] sm:$0xff] }
 0x1c8   :  { %1614 = vmatpush2.msra.mxu0 %v797_v19  ;;  %1654 = vmatprep.subr.mxu1 %v873_v20  ;;  %v1057_v18 = vld [vmem:[#allocation7 + $0xb78] sm:$0xff]  ;;  %v972_v19 = vld [vmem:[#allocation7 + $0x8d0] sm:$0xff] }
 0x1c9   :  { %1615 = vmatprep.subr.mxu0 %v793_v21  ;;  %1655 = vmatpush1.msra.mxu1 %v872_v63  ;;  %v1053_v20 = vld [vmem:[#allocation7 + $0xb58] sm:$0xff]  ;;  %v968_v21 = vld [vmem:[#allocation7 + $0x8b0] sm:$0xff] }
 0x1ca   :  { %1616 = vmatpush2.msra.mxu0 %v792_v22  ;;  %1656 = vmatprep.subr.mxu1 %v868_v24  ;;  %v1052_v63 = vld [vmem:[#allocation7 + $0xb50] sm:$0xff]  ;;  %v967_v22 = vld [vmem:[#allocation7 + $0x8a8] sm:$0xff] }
 0x1cb   :  { %1617 = vmatprep.subr.mxu0 %v788_v25  ;;  %1657 = vmatpush1.msra.mxu1 %v867_v26  ;;  %v1048_v24 = vld [vmem:[#allocation7 + $0xb30] sm:$0xff]  ;;  %v963_v25 = vld [vmem:[#allocation7 + $0x888] sm:$0xff] }
 0x1cc   :  { %1618 = vmatpush2.msra.mxu0 %v787_v27  ;;  %1658 = vmatprep.subr.mxu1 %v863_v42  ;;  %v1047_v26 = vld [vmem:[#allocation7 + $0xb28] sm:$0xff]  ;;  %v962_v27 = vld [vmem:[#allocation7 + $0x880] sm:$0xff] }
 0x1cd   :  { %1619 = vmatprep.subr.mxu0 %v783_v29  ;;  %1659 = vmatpush1.msra.mxu1 %v862_v30  ;;  %v1043_v42 = vld [vmem:[#allocation7 + $0xb08] sm:$0xff]  ;;  %v958_v29 = vld [vmem:[#allocation7 + $0x860] sm:$0xff] }
 0x1ce   :  { %1620 = vmatpush2.msra.mxu0 %v782_v31  ;;  %1660 = vmatprep.subr.mxu1 %v858_v32  ;;  %v1042_v30 = vld [vmem:[#allocation7 + $0xb00] sm:$0xff]  ;;  %v957_v31 = vld [vmem:[#allocation7 + $0x858] sm:$0xff] }
 0x1cf   :  { %1621 = vmatprep.subr.mxu0 %v778_v33  ;;  %1661 = vmatpush1.msra.mxu1 %v857_v34  ;;  %v1038_v32 = vld [vmem:[#allocation7 + $0xae0] sm:$0xff]  ;;  %v953_v33 = vld [vmem:[#allocation7 + $0x838] sm:$0xff] }
 0x1d0   :  { %1622 = vmatpush2.msra.mxu0 %v777_v35  ;;  %1662 = vmatprep.subr.mxu1 %v853_v36  ;;  %v1037_v34 = vld [vmem:[#allocation7 + $0xad8] sm:$0xff]  ;;  %v952_v35 = vld [vmem:[#allocation7 + $0x830] sm:$0xff] }
 0x1d1   :  { %1623 = vmatprep.subr.mxu0 %v773_v37  ;;  %1663 = vmatpush1.msra.mxu1 %v852_v44  ;;  %v1033_v36 = vld [vmem:[#allocation7 + $0xab8] sm:$0xff]  ;;  %v948_v37 = vld [vmem:[#allocation7 + $0x810] sm:$0xff] }
 0x1d2   :  { %1624 = vmatpush2.msra.mxu0 %v772_v45  ;;  %1664 = vmatprep.subr.mxu1 %v1008_v46  ;;  %v1032_v44 = vld [vmem:[#allocation7 + $0xab0] sm:$0xff]  ;;  %v947_v45 = vld [vmem:[#allocation7 + $0x808] sm:$0xff] }
 0x1d3   :  { %1626 = vmatmul.mubr.f32.vlgmr.msra.gmra.mxu0 %v3246_v52  ;;  %1665 = vmatpush2.msra.mxu1 %v1007_v47  ;;  %v1028_v46 = vld [vmem:[#allocation7 + $0xa90] sm:$0xff]  ;;  %v943_v47 = vld [vmem:[#allocation7 + $0x7e8] sm:$0xff] }
 0x1d4   :  { %1703 = vmatprep.subr.mxu0 %v1088_v48  ;;  %1666 = vmatprep.subr.mxu1 %v1003_v49  ;;  %v1027_v48 = vld [vmem:[#allocation7 + $0xa88] sm:$0xff]  ;;  %v942_v49 = vld [vmem:[#allocation7 + $0x7e0] sm:$0xff] }
 0x1d5   :  { %1704 = vmatpush1.msra.mxu0 %v1087_v50  ;;  %1767 = vmatprep.mubr.f32.mxu0 %v3269_v23  ;;  %v1023_v50 = vld [vmem:[#allocation7 + $0xa68] sm:$0xff] }
 0x1d6   :  { %1667 = vmatpush2.msra.mxu1 %v1002_v54  ;;  %1705 = vmatprep.subr.mxu0 %v1083_v55  ;;  %v938_v54 = vld [vmem:[#allocation7 + $0x7c0] sm:$0xff] }
 0x1d7   :  { %1668 = vmatprep.subr.mxu1 %v998_v58  ;;  %1706 = vmatpush1.msra.mxu0 %v1082_v59  ;;  %v1022_v55 = vld [vmem:[#allocation7 + $0xa60] sm:$0xff]  ;;  %v937_v58 = vld [vmem:[#allocation7 + $0x7b8] sm:$0xff] }
 0x1d8   :  { %1669 = vmatpush2.msra.mxu1 %v997_v60  ;;  %1707 = vmatprep.subr.mxu0 %v1078_v61  ;;  %v1018_v59 = vld [vmem:[#allocation7 + $0xa40] sm:$0xff]  ;;  %v933_v60 = vld [vmem:[#allocation7 + $0x798] sm:$0xff] }
 0x1d9   :  { %1670 = vmatprep.subr.mxu1 %v993_v62  ;;  %1708 = vmatpush1.msra.mxu0 %v1077_v0  ;;  %v1017_v61 = vld [vmem:[#allocation7 + $0xa38] sm:$0xff]  ;;  %v932_v62 = vld [vmem:[#allocation7 + $0x790] sm:$0xff] }
 0x1da   :  { %1671 = vmatpush2.msra.mxu1 %v992_v1  ;;  %1709 = vmatprep.subr.mxu0 %v1073_v2  ;;  %v1013_v0 = vld [vmem:[#allocation7 + $0xa18] sm:$0xff]  ;;  %v1012_v1 = vld [vmem:[#allocation7 + $0xa10] sm:$0xff] }
 0x1db   :  { %1672 = vmatprep.subr.mxu1 %v988_v3  ;;  %1710 = vmatpush1.msra.mxu0 %v1072_v4  ;;  %v1248_v2 = vld [vmem:[#allocation7 + $0x1170] sm:$0xff]  ;;  %v1247_v4 = vld [vmem:[#allocation7 + $0x1168] sm:$0xff] }
 0x1dc   :  { %1673 = vmatpush2.msra.mxu1 %v987_v5  ;;  %1711 = vmatprep.subr.mxu0 %v1068_v6  ;;  %v1168_v3 = vld [vmem:[#allocation7 + $0xef0] sm:$0xff]  ;;  %v1167_v5 = vld [vmem:[#allocation7 + $0xee8] sm:$0xff] }
 0x1dd   :  { %1674 = vmatprep.subr.mxu1 %v983_v7  ;;  %1712 = vmatpush1.msra.mxu0 %v1067_v8  ;;  %v1243_v6 = vld [vmem:[#allocation7 + $0x1148] sm:$0xff]  ;;  %v1242_v8 = vld [vmem:[#allocation7 + $0x1140] sm:$0xff] }
 0x1de   :  { %1675 = vmatpush2.msra.mxu1 %v982_v10  ;;  %1713 = vmatprep.subr.mxu0 %v1063_v11  ;;  %v1163_v7 = vld [vmem:[#allocation7 + $0xec8] sm:$0xff]  ;;  %v1162_v10 = vld [vmem:[#allocation7 + $0xec0] sm:$0xff] }
 0x1df   :  { %1676 = vmatprep.subr.mxu1 %v978_v14  ;;  %1714 = vmatpush1.msra.mxu0 %v1062_v15  ;;  %v1238_v11 = vld [vmem:[#allocation7 + $0x1120] sm:$0xff]  ;;  %v1237_v15 = vld [vmem:[#allocation7 + $0x1118] sm:$0xff] }
 0x1e0   :  { %1677 = vmatpush2.msra.mxu1 %v977_v16  ;;  %1715 = vmatprep.subr.mxu0 %v1058_v56  ;;  %v1158_v14 = vld [vmem:[#allocation7 + $0xea0] sm:$0xff]  ;;  %v1157_v16 = vld [vmem:[#allocation7 + $0xe98] sm:$0xff] }
 0x1e1   :  { %1678 = vmatprep.subr.mxu1 %v973_v17  ;;  %1716 = vmatpush1.msra.mxu0 %v1057_v18  ;;  %v1233_v56 = vld [vmem:[#allocation7 + $0x10f8] sm:$0xff]  ;;  %v1232_v18 = vld [vmem:[#allocation7 + $0x10f0] sm:$0xff] }
 0x1e2   :  { %1679 = vmatpush2.msra.mxu1 %v972_v19  ;;  %1717 = vmatprep.subr.mxu0 %v1053_v20  ;;  %v1153_v17 = vld [vmem:[#allocation7 + $0xe78] sm:$0xff]  ;;  %v1152_v19 = vld [vmem:[#allocation7 + $0xe70] sm:$0xff] }
 0x1e3   :  { %1680 = vmatprep.subr.mxu1 %v968_v21  ;;  %1718 = vmatpush1.msra.mxu0 %v1052_v63  ;;  %v1228_v20 = vld [vmem:[#allocation7 + $0x10d0] sm:$0xff]  ;;  %v1227_v63 = vld [vmem:[#allocation7 + $0x10c8] sm:$0xff] }
 0x1e4   :  { %1681 = vmatpush2.msra.mxu1 %v967_v22  ;;  %1719 = vmatprep.subr.mxu0 %v1048_v24  ;;  %v1148_v21 = vld [vmem:[#allocation7 + $0xe50] sm:$0xff]  ;;  %v1147_v22 = vld [vmem:[#allocation7 + $0xe48] sm:$0xff] }
 0x1e5   :  { %1682 = vmatprep.subr.mxu1 %v963_v25  ;;  %1720 = vmatpush1.msra.mxu0 %v1047_v26  ;;  %v1223_v24 = vld [vmem:[#allocation7 + $0x10a8] sm:$0xff]  ;;  %v1222_v26 = vld [vmem:[#allocation7 + $0x10a0] sm:$0xff] }
 0x1e6   :  { %1683 = vmatpush2.msra.mxu1 %v962_v27  ;;  %1721 = vmatprep.subr.mxu0 %v1043_v42  ;;  %v1143_v25 = vld [vmem:[#allocation7 + $0xe28] sm:$0xff]  ;;  %v1142_v27 = vld [vmem:[#allocation7 + $0xe20] sm:$0xff] }
 0x1e7   :  { %1684 = vmatprep.subr.mxu1 %v958_v29  ;;  %1722 = vmatpush1.msra.mxu0 %v1042_v30  ;;  %v1218_v42 = vld [vmem:[#allocation7 + $0x1080] sm:$0xff]  ;;  %v1217_v30 = vld [vmem:[#allocation7 + $0x1078] sm:$0xff] }
 0x1e8   :  { %1685 = vmatpush2.msra.mxu1 %v957_v31  ;;  %1723 = vmatprep.subr.mxu0 %v1038_v32  ;;  %v1138_v29 = vld [vmem:[#allocation7 + $0xe00] sm:$0xff]  ;;  %v1137_v31 = vld [vmem:[#allocation7 + $0xdf8] sm:$0xff] }
 0x1e9   :  { %1686 = vmatprep.subr.mxu1 %v953_v33  ;;  %1724 = vmatpush1.msra.mxu0 %v1037_v34  ;;  %v1213_v32 = vld [vmem:[#allocation7 + $0x1058] sm:$0xff]  ;;  %v1212_v34 = vld [vmem:[#allocation7 + $0x1050] sm:$0xff] }
 0x1ea   :  { %1687 = vmatpush2.msra.mxu1 %v952_v35  ;;  %1725 = vmatprep.subr.mxu0 %v1033_v36  ;;  %v1133_v33 = vld [vmem:[#allocation7 + $0xdd8] sm:$0xff]  ;;  %v1132_v35 = vld [vmem:[#allocation7 + $0xdd0] sm:$0xff] }
 0x1eb   :  { %1688 = vmatprep.subr.mxu1 %v948_v37  ;;  %1726 = vmatpush1.msra.mxu0 %v1032_v44  ;;  %v1208_v36 = vld [vmem:[#allocation7 + $0x1030] sm:$0xff]  ;;  %v1207_v44 = vld [vmem:[#allocation7 + $0x1028] sm:$0xff] }
 0x1ec   :  { %1689 = vmatpush2.msra.mxu1 %v947_v45  ;;  %1727 = vmatprep.subr.mxu0 %v1028_v46  ;;  %v1128_v37 = vld [vmem:[#allocation7 + $0xdb0] sm:$0xff]  ;;  %v1127_v45 = vld [vmem:[#allocation7 + $0xda8] sm:$0xff] }
 0x1ed   :  { %1690 = vmatprep.subr.mxu1 %v943_v47  ;;  %1728 = vmatpush1.msra.mxu0 %v1027_v48  ;;  %v1203_v46 = vld [vmem:[#allocation7 + $0x1008] sm:$0xff]  ;;  %v1202_v48 = vld [vmem:[#allocation7 + $0x1000] sm:$0xff] }
 0x1ee   :  { %1691 = vmatpush2.msra.mxu1 %v942_v49  ;;  %1729 = vmatprep.subr.mxu0 %v1023_v50  ;;  %v1123_v47 = vld [vmem:[#allocation7 + $0xd88] sm:$0xff]  ;;  %v1122_v49 = vld [vmem:[#allocation7 + $0xd80] sm:$0xff] }
 0x1ef   :  { %1692 = vmatprep.subr.mxu1 %v938_v54  ;;  %1730 = vmatpush1.msra.mxu0 %v1022_v55  ;;  %v1198_v50 = vld [vmem:[#allocation7 + $0xfe0] sm:$0xff]  ;;  %v1197_v55 = vld [vmem:[#allocation7 + $0xfd8] sm:$0xff] }
 0x1f0   :  { %1693 = vmatpush2.msra.mxu1 %v937_v58  ;;  %1731 = vmatprep.subr.mxu0 %v1018_v59  ;;  %v1118_v54 = vld [vmem:[#allocation7 + $0xd60] sm:$0xff]  ;;  %v1117_v58 = vld [vmem:[#allocation7 + $0xd58] sm:$0xff] }
 0x1f1   :  { %1694 = vmatprep.subr.mxu1 %v933_v60  ;;  %1732 = vmatpush1.msra.mxu0 %v1017_v61  ;;  %v1193_v59 = vld [vmem:[#allocation7 + $0xfb8] sm:$0xff]  ;;  %v1192_v61 = vld [vmem:[#allocation7 + $0xfb0] sm:$0xff] }
 0x1f2   :  { %1695 = vmatpush2.msra.mxu1 %v932_v62  ;;  %1733 = vmatprep.subr.mxu0 %v1013_v0  ;;  %v1113_v60 = vld [vmem:[#allocation7 + $0xd38] sm:$0xff]  ;;  %v1112_v62 = vld [vmem:[#allocation7 + $0xd30] sm:$0xff] }
 0x1f3   :  { %1697 = vmatmul.mubr.f32.vlgmr.msra.gmra.mxu1 %v3248_v53  ;;  %1734 = vmatpush1.msra.mxu0 %v1012_v1  ;;  %v1188_v0 = vld [vmem:[#allocation7 + $0xf90] sm:$0xff] }
 0x1f4   :  { %1774 = vmatprep.subr.mxu1 %v1248_v2  ;;  %1735 = vmatprep.subr.mxu0 %v1168_v3  ;;  %v1108_v1 = vld [vmem:[#allocation7 + $0xd10] sm:$0xff]  ;;  %v1187_v2 = vld [vmem:[#allocation7 + $0xf88] sm:$0xff] }
 0x1f5   :  { %1775 = vmatpush1.msra.mxu1 %v1247_v4  ;;  %1736 = vmatpush2.msra.mxu0 %v1167_v5  ;;  %v1107_v3 = vld [vmem:[#allocation7 + $0xd08] sm:$0xff] }
 0x1f6   :  { %1776 = vmatprep.subr.mxu1 %v1243_v6  ;;  %1737 = vmatprep.subr.mxu0 %v1163_v7  ;;  %v1183_v4 = vld [vmem:[#allocation7 + $0xf68] sm:$0xff]  ;;  %v1182_v6 = vld [vmem:[#allocation7 + $0xf60] sm:$0xff] }
 0x1f7   :  { %1777 = vmatpush1.msra.mxu1 %v1242_v8  ;;  %1738 = vmatpush2.msra.mxu0 %v1162_v10  ;;  %v1103_v5 = vld [vmem:[#allocation7 + $0xce8] sm:$0xff]  ;;  %v1102_v7 = vld [vmem:[#allocation7 + $0xce0] sm:$0xff] }
 0x1f8   :  { %1778 = vmatprep.subr.mxu1 %v1238_v11  ;;  %1739 = vmatprep.subr.mxu0 %v1158_v14  ;;  %v1178_v8 = vld [vmem:[#allocation7 + $0xf40] sm:$0xff]  ;;  %v1177_v11 = vld [vmem:[#allocation7 + $0xf38] sm:$0xff] }
 0x1f9   :  { %1779 = vmatpush1.msra.mxu1 %v1237_v15  ;;  %1740 = vmatpush2.msra.mxu0 %v1157_v16  ;;  %v1098_v10 = vld [vmem:[#allocation7 + $0xcc0] sm:$0xff]  ;;  %v1097_v14 = vld [vmem:[#allocation7 + $0xcb8] sm:$0xff] }
 0x1fa   :  { %1780 = vmatprep.subr.mxu1 %v1233_v56  ;;  %1741 = vmatprep.subr.mxu0 %v1153_v17  ;;  %v1173_v15 = vld [vmem:[#allocation7 + $0xf18] sm:$0xff]  ;;  %v1172_v56 = vld [vmem:[#allocation7 + $0xf10] sm:$0xff] }
 0x1fb   :  { %1781 = vmatpush1.msra.mxu1 %v1232_v18  ;;  %1742 = vmatpush2.msra.mxu0 %v1152_v19  ;;  %v1093_v16 = vld [vmem:[#allocation7 + $0xc98] sm:$0xff]  ;;  %v1092_v17 = vld [vmem:[#allocation7 + $0xc90] sm:$0xff] }
 0x1fc   :  { %1782 = vmatprep.subr.mxu1 %v1228_v20  ;;  %1743 = vmatprep.subr.mxu0 %v1148_v21  ;;  %v849_v18 = vld [vmem:[#allocation7 + $0x4f8] sm:$0xff]  ;;  %v844_v21 = vld [vmem:[#allocation7 + $0x4d0] sm:$0xff] }
 0x1fd   :  { %1783 = vmatpush1.msra.mxu1 %v1227_v63  ;;  %1744 = vmatpush2.msra.mxu0 %v1147_v22  ;;  %v769_v19 = vld [vmem:[#allocation7 + $0x278] sm:$0xff]  ;;  %v764_v22 = vld [vmem:[#allocation7 + $0x250] sm:$0xff] }
 0x1fe   :  { %1784 = vmatprep.subr.mxu1 %v1223_v24  ;;  %1745 = vmatprep.subr.mxu0 %v1143_v25  ;;  %v1009_v20 = vld [vmem:[#allocation7 + $0x9f8] sm:$0xff]  ;;  %v1004_v24 = vld [vmem:[#allocation7 + $0x9d0] sm:$0xff]  ;;  %v839_v25 = vld [vmem:[#allocation7 + $0x4a8] sm:$0xff] }
 0x1ff   :  { %1785 = vmatpush1.msra.mxu1 %v1222_v26  ;;  %1746 = vmatpush2.msra.mxu0 %v1142_v27  ;;  %v929_v63 = vld [vmem:[#allocation7 + $0x778] sm:$0xff]  ;;  %v924_v26 = vld [vmem:[#allocation7 + $0x750] sm:$0xff]  ;;  %v759_v27 = vld [vmem:[#allocation7 + $0x228] sm:$0xff] }
 0x200   :  { %1786 = vmatprep.subr.mxu1 %v1218_v42  ;;  %1747 = vmatprep.subr.mxu0 %v1138_v29  ;;  %v999_v42 = vld [vmem:[#allocation7 + $0x9a8] sm:$0xff]  ;;  %v834_v29 = vld [vmem:[#allocation7 + $0x480] sm:$0xff] }
 0x201   :  { %1787 = vmatpush1.msra.mxu1 %v1217_v30  ;;  %1748 = vmatpush2.msra.mxu0 %v1137_v31  ;;  %v919_v30 = vld [vmem:[#allocation7 + $0x728] sm:$0xff]  ;;  %v754_v31 = vld [vmem:[#allocation7 + $0x200] sm:$0xff] }
 0x202   :  { %1788 = vmatprep.subr.mxu1 %v1213_v32  ;;  %1749 = vmatprep.subr.mxu0 %v1133_v33  ;;  %v994_v32 = vld [vmem:[#allocation7 + $0x980] sm:$0xff] }
 0x203   :  { %1789 = vmatpush1.msra.mxu1 %v1212_v34  ;;  %1750 = vmatpush2.msra.mxu0 %v1132_v35  ;;  %v914_v33 = vld [vmem:[#allocation7 + $0x700] sm:$0xff]  ;;  %v749_v34 = vld [vmem:[#allocation7 + $0x1d8] sm:$0xff] }
 0x204   :  { %1790 = vmatprep.subr.mxu1 %v1208_v36  ;;  %1751 = vmatprep.subr.mxu0 %v1128_v37  ;;  %v989_v35 = vld [vmem:[#allocation7 + $0x958] sm:$0xff]  ;;  %v744_v37 = vld [vmem:[#allocation7 + $0x1b0] sm:$0xff] }
 0x205   :  { %1791 = vmatpush1.msra.mxu1 %v1207_v44  ;;  %1752 = vmatpush2.msra.mxu0 %v1127_v45  ;;  %v909_v36 = vld [vmem:[#allocation7 + $0x6d8] sm:$0xff]  ;;  %v984_v44 = vld [vmem:[#allocation7 + $0x930] sm:$0xff]  ;;  %v819_v45 = vld [vmem:[#allocation7 + $0x408] sm:$0xff] }
 0x206   :  { %1792 = vmatprep.subr.mxu1 %v1203_v46  ;;  %1753 = vmatprep.subr.mxu0 %v1123_v47  ;;  %v904_v46 = vld [vmem:[#allocation7 + $0x6b0] sm:$0xff]  ;;  %v739_v47 = vld [vmem:[#allocation7 + $0x188] sm:$0xff] }
 0x207   :  { %1793 = vmatpush1.msra.mxu1 %v1202_v48  ;;  %1754 = vmatpush2.msra.mxu0 %v1122_v49  ;;  %v979_v48 = vld [vmem:[#allocation7 + $0x908] sm:$0xff]  ;;  %v814_v49 = vld [vmem:[#allocation7 + $0x3e0] sm:$0xff] }
 0x208   :  { %1794 = vmatprep.subr.mxu1 %v1198_v50  ;;  %1755 = vmatprep.subr.mxu0 %v1118_v54  ;;  %v899_v50 = vld [vmem:[#allocation7 + $0x688] sm:$0xff]  ;;  %v734_v54 = vld [vmem:[#allocation7 + $0x160] sm:$0xff] }
 0x209   :  { %1795 = vmatpush1.msra.mxu1 %v1197_v55  ;;  %1756 = vmatpush2.msra.mxu0 %v1117_v58  ;;  %v974_v55 = vld [vmem:[#allocation7 + $0x8e0] sm:$0xff]  ;;  %v809_v58 = vld [vmem:[#allocation7 + $0x3b8] sm:$0xff] }
 0x20a   :  { %1796 = vmatprep.subr.mxu1 %v1193_v59  ;;  %1757 = vmatprep.subr.mxu0 %v1113_v60  ;;  %v894_v59 = vld [vmem:[#allocation7 + $0x660] sm:$0xff]  ;;  %v729_v60 = vld [vmem:[#allocation7 + $0x138] sm:$0xff] }
 0x20b   :  { %1797 = vmatpush1.msra.mxu1 %v1192_v61  ;;  %1758 = vmatpush2.msra.mxu0 %v1112_v62  ;;  %v969_v61 = vld [vmem:[#allocation7 + $0x8b8] sm:$0xff]  ;;  %v804_v62 = vld [vmem:[#allocation7 + $0x390] sm:$0xff] }
 0x20c   :  { %1798 = vmatprep.subr.mxu1 %v1188_v0  ;;  %1759 = vmatprep.subr.mxu0 %v1108_v1  ;;  %v889_v0 = vld [vmem:[#allocation7 + $0x638] sm:$0xff]  ;;  %v724_v1 = vld [vmem:[#allocation7 + $0x110] sm:$0xff] }
 0x20d   :  { %1799 = vmatpush1.msra.mxu1 %v1187_v2  ;;  %1760 = vmatpush2.msra.mxu0 %v1107_v3  ;;  %v964_v2 = vld [vmem:[#allocation7 + $0x890] sm:$0xff]  ;;  %v799_v3 = vld [vmem:[#allocation7 + $0x368] sm:$0xff] }
 0x20e   :  { %1800 = vmatprep.subr.mxu1 %v1183_v4  ;;  %1761 = vmatprep.subr.mxu0 %v1103_v5  ;;  %v884_v4 = vld [vmem:[#allocation7 + $0x610] sm:$0xff]  ;;  %v719_v5 = vld [vmem:[#allocation7 + $0xe8] sm:$0xff] }
 0x20f   :  { %1801 = vmatpush1.msra.mxu1 %v1182_v6  ;;  %1762 = vmatpush2.msra.mxu0 %v1102_v7  ;;  %v959_v6 = vld [vmem:[#allocation7 + $0x868] sm:$0xff]  ;;  %v794_v7 = vld [vmem:[#allocation7 + $0x340] sm:$0xff] }
 0x210   :  { %1802 = vmatprep.subr.mxu1 %v1178_v8  ;;  %1763 = vmatprep.subr.mxu0 %v1098_v10  ;;  %v879_v8 = vld [vmem:[#allocation7 + $0x5e8] sm:$0xff]  ;;  %v714_v10 = vld [vmem:[#allocation7 + $0xc0] sm:$0xff] }
 0x211   :  { %1803 = vmatpush1.msra.mxu1 %v1177_v11  ;;  %1764 = vmatpush2.msra.mxu0 %v1097_v14  ;;  %v954_v11 = vld [vmem:[#allocation7 + $0x840] sm:$0xff]  ;;  %v789_v14 = vld [vmem:[#allocation7 + $0x318] sm:$0xff] }
 0x212   :  { %1804 = vmatprep.subr.mxu1 %v1173_v15  ;;  %1765 = vmatprep.subr.mxu0 %v1093_v16  ;;  %v874_v15 = vld [vmem:[#allocation7 + $0x5c0] sm:$0xff]  ;;  %v709_v16 = vld [vmem:[#allocation7 + $0x98] sm:$0xff] }
 0x213   :  { %1805 = vmatpush1.msra.mxu1 %v1172_v56  ;;  %1838 = vmatprep.mubr.f32.mxu1 %v3130_v13  ;;  %v949_v56 = vld [vmem:[#allocation7 + $0x818] sm:$0xff] }
 0x214   :  { %1766 = vmatpush2.msra.mxu0 %v1092_v17  ;;  %1839 = vmatmul.mubr.f32.vlgmr.msra.gmra.mxu1 %v3258_v12  ;;  %v784_v17 = vld [vmem:[#allocation7 + $0x2f0] sm:$0xff] }
 0x215   :  { %2576 = vmatprep.subr.mxu1 %v849_v18  ;;  %1768 = vmatmul.mubr.f32.vlgmr.msra.gmra.mxu0 %v3271_v28  ;;  %v869_v18 = vld [vmem:[#allocation7 + $0x598] sm:$0xff] }
 0x216   :  { %2577 = vmatpush3.msra.mxu1 %v769_v19  ;;  %1909 = vmatprep.mubr.f32.mxu1 %v3244_v51  ;;  %v829_v51 = vld [vmem:[#allocation7 + $0x458] sm:$0xff]  ;;  %v704_v19 = vld [vmem:[#allocation7 + $0x70] sm:$0xff] }
 0x217   :  { %2611 = vmatprep.subr.mxu0 %v1009_v20  ;;  %2578 = vmatprep.subr.mxu1 %v844_v21  ;;  %v944_v20 = vld [vmem:[#allocation7 + $0x7f0] sm:$0xff]  ;;  %v779_v21 = vld [vmem:[#allocation7 + $0x2c8] sm:$0xff] }
 0x218   :  { %2612 = vmatpush3.msra.mxu0 %v929_v63  ;;  %1979 = vmatprep.mubr.f32.mxu0 %v3250_v57  ;;  %v824_v57 = vld [vmem:[#allocation7 + $0x430] sm:$0xff] }
 0x219   :  { %2579 = vmatpush3.msra.mxu1 %v764_v22  ;;  %2613 = vmatprep.subr.mxu0 %v1004_v24  ;;  %v864_v63 = vld [vmem:[#allocation7 + $0x570] sm:$0xff]  ;;  %v699_v22 = vld [vmem:[#allocation7 + $0x48] sm:$0xff] }
 0x21a   :  { %2580 = vmatprep.subr.mxu1 %v839_v25  ;;  %2614 = vmatpush3.msra.mxu0 %v924_v26  ;;  %v939_v24 = vld [vmem:[#allocation7 + $0x7c8] sm:$0xff]  ;;  %v774_v25 = vld [vmem:[#allocation7 + $0x2a0] sm:$0xff] }
 0x21b   :  { %2581 = vmatpush3.msra.mxu1 %v759_v27  ;;  %2615 = vmatprep.subr.mxu0 %v999_v42  ;;  %v859_v26 = vld [vmem:[#allocation7 + $0x548] sm:$0xff]  ;;  %v694_v27 = vld [vmem:[#allocation7 + $0x20] sm:$0xff] }
 0x21c   :  { %2582 = vmatprep.subr.mxu1 %v834_v29  ;;  %2616 = vmatpush3.msra.mxu0 %v919_v30  ;;  %v934_v42 = vld [vmem:[#allocation7 + $0x7a0] sm:$0xff]  ;;  %v1169_v30 = vld [vmem:[#allocation7 + $0xef8] sm:$0xff] }
 0x21d   :  { %2583 = vmatpush3.msra.mxu1 %v754_v31  ;;  %2617 = vmatprep.subr.mxu0 %v994_v32  ;;  %v854_v29 = vld [vmem:[#allocation7 + $0x520] sm:$0xff]  ;;  %v1089_v31 = vld [vmem:[#allocation7 + $0xc78] sm:$0xff]  ;;  %v1164_v32 = vld [vmem:[#allocation7 + $0xed0] sm:$0xff] }
 0x21e   :  { %2584 = vmatprep.subr.mxu1 %v829_v51  ;;  %2618 = vmatpush3.msra.mxu0 %v914_v33  ;;  %v1249_v51 = vld [vmem:[#allocation7 + $0x1178] sm:$0xff]  ;;  %v1084_v33 = vld [vmem:[#allocation7 + $0xc50] sm:$0xff] }
 0x21f   :  { %2585 = vmatpush3.msra.mxu1 %v749_v34  ;;  %2619 = vmatprep.subr.mxu0 %v989_v35  ;;  %v1159_v34 = vld [vmem:[#allocation7 + $0xea8] sm:$0xff]  ;;  %v1244_v35 = vld [vmem:[#allocation7 + $0x1150] sm:$0xff] }
 0x220   :  { %2586 = vmatprep.subr.mxu1 %v824_v57  ;;  %2620 = vmatpush3.msra.mxu0 %v909_v36  ;;  %v1079_v57 = vld [vmem:[#allocation7 + $0xc28] sm:$0xff]  ;;  %v1154_v36 = vld [vmem:[#allocation7 + $0xe80] sm:$0xff] }
 0x221   :  { %2587 = vmatpush3.msra.mxu1 %v744_v37  ;;  %2621 = vmatprep.subr.mxu0 %v984_v44  ;;  %v1074_v37 = vld [vmem:[#allocation7 + $0xc00] sm:$0xff]  ;;  %v1069_v44 = vld [vmem:[#allocation7 + $0xbd8] sm:$0xff] }
 0x222   :  { %2588 = vmatprep.subr.mxu1 %v819_v45  ;;  %2622 = vmatpush3.msra.mxu0 %v904_v46  ;;  %v1144_v45 = vld [vmem:[#allocation7 + $0xe30] sm:$0xff]  ;;  %v1229_v46 = vld [vmem:[#allocation7 + $0x10d8] sm:$0xff] }
 0x223   :  { %2589 = vmatpush3.msra.mxu1 %v739_v47  ;;  %2623 = vmatprep.subr.mxu0 %v979_v48  ;;  %v1064_v47 = vld [vmem:[#allocation7 + $0xbb0] sm:$0xff]  ;;  %v1139_v48 = vld [vmem:[#allocation7 + $0xe08] sm:$0xff] }
 0x224   :  { %2590 = vmatprep.subr.mxu1 %v814_v49  ;;  %2624 = vmatpush3.msra.mxu0 %v899_v50  ;;  %v1224_v49 = vld [vmem:[#allocation7 + $0x10b0] sm:$0xff]  ;;  %v1059_v50 = vld [vmem:[#allocation7 + $0xb88] sm:$0xff] }
 0x225   :  { %2591 = vmatpush3.msra.mxu1 %v734_v54  ;;  %2625 = vmatprep.subr.mxu0 %v974_v55  ;;  %v1134_v54 = vld [vmem:[#allocation7 + $0xde0] sm:$0xff]  ;;  %v1219_v55 = vld [vmem:[#allocation7 + $0x1088] sm:$0xff] }
 0x226   :  { %2592 = vmatprep.subr.mxu1 %v809_v58  ;;  %2626 = vmatpush3.msra.mxu0 %v894_v59  ;;  %v1054_v58 = vld [vmem:[#allocation7 + $0xb60] sm:$0xff]  ;;  %v1129_v59 = vld [vmem:[#allocation7 + $0xdb8] sm:$0xff] }
 0x227   :  { %2593 = vmatpush3.msra.mxu1 %v729_v60  ;;  %2627 = vmatprep.subr.mxu0 %v969_v61  ;;  %v1214_v60 = vld [vmem:[#allocation7 + $0x1060] sm:$0xff]  ;;  %v1049_v61 = vld [vmem:[#allocation7 + $0xb38] sm:$0xff] }
 0x228   :  { %2594 = vmatprep.subr.mxu1 %v804_v62  ;;  %2628 = vmatpush3.msra.mxu0 %v889_v0  ;;  %v1124_v62 = vld [vmem:[#allocation7 + $0xd90] sm:$0xff]  ;;  %v1209_v0 = vld [vmem:[#allocation7 + $0x1038] sm:$0xff] }
 0x229   :  { %2595 = vmatpush3.msra.mxu1 %v724_v1  ;;  %2629 = vmatprep.subr.mxu0 %v964_v2  ;;  %v1044_v1 = vld [vmem:[#allocation7 + $0xb10] sm:$0xff]  ;;  %v1119_v2 = vld [vmem:[#allocation7 + $0xd68] sm:$0xff] }
 0x22a   :  { %2596 = vmatprep.subr.mxu1 %v799_v3  ;;  %2630 = vmatpush3.msra.mxu0 %v884_v4  ;;  %v1204_v3 = vld [vmem:[#allocation7 + $0x1010] sm:$0xff]  ;;  %v1039_v4 = vld [vmem:[#allocation7 + $0xae8] sm:$0xff] }
 0x22b   :  { %2597 = vmatpush3.msra.mxu1 %v719_v5  ;;  %2631 = vmatprep.subr.mxu0 %v959_v6  ;;  %v1114_v5 = vld [vmem:[#allocation7 + $0xd40] sm:$0xff]  ;;  %v1199_v6 = vld [vmem:[#allocation7 + $0xfe8] sm:$0xff] }
 0x22c   :  { %2598 = vmatprep.subr.mxu1 %v794_v7  ;;  %2632 = vmatpush3.msra.mxu0 %v879_v8  ;;  %v1034_v7 = vld [vmem:[#allocation7 + $0xac0] sm:$0xff]  ;;  %v1109_v8 = vld [vmem:[#allocation7 + $0xd18] sm:$0xff] }
 0x22d   :  { %2599 = vmatpush3.msra.mxu1 %v714_v10  ;;  %2633 = vmatprep.subr.mxu0 %v954_v11  ;;  %v1194_v10 = vld [vmem:[#allocation7 + $0xfc0] sm:$0xff]  ;;  %v1029_v11 = vld [vmem:[#allocation7 + $0xa98] sm:$0xff] }
 0x22e   :  { %2600 = vmatprep.subr.mxu1 %v789_v14  ;;  %2634 = vmatpush3.msra.mxu0 %v874_v15  ;;  %v1104_v14 = vld [vmem:[#allocation7 + $0xcf0] sm:$0xff]  ;;  %v1189_v15 = vld [vmem:[#allocation7 + $0xf98] sm:$0xff] }
 0x22f   :  { %2601 = vmatpush3.msra.mxu1 %v709_v16  ;;  %2635 = vmatprep.subr.mxu0 %v949_v56  ;;  %v1024_v16 = vld [vmem:[#allocation7 + $0xa70] sm:$0xff]  ;;  %v1099_v56 = vld [vmem:[#allocation7 + $0xcc8] sm:$0xff] }
 0x230   :  { %2602 = vmatprep.subr.mxu1 %v784_v17  ;;  %2636 = vmatpush3.msra.mxu0 %v869_v18  ;;  %v1184_v17 = vld [vmem:[#allocation7 + $0xf70] sm:$0xff]  ;;  %v1019_v18 = vld [vmem:[#allocation7 + $0xa48] sm:$0xff] }
 0x231   :  { %2603 = vmatpush3.msra.mxu1 %v704_v19  ;;  %2637 = vmatprep.subr.mxu0 %v944_v20  ;;  %v1094_v19 = vld [vmem:[#allocation7 + $0xca0] sm:$0xff]  ;;  %v1179_v20 = vld [vmem:[#allocation7 + $0xf48] sm:$0xff] }
 0x232   :  { %2604 = vmatprep.subr.mxu1 %v779_v21  ;;  %2638 = vmatpush3.msra.mxu0 %v864_v63  ;;  %v1014_v21 = vld [vmem:[#allocation7 + $0xa20] sm:$0xff] }
 0x233   :  { %2605 = vmatpush3.msra.mxu1 %v699_v22  ;;  %2639 = vmatprep.subr.mxu0 %v939_v24  ;;  %v1174_v63 = vld [vmem:[#allocation7 + $0xf20] sm:$0xff] }
 0x234   :  { %2606 = vmatprep.subr.mxu1 %v774_v25  ;;  %2640 = vmatpush3.msra.mxu0 %v859_v26  ;;  %v2156_v22 = vld [vmem:[#allocation10 + $0xf8] sm:$0xff]  ;;  %v2155_v26 = vld [vmem:[#allocation10 + $0xf0] sm:$0xff] }
 0x235   :  { %2607 = vmatpush3.msra.mxu1 %v694_v27  ;;  %2641 = vmatprep.subr.mxu0 %v934_v42  ;;  %v2140_v24 = vld [vmem:[#allocation10 + $0x78] sm:$0xff]  ;;  %v2139_v42 = vld [vmem:[#allocation10 + $0x70] sm:$0xff] }
 0x236   :  { %1910 = vmatmul.mubr.f32.vlgmr.msra.gmra.mxu1 %v3246_v52  ;;  %2642 = vmatpush3.msra.mxu0 %v854_v29  ;;  %v1239_v52 = vld [vmem:[#allocation7 + $0x1128] sm:$0xff]  ;;  %v2188_v25 = vld [vmem:[#allocation10 + $0x1f8] sm:$0xff]  ;;  %v2187_v29 = vld [vmem:[#allocation10 + $0x1f0] sm:$0xff] }
 0x237   :  { %2646 = vmatprep.subr.mxu1 %v1169_v30  ;;  %1980 = vmatmul.mubr.f32.vlgmr.msra.gmra.mxu0 %v3248_v53  ;;  %v1149_v53 = vld [vmem:[#allocation7 + $0xe58] sm:$0xff]  ;;  %v2154_v30 = vld [vmem:[#allocation10 + $0xe8] sm:$0xff] }
 0x238   :  { %2647 = vmatpush3.msra.mxu1 %v1089_v31  ;;  %2049 = vmatprep.mubr.f32.mxu1 %v3269_v23  ;;  %v1234_v23 = vld [vmem:[#allocation7 + $0x1100] sm:$0xff]  ;;  %v2171_v31 = vld [vmem:[#allocation10 + $0x170] sm:$0xff] }
 0x239   :  { %2802 = vmatprep.subr.mxu0 %v3130_v13  ;;  %2648 = vmatprep.subr.mxu1 %v1164_v32  ;;  %v2172_v27 = vld [vmem:[#allocation10 + $0x178] sm:$0xff]  ;;  %v2186_v32 = vld [vmem:[#allocation10 + $0x1e8] sm:$0xff] }
 0x23a   :  { %2803 = vmatpush3.msra.mxu0 %v1249_v51  ;;  %2649 = vmatpush3.msra.mxu1 %v1084_v33  ;;  %v2153_v51 = vld [vmem:[#allocation10 + $0xe0] sm:$0xff]  ;;  %v2170_v33 = vld [vmem:[#allocation10 + $0x168] sm:$0xff] }
 0x23b   :  { %2804 = vmatprep.subr.mxu0 %v3130_v13  ;;  %2650 = vmatprep.subr.mxu1 %v1159_v34  ;;  %v2137_v34 = vld [vmem:[#allocation10 + $0x60] sm:$0xff] }
 0x23c   :  { %2805 = vmatpush3.msra.mxu0 %v1244_v35  ;;  %2651 = vmatpush3.msra.mxu1 %v1079_v57  ;;  %v2185_v35 = vld [vmem:[#allocation10 + $0x1e0] sm:$0xff] }
 0x23d   :  { %2806 = vmatprep.subr.mxu0 %v3130_v13  ;;  %2652 = vmatprep.subr.mxu1 %v1154_v36  ;;  %v2169_v57 = vld [vmem:[#allocation10 + $0x160] sm:$0xff]  ;;  %v2136_v36 = vld [vmem:[#allocation10 + $0x58] sm:$0xff] }
 0x23e   :  { %2807 = vmatpush3.msra.mxu0 %v1239_v52  ;;  %2653 = vmatpush3.msra.mxu1 %v1074_v37  ;;  %v2184_v52 = vld [vmem:[#allocation10 + $0x1d8] sm:$0xff]  ;;  %v2151_v37 = vld [vmem:[#allocation10 + $0xd0] sm:$0xff] }
 0x23f   :  { %2808 = vmatprep.subr.mxu0 %v3130_v13  ;;  %2654 = vmatprep.subr.mxu1 %v1149_v53  ;;  %v2168_v53 = vld [vmem:[#allocation10 + $0x158] sm:$0xff] }
 0x240   :  { %2809 = vmatpush3.msra.mxu0 %v1234_v23  ;;  %2655 = vmatpush3.msra.mxu1 %v1069_v44  ;;  %v2135_v23 = vld [vmem:[#allocation10 + $0x50] sm:$0xff] }
 0x241   :  { %2810 = vmatprep.subr.mxu0 %v3130_v13  ;;  %2656 = vmatprep.subr.mxu1 %v1144_v45  ;;  %v2183_v44 = vld [vmem:[#allocation10 + $0x1d0] sm:$0xff]  ;;  %v2150_v45 = vld [vmem:[#allocation10 + $0xc8] sm:$0xff] }
 0x242   :  { %2811 = vmatpush3.msra.mxu0 %v1229_v46  ;;  %2657 = vmatpush3.msra.mxu1 %v1064_v47  ;;  %v2167_v46 = vld [vmem:[#allocation10 + $0x150] sm:$0xff]  ;;  %v2134_v47 = vld [vmem:[#allocation10 + $0x48] sm:$0xff] }
 0x243   :  { %2812 = vmatprep.subr.mxu0 %v3130_v13  ;;  %2658 = vmatprep.subr.mxu1 %v1139_v48  ;;  %v2182_v48 = vld [vmem:[#allocation10 + $0x1c8] sm:$0xff] }
 0x244   :  { %2813 = vmatpush3.msra.mxu0 %v1224_v49  ;;  %2659 = vmatpush3.msra.mxu1 %v1059_v50  ;;  %v2149_v49 = vld [vmem:[#allocation10 + $0xc0] sm:$0xff]  ;;  %v2166_v50 = vld [vmem:[#allocation10 + $0x148] sm:$0xff] }
 0x245   :  { %2814 = vmatprep.subr.mxu0 %v3130_v13  ;;  %2660 = vmatprep.subr.mxu1 %v1134_v54  ;;  %v2133_v54 = vld [vmem:[#allocation10 + $0x40] sm:$0xff] }
 0x246   :  { %2815 = vmatpush3.msra.mxu0 %v1219_v55  ;;  %2661 = vmatpush3.msra.mxu1 %v1054_v58  ;;  %v2181_v55 = vld [vmem:[#allocation10 + $0x1c0] sm:$0xff]  ;;  %v2148_v58 = vld [vmem:[#allocation10 + $0xb8] sm:$0xff] }
 0x247   :  { %2816 = vmatprep.subr.mxu0 %v3130_v13  ;;  %2662 = vmatprep.subr.mxu1 %v1129_v59  ;;  %v2165_v59 = vld [vmem:[#allocation10 + $0x140] sm:$0xff] }
 0x248   :  { %2817 = vmatpush3.msra.mxu0 %v1214_v60  ;;  %2663 = vmatpush3.msra.mxu1 %v1049_v61  ;;  %v3307_v60 = vld [vmem:[#allocation8] sm:$0x1f] }
 0x249   :  { %2818 = vmatprep.subr.mxu0 %v3130_v13  ;;  %2664 = vmatprep.subr.mxu1 %v1124_v62  ;;  %v2132_v61 = vld [vmem:[#allocation10 + $0x38] sm:$0xff] }
 0x24a   :  { %2819 = vmatpush3.msra.mxu0 %v1209_v0  ;;  %2665 = vmatpush3.msra.mxu1 %v1044_v1  ;;  %v2180_v62 = vld [vmem:[#allocation10 + $0x1b8] sm:$0xff]  ;;  %v1343_v0 = vpop.f32.mrf.mxu1  ;;  %v2147_v1 = vld [vmem:[#allocation10 + $0xb0] sm:$0xff] }
 0x24b   :  { %2820 = vmatprep.subr.mxu0 %v3130_v13  ;;  %2666 = vmatprep.subr.mxu1 %v1119_v2  ;;  %v2164_v2 = vld [vmem:[#allocation10 + $0x138] sm:$0xff] }
 0x24c   :  { %2821 = vmatpush3.msra.mxu0 %v1204_v3  ;;  %2667 = vmatpush3.msra.mxu1 %v1039_v4  ;;  %v2131_v3 = vld [vmem:[#allocation10 + $0x30] sm:$0xff] }
 0x24d   :  { %2822 = vmatprep.subr.mxu0 %v3130_v13  ;;  %2668 = vmatprep.subr.mxu1 %v1114_v5  ;;  %v2179_v4 = vld [vmem:[#allocation10 + $0x1b0] sm:$0xff]  ;;  %v1255_v5 = vrot.slane %v3307_v60, %v363_v40  ;;  %v2129_v40 = vld [vmem:[#allocation10 + $0x20] sm:$0xff] }
 0x24e   :  { %2823 = vmatpush3.msra.mxu0 %v1199_v6  ;;  %2669 = vmatpush3.msra.mxu1 %v1034_v7  ;;  %v2146_v6 = vld [vmem:[#allocation10 + $0xa8] sm:$0xff]  ;;  %v2163_v7 = vld [vmem:[#allocation10 + $0x130] sm:$0xff] }
 0x24f   :  { %2824 = vmatprep.subr.mxu0 %v3130_v13  ;;  %2670 = vmatprep.subr.mxu1 %v1109_v8  ;;  %v1259_v8 = vrot.slane %v3307_v60, %v367_v39 }
 0x250   :  { %2825 = vmatpush3.msra.mxu0 %v1194_v10  ;;  %2671 = vmatpush3.msra.mxu1 %v1029_v11  ;;  %v2130_v10 = vld [vmem:[#allocation10 + $0x28] sm:$0xff] }
 0x251   :  { %2826 = vmatprep.subr.mxu0 %v3130_v13  ;;  %2672 = vmatprep.subr.mxu1 %v1104_v14  ;;  %v2178_v11 = vld [vmem:[#allocation10 + $0x1a8] sm:$0xff]  ;;  %v1414_v14 = vpop.f32.mrf.mxu0 }
 0x252   :  { %2827 = vmatpush3.msra.mxu0 %v1189_v15  ;;  %2673 = vmatpush3.msra.mxu1 %v1024_v16  ;;  %v1345_v15 = vpop.f32.mrf.mxu1  ;;  %v2145_v16 = vld [vmem:[#allocation10 + $0xa0] sm:$0xff] }
 0x253   :  { %2828 = vmatprep.subr.mxu0 %v3130_v13  ;;  %2674 = vmatprep.subr.mxu1 %v1099_v56  ;;  %v2162_v56 = vld [vmem:[#allocation10 + $0x128] sm:$0xff]  ;;  %v1346_v39 = vadd.f32 %v1345_v15, %v1259_v8  ;;  %v1267_v8 = vrot.slane %v3307_v60, %v375_v43 }
 0x254   :  { %2829 = vmatpush3.msra.mxu0 %v1184_v17  ;;  %2675 = vmatpush3.msra.mxu1 %v1019_v18  ;;  %v2177_v17 = vld [vmem:[#allocation10 + $0x1a0] sm:$0xff]  ;;  %v1344_v18 = vadd.f32 %v1343_v0, %v1255_v5 }
 0x255   :  { %2830 = vmatprep.subr.mxu0 %v3130_v13  ;;  %2676 = vmatprep.subr.mxu1 %v1094_v19  ;;  %v2144_v19 = vld [vmem:[#allocation10 + $0x98] sm:$0xff]  ;;  %v2193_v0 = vld [vmem:[#allocation10 + $0x220] sm:$0xff] }
 0x256   :  { %2831 = vmatpush3.msra.mxu0 %v1179_v20  ;;  %2677 = vmatpush3.msra.mxu1 %v1014_v21  ;;  %v2161_v20 = vld [vmem:[#allocation10 + $0x120] sm:$0xff]  ;;  %v2128_v21 = vld [vmem:[#allocation10 + $0x18] sm:$0xff] }
 0x257   :  { %2832 = vmatprep.subr.mxu0 %v3130_v13  ;;  %2050 = vmatmul.mubr.f32.vlgmr.msra.gmra.mxu1 %v3271_v28  ;;  %v2138_v28 = vld [vmem:[#allocation10 + $0x68] sm:$0xff] }
 0x258   :  { %2833 = vmatpush3.msra.mxu0 %v1174_v63  ;;  %2834 = vmatprep.mubr.msk.f32.mxu0 %vm3131_vm0, %v3130_v13  ;;  %v2176_v63 = vld [vmem:[#allocation10 + $0x198] sm:$0xff] }
 0x259   :  { %2835 = vmatmul.mubr.f32.vlgmr.msra.gmra.mxu0 %v3258_v12  ;;  %2698 = vmatprep.subr.mxu1 %v2156_v22  ;;  %v2152_v12 = vld [vmem:[#allocation10 + $0xd8] sm:$0xff]  ;;  %v1416_v22 = vpop.f32.mrf.mxu0 }
 0x25a   :  { %2699 = vmatpush3.msra.mxu1 %v2140_v24  ;;  %2733 = vmatprep.subr.mxu0 %v2188_v25  ;;  %v2143_v24 = vld [vmem:[#allocation10 + $0x90] sm:$0xff]  ;;  %v2160_v25 = vld [vmem:[#allocation10 + $0x118] sm:$0xff] }
 0x25b   :  { %2700 = vmatprep.subr.mxu1 %v2155_v26  ;;  %2734 = vmatpush3.msra.mxu0 %v2172_v27  ;;  %v2127_v26 = vld [vmem:[#allocation10 + $0x10] sm:$0xff] }
 0x25c   :  { %2701 = vmatpush3.msra.mxu1 %v2139_v42  ;;  %2735 = vmatprep.subr.mxu0 %v2187_v29  ;;  %v2175_v27 = vld [vmem:[#allocation10 + $0x190] sm:$0xff]  ;;  %v1415_v42 = vadd.f32 %v1414_v14, %v1344_v18  ;;  %v1556_v29 = vpop.f32.mrf.mxu0 }
 0x25d   :  { %2702 = vmatprep.subr.mxu1 %v2154_v30  ;;  %2736 = vmatpush3.msra.mxu0 %v2171_v31  ;;  %v2142_v31 = vld [vmem:[#allocation10 + $0x88] sm:$0xff] }
 0x25e   :  { %2703 = vmatpush3.msra.mxu1 %v2138_v28  ;;  %2737 = vmatprep.subr.mxu0 %v2186_v32  ;;  %v2159_v28 = vld [vmem:[#allocation10 + $0x110] sm:$0xff]  ;;  %v1417_v32 = vadd.f32 %v1416_v22, %v1346_v39 }
 0x25f   :  { %2704 = vmatprep.subr.mxu1 %v2153_v51  ;;  %2738 = vmatpush3.msra.mxu0 %v2170_v33  ;;  %v2126_v51 = vld [vmem:[#allocation10 + $0x8] sm:$0xff] }
 0x260   :  { %2705 = vmatpush3.msra.mxu1 %v2137_v34  ;;  %2739 = vmatprep.subr.mxu0 %v2185_v35  ;;  %v2174_v33 = vld [vmem:[#allocation10 + $0x188] sm:$0xff] }
 0x261   :  { %2706 = vmatprep.subr.mxu1 %v2152_v12  ;;  %2740 = vmatpush3.msra.mxu0 %v2169_v57  ;;  %v2141_v12 = vld [vmem:[#allocation10 + $0x80] sm:$0xff]  ;;  %v2158_v57 = vld [vmem:[#allocation10 + $0x108] sm:$0xff] }
 0x262   :  { %2707 = vmatpush3.msra.mxu1 %v2136_v36  ;;  %2741 = vmatprep.subr.mxu0 %v2184_v52  ;;  %v2125_v52 = vld [vmem:[#allocation10] sm:$0xff] }
 0x263   :  { %2708 = vmatprep.subr.mxu1 %v2151_v37  ;;  %2742 = vmatpush3.msra.mxu0 %v2168_v53  ;;  %v2173_v37 = vld [vmem:[#allocation10 + $0x180] sm:$0xff]  ;;  %v1558_v53 = vpop.f32.mrf.mxu0 }
 0x264   :  { %2709 = vmatpush3.msra.mxu1 %v2135_v23  ;;  %2743 = vmatprep.subr.mxu0 %v2183_v44  ;;  %v2157_v23 = vld [vmem:[#allocation10 + $0x100] sm:$0xff] }
 0x265   :  { %2710 = vmatprep.subr.mxu1 %v2150_v45  ;;  %2744 = vmatpush3.msra.mxu0 %v2167_v46  ;;  %v2204_v46 = vld [vmem:[#allocation10 + $0x278] sm:$0xff] }
 0x266   :  { %2711 = vmatpush3.msra.mxu1 %v2134_v47  ;;  %2745 = vmatprep.subr.mxu0 %v2182_v48  ;;  %v2203_v47 = vld [vmem:[#allocation10 + $0x270] sm:$0xff]  ;;  %v2202_v48 = vld [vmem:[#allocation10 + $0x268] sm:$0xff] }
 0x267   :  { %2712 = vmatprep.subr.mxu1 %v2149_v49  ;;  %2746 = vmatpush3.msra.mxu0 %v2166_v50  ;;  %v2201_v49 = vld [vmem:[#allocation10 + $0x260] sm:$0xff]  ;;  %v2200_v50 = vld [vmem:[#allocation10 + $0x258] sm:$0xff] }
 0x268   :  { %2713 = vmatpush3.msra.mxu1 %v2133_v54  ;;  %2747 = vmatprep.subr.mxu0 %v2181_v55  ;;  %v2199_v54 = vld [vmem:[#allocation10 + $0x250] sm:$0xff]  ;;  %v2198_v55 = vld [vmem:[#allocation10 + $0x248] sm:$0xff] }
 0x269   :  { %2714 = vmatprep.subr.mxu1 %v2148_v58  ;;  %2748 = vmatpush3.msra.mxu0 %v2165_v59  ;;  %v2197_v58 = vld [vmem:[#allocation10 + $0x240] sm:$0xff]  ;;  %v2196_v59 = vld [vmem:[#allocation10 + $0x238] sm:$0xff] }
 0x26a   :  { %2715 = vmatpush3.msra.mxu1 %v2132_v61  ;;  %2749 = vmatprep.subr.mxu0 %v2180_v62  ;;  %v2195_v61 = vld [vmem:[#allocation10 + $0x230] sm:$0xff]  ;;  %v2194_v62 = vld [vmem:[#allocation10 + $0x228] sm:$0xff] }
 0x26b   :  { %2716 = vmatprep.subr.mxu1 %v2147_v1  ;;  %2750 = vmatpush3.msra.mxu0 %v2164_v2  ;;  %v2192_v1 = vld [vmem:[#allocation10 + $0x218] sm:$0xff]  ;;  %v2191_v2 = vld [vmem:[#allocation10 + $0x210] sm:$0xff] }
 0x26c   :  { %2717 = vmatpush3.msra.mxu1 %v2131_v3  ;;  %2751 = vmatprep.subr.mxu0 %v2179_v4  ;;  %v2190_v3 = vld [vmem:[#allocation10 + $0x208] sm:$0xff]  ;;  %v2189_v4 = vld [vmem:[#allocation10 + $0x200] sm:$0xff] }
 0x26d   :  { %2718 = vmatprep.subr.mxu1 %v2146_v6  ;;  %2752 = vmatpush3.msra.mxu0 %v2163_v7  ;;  %v1263_v6 = vrot.slane %v3307_v60, %v371_v41 }
 0x26e   :  { %2719 = vmatpush3.msra.mxu1 %v2130_v10  ;;  %2753 = vmatprep.subr.mxu0 %v2178_v11 }
 0x26f   :  { %2720 = vmatprep.subr.mxu1 %v2145_v16  ;;  %2754 = vmatpush3.msra.mxu0 %v2162_v56 }
 0x270   :  { %2721 = vmatpush3.msra.mxu1 %v2129_v40  ;;  %2755 = vmatprep.subr.mxu0 %v2177_v17 }
 0x271   :  { %2722 = vmatprep.subr.mxu1 %v2144_v19  ;;  %2756 = vmatpush3.msra.mxu0 %v2161_v20 }
 0x272   :  { %v1485_v30 = vpop.f32.mrf.mxu1  ;;  %2723 = vmatpush3.msra.mxu1 %v2128_v21  ;;  %2757 = vmatprep.subr.mxu0 %v2176_v63 }
 0x273   :  { %2724 = vmatprep.subr.mxu1 %v2143_v24  ;;  %2758 = vmatpush3.msra.mxu0 %v2160_v25  ;;  %v1486_v34 = vadd.f32 %v1485_v30, %v1415_v42  ;;  %v1271_v24 = vrot.slane %v3307_v60, %v379_v9  ;;  %v2435_v9 = vld [vmem:[#allocation13 + $0x60] sm:$0xff]  ;;  %v2434_v60 = vld [vmem:[#allocation13 + $0x58] sm:$0xff] }
 0x274   :  { %v1487_v35 = vpop.f32.mrf.mxu1  ;;  %2725 = vmatpush3.msra.mxu1 %v2127_v26  ;;  %2759 = vmatprep.subr.mxu0 %v2175_v27 }
 0x275   :  { %v1488_v36 = vadd.f32 %v1487_v35, %v1417_v32  ;;  %2726 = vmatprep.subr.mxu1 %v2142_v31  ;;  %2760 = vmatpush3.msra.mxu0 %v2159_v28  ;;  %v1557_v45 = vadd.f32 %v1556_v29, %v1486_v34  ;;  %v2438_v35 = vld [vmem:[#allocation13 + $0x78] sm:$0xff] }
 0x276   :  { %2727 = vmatpush3.msra.mxu1 %v2126_v51  ;;  %2761 = vmatprep.subr.mxu0 %v2174_v33 }
 0x277   :  { %v1559_v44 = vadd.f32 %v1558_v53, %v1488_v36  ;;  %2728 = vmatprep.subr.mxu1 %v2141_v12  ;;  %2762 = vmatpush3.msra.mxu0 %v2158_v57  ;;  %v2437_v12 = vld [vmem:[#allocation13 + $0x70] sm:$0xff]  ;;  %v2432_v36 = vld [vmem:[#allocation13 + $0x48] sm:$0xff] }
 0x278   :  { %2729 = vmatpush3.msra.mxu1 %v2125_v52  ;;  %2763 = vmatprep.subr.mxu0 %v2173_v37  ;;  %v2433_v57 = vld [vmem:[#allocation13 + $0x50] sm:$0xff]  ;;  %v2431_v52 = vld [vmem:[#allocation13 + $0x40] sm:$0xff]  ;;  %v2430_v37 = vld [vmem:[#allocation13 + $0x38] sm:$0xff] }
 0x279   :  { %2276 = vmatprep.mubr.f32.mxu1 %v1559_v44  ;;  %2764 = vmatpush3.msra.mxu0 %v2157_v23  ;;  %v2429_v53 = vld [vmem:[#allocation13 + $0x30] sm:$0xff]  ;;  %v2428_v23 = vld [vmem:[#allocation13 + $0x28] sm:$0xff]  ;;  %v2427_v44 = vld [vmem:[#allocation13 + $0x20] sm:$0xff] }
 0x27a   :  { %2277 = vmatmul.mubr.f32.vlgmr.msra.gmra.mxu1 %v1557_v45  ;;  %2837 = vmatprep.subr.mxu1 %v3130_v13  ;;  %v2426_v45 = vld [vmem:[#allocation13 + $0x18] sm:$0xff] }
 0x27b   :  { %2869 = vmatprep.mubr.msk.f32.mxu1 %vm3131_vm0, %v3130_v13  ;;  %2872 = vmatprep.subr.mxu0 %v3130_v13 }
 0x27c   :  { %2838 = vmatpush3.msra.mxu1 %v2204_v46  ;;  %v2425_v46 = vld [vmem:[#allocation13 + $0x10] sm:$0xff] }
 0x27d   :  { %2839 = vmatprep.subr.mxu1 %v3130_v13 }
 0x27e   :  { %2840 = vmatpush3.msra.mxu1 %v2203_v47  ;;  %v2424_v47 = vld [vmem:[#allocation13 + $0x8] sm:$0xff] }
 0x27f   :  { %2841 = vmatprep.subr.mxu1 %v3130_v13 }
 0x280   :  { %2842 = vmatpush3.msra.mxu1 %v2202_v48  ;;  %v2423_v48 = vld [vmem:[#allocation13] sm:$0xff] }
 0x281   :  { %2843 = vmatprep.subr.mxu1 %v3130_v13 }
 0x282   :  { %2844 = vmatpush3.msra.mxu1 %v2201_v49 }
 0x283   :  { %2845 = vmatprep.subr.mxu1 %v3130_v13 }
 0x284   :  { %2846 = vmatpush3.msra.mxu1 %v2200_v50 }
 0x285   :  { %2847 = vmatprep.subr.mxu1 %v3130_v13 }
 0x286   :  { %2848 = vmatpush3.msra.mxu1 %v2199_v54 }
 0x287   :  { %2849 = vmatprep.subr.mxu1 %v3130_v13 }
 0x288   :  { %2850 = vmatpush3.msra.mxu1 %v2198_v55 }
 0x289   :  { %2851 = vmatprep.subr.mxu1 %v3130_v13 }
 0x28a   :  { %2852 = vmatpush3.msra.mxu1 %v2197_v58 }
 0x28b   :  { %2853 = vmatprep.subr.mxu1 %v3130_v13 }
 0x28c   :  { %2854 = vmatpush3.msra.mxu1 %v2196_v59  ;;  %v2539_v59 = vld [vmem:[#allocation11] ss:$0 sm:$0xff] }
 0x28d   :  { %2855 = vmatprep.subr.mxu1 %v3130_v13 }
 0x28e   :  { %2856 = vmatpush3.msra.mxu1 %v2195_v61 }
 0x28f   :  { %2857 = vmatprep.subr.mxu1 %v3130_v13 }
 0x290   :  { %2858 = vmatpush3.msra.mxu1 %v2194_v62 }
 0x291   :  { %2859 = vmatprep.subr.mxu1 %v3130_v13 }
 0x292   :  { %2860 = vmatpush3.msra.mxu1 %v2193_v0 }
 0x293   :  { %2861 = vmatprep.subr.mxu1 %v3130_v13  ;;  %v1627_v5 = vpop.f32.mrf.mxu0 }
 0x294   :  { %2862 = vmatpush3.msra.mxu1 %v2192_v1  ;;  %v1628_v11 = vadd.f32 %v1627_v5, %v1263_v6  ;;  %v2540_v5 = vld [vmem:[#allocation14] ss:$0 sm:$0xff] }
 0x295   :  { %2863 = vmatprep.subr.mxu1 %v3130_v13  ;;  %v1629_v10 = vpop.f32.mrf.mxu0 }
 0x296   :  { %2864 = vmatpush3.msra.mxu1 %v2191_v2  ;;  %v1630_v15 = vadd.f32 %v1629_v10, %v1267_v8 }
 0x297   :  { %2865 = vmatprep.subr.mxu1 %v3130_v13 }
 0x298   :  { %2866 = vmatpush3.msra.mxu1 %v2190_v3 }
 0x299   :  { %2867 = vmatprep.subr.mxu1 %v3130_v13 }
 0x29a   :  { %2868 = vmatpush3.msra.mxu1 %v2189_v4 }
 0x2b3   :  { %v1698_v7 = vpop.f32.mrf.mxu1 }
 0x2b4   :  { %v1699_v16 = vadd.f32 %v1698_v7, %v1628_v11 }
 0x2b5   :  { %v1700_v14 = vpop.f32.mrf.mxu1 }
 0x2b6   :  { %v1701_v17 = vadd.f32 %v1700_v14, %v1630_v15 }
 0x2d4   :  { %v1840_v56 = vpop.f32.mrf.mxu1 }
 0x2d5   :  { %v1769_v40 = vpop.f32.mrf.mxu0 }
 0x2d6   :  { %v1770_v18 = vadd.f32 %v1769_v40, %v1699_v16  ;;  %v1842_v39 = vpop.f32.mrf.mxu1 }
 0x2d7   :  { %v1771_v19 = vpop.f32.mrf.mxu0 }
 0x2d8   :  { %v1772_v20 = vadd.f32 %v1771_v19, %v1701_v17  ;;  %v1841_v63 = vadd.f32 %v1840_v56, %v1770_v18 }
 0x2da   :  { %v1843_v21 = vadd.f32 %v1842_v39, %v1772_v20 }
 0x2dc   :  { %2346 = vmatprep.mubr.f32.mxu0 %v1843_v21 }
 0x2dd   :  { %2347 = vmatmul.mubr.f32.vlgmr.msra.gmra.mxu0 %v1841_v63 }
 0x2de   :  { %2904 = vmatprep.mubr.msk.f32.mxu0 %vm3131_vm0, %v3130_v13  ;;  %2873 = vmatpush3.msra.mxu0 %v2438_v35 }
 0x2df   :  { %2874 = vmatprep.subr.mxu0 %v3130_v13 }
 0x2e0   :  { %2875 = vmatpush3.msra.mxu0 %v2437_v12 }
 0x2e1   :  { %2876 = vmatprep.subr.mxu0 %v3130_v13 }
 0x2e2   :  { %2877 = vmatpush3.msra.mxu0 %v2436_v38 }
 0x2e3   :  { %2878 = vmatprep.subr.mxu0 %v3130_v13 }
 0x2e4   :  { %2879 = vmatpush3.msra.mxu0 %v2435_v9 }
 0x2e5   :  { %2880 = vmatprep.subr.mxu0 %v3130_v13 }
 0x2e6   :  { %2881 = vmatpush3.msra.mxu0 %v2434_v60 }
 0x2e7   :  { %2882 = vmatprep.subr.mxu0 %v3130_v13 }
 0x2e8   :  { %2883 = vmatpush3.msra.mxu0 %v2433_v57 }
 0x2e9   :  { %2884 = vmatprep.subr.mxu0 %v3130_v13 }
 0x2ea   :  { %2885 = vmatpush3.msra.mxu0 %v2432_v36 }
 0x2eb   :  { %2886 = vmatprep.subr.mxu0 %v3130_v13 }
 0x2ec   :  { %2887 = vmatpush3.msra.mxu0 %v2431_v52 }
 0x2ed   :  { %2888 = vmatprep.subr.mxu0 %v3130_v13 }
 0x2ee   :  { %2889 = vmatpush3.msra.mxu0 %v2430_v37 }
 0x2ef   :  { %2890 = vmatprep.subr.mxu0 %v3130_v13 }
 0x2f0   :  { %2891 = vmatpush3.msra.mxu0 %v2429_v53 }
 0x2f1   :  { %2892 = vmatprep.subr.mxu0 %v3130_v13 }
 0x2f2   :  { %2893 = vmatpush3.msra.mxu0 %v2428_v23 }
 0x2f3   :  { %2894 = vmatprep.subr.mxu0 %v3130_v13 }
 0x2f4   :  { %2895 = vmatpush3.msra.mxu0 %v2427_v44 }
 0x2f5   :  { %2896 = vmatprep.subr.mxu0 %v3130_v13 }
 0x2f6   :  { %v2608_v41 = vpop.f32.mrf.mxu1  ;;  %2897 = vmatpush3.msra.mxu0 %v2426_v45 }
 0x2f7   :  { %v2643_v43 = vpop.f32.mrf.mxu0  ;;  %2898 = vmatprep.subr.mxu0 %v3130_v13 }
 0x2f8   :  { %v2609_v22 = vpop.f32.mrf.mxu1  ;;  %2899 = vmatpush3.msra.mxu0 %v2425_v46 }
 0x2f9   :  { %v2610_v25 = vadd.f32 %v2609_v22, %v2608_v41  ;;  %v2644_v26 = vpop.f32.mrf.mxu0  ;;  %2900 = vmatprep.subr.mxu0 %v3130_v13 }
 0x2fa   :  { %v2645_v42 = vadd.f32 %v2644_v26, %v2643_v43  ;;  %2901 = vmatpush3.msra.mxu0 %v2424_v47 }
 0x2fb   :  { %v1912_v27 = vadd.f32 %v2610_v25, %v1271_v24  ;;  %2902 = vmatprep.subr.mxu0 %v3130_v13 }
 0x2fc   :  { %2903 = vmatpush3.msra.mxu0 %v2423_v48 }
 0x2fd   :  { %v1982_v28 = vadd.f32 %v2645_v42, %v1912_v27 }
 0x317   :  { %v2678_v29 = vpop.f32.mrf.mxu1 }
 0x319   :  { %v2121_v30 = vpop.f32.mrf.mxu0  ;;  %v2679_v31 = vpop.f32.mrf.mxu1 }
 0x31a   :  { %v2680_v32 = vadd.f32 %v2679_v31, %v2678_v29 }
 0x31b   :  { %v2836_v51 = vpop.f32.mrf.mxu0 }
 0x31c   :  { %v2052_v33 = vadd.f32 %v2680_v32, %v1982_v28 }
 0x31e   :  { %v2122_v34 = vadd.f32 %v2121_v30, %v2052_v33 }
 0x320   :  { %2870 = vmatmul.mubr.f32.vlgmr.msra.gmra.mxu1 %v2122_v34 }
 0x33a   :  { %v2730_v49 = vpop.f32.mrf.mxu1 }
 0x33c   :  { %v2731_v54 = vpop.f32.mrf.mxu1 }
 0x33d   :  { %v2732_v58 = vadd.f32 %v2731_v54, %v2730_v49 }
 0x33f   :  { %v2279_v62 = vadd.f32 %v2732_v58, %v2539_v59 }
 0x39d   :  { %v2765_v50 = vpop.f32.mrf.mxu0 }
 0x39f   :  { %v2766_v55 = vpop.f32.mrf.mxu0 }
 0x3a0   :  { %v2767_v61 = vadd.f32 %v2766_v55, %v2765_v50 }
 0x3a2   :  { %v2349_v0 = vadd.f32 %v2767_v61, %v2279_v62 }
 0x3e0   :  { %v2418_v1 = vpop.f32.mrf.mxu1 }
 0x3e1   :  { %v2419_v2 = vadd.f32 %v2418_v1, %v2349_v0 }
 0x3e2   :  { %v2871_v3 = vpop.f32.mrf.mxu1 }
 0x3e3   :  { %v2422_v4 = vmax.f32 %v2419_v2, 0.0 }
 0x3e5   :  { %2905 = vmatmul.mubr.f32.vlgmr.msra.gmra.mxu0 %v2422_v4 }
 0x4a5   :  { %v2512_v6 = vpop.f32.mrf.mxu0 }
 0x4a6   :  { %v2513_v13 = vadd.f32 %v2540_v5, %v2512_v6 }
 0x4a7   :  { %v2906_v7 = vpop.f32.mrf.mxu0 }
 0x4a8   :  { %v2516_v8 = vmax.f32 %v2513_v13, 0.0 }
 0x4aa   :  { %2518 = vst.msk [vmem:[#allocation16] sm:$0x3] %vm2517_vm1, %v2516_v8 }
 0x4ab   :  { %3095 = shalt.err (!%p3092_p2)
}
 0x4ac   :  { %2528 = dma.vmem_to_hbm [thread:$0]  %s2526_s30, 32, %s3372_s9, [#allocation4]  }
 0x4ad   :  { %3114 = dma.done.wait [#allocation4], 32  }
 0x4ae   :  { %3115 = vsyncadd [#allocation4], 4294967264 }
 0x4af   :  { %2532 = vsyncpa [#allocation3], 1 }
 0x4b0   :  { %2533 = vsyncpa [#allocation6], 1 }
 0x4b1   :  { %2534 = vsyncpa [#allocation9], 1 }
 0x4b2   :  { %2535 = vsyncpa [#allocation12], 1 }
 0x4b3   :  { %2536 = vsyncpa [#allocation15], 1 }
 0x4b4   :  { %2537 = vsyncpa [#allocation4], 1 }

</bundles_post_ra>
